<compile_context>
chip_gen: v7x
topology: tpu7x:2x2x1
jax: 0.10.0
libtpu: 0.0.40
codegen_flags: <defaults>
</compile_context>

<pallas_src>
import functools

import jax
import jax.numpy as jnp
from jax import lax
from jax.experimental import pallas as pl
from jax.experimental.pallas import tpu as pltpu


# --------------------------------------------------------------------------- #
# In-kernel math helpers (trace-time only)
# --------------------------------------------------------------------------- #
def _ln2d(x, g, b, eps=1e-5):
    """LayerNorm over the last axis.  x:(R,D)  g,b:(1,D).  Biased variance (PyTorch LN)."""
    mu = jnp.mean(x, axis=-1, keepdims=True)
    xc = x - mu
    var = jnp.mean(xc * xc, axis=-1, keepdims=True)
    return xc * lax.rsqrt(var + eps) * g + b


def _softmax_rows(s):
    m = jnp.max(s, axis=-1, keepdims=True)
    p = jnp.exp(s - m)
    # approx reciprocal -> EUP slot (essentially free); error after normalization is negligible
    return p * pl.reciprocal(jnp.sum(p, axis=-1, keepdims=True), approx=True)


def _gelu(x):
    # TODO(synk): PyTorch nn.GELU default is exact erf; tanh approximation used in-kernel.
    return jax.nn.gelu(x, approximate=True)


def _bdot(x, w):
    """MXU matmul: cast the f32 activation to the (bf16) weight dtype, accumulate in f32."""
    return jnp.dot(x.astype(w.dtype), w, preferred_element_type=jnp.float32)


def _attention(q_in, kv_in, wq, wkv, wo_heads, *, num_heads, scale,
               bq=None, bkv=None, bo=None, causal_bias=None):
    """Multi-head attention with lane-dense fused projections.

    q_in:(Lq,D)  kv_in:(S,D)
    wq:(D,D) bf16   wkv:(D,2D) bf16   wo_heads:(H,dh,D) bf16 (lane-dense per-head slices of Wo)
    bq:(1,D)  bkv:(1,2D)  bo:(1,D)  (f32, optional)
    causal_bias:(Lq,S) additive mask (0 / -1e30) or None.
    """
    D = wq.shape[1]
    dh = D // num_heads
    q_all = _bdot(q_in, wq)                       # (Lq, D)   one lane-dense matmul
    if bq is not None:
        q_all = q_all + bq
    kv = _bdot(kv_in, wkv)                        # (S, 2D)   one lane-dense matmul
    if bkv is not None:
        kv = kv + bkv
    out = None
    for h in range(num_heads):
        lo, hi = h * dh, (h + 1) * dh
        qh = q_all[:, lo:hi]                      # head slices of the projected values
        kh = kv[:, lo:hi]
        vh = kv[:, D + lo:D + hi]
        s = lax.dot_general(qh, kh, (((1,), (1,)), ((), ())),
                            preferred_element_type=jnp.float32) * scale
        if causal_bias is not None:
            # Reference masks with -inf BEFORE scaling; additive -1e30 after scaling gives the
            # same softmax (do not shrink this sentinel).
            s = s + causal_bias
        ctx_h = jnp.dot(_softmax_rows(s), vh, preferred_element_type=jnp.float32)   # (Lq, dh)
        contrib = _bdot(ctx_h, wo_heads[h])                                          # (Lq, D)
        out = contrib if out is None else out + contrib
    if bo is not None:
        out = out + bo
    return out


# --------------------------------------------------------------------------- #
# Pallas kernels
# --------------------------------------------------------------------------- #
def _encoder_stack_kernel(feat_ref, w_enc_ref, b_enc_ref, cls_ref, pos_ref,
                          ln_ref, wq_ref, wkv_ref, wproj_ref, bproj_ref,
                          wff1_ref, bff1_ref, wff2_ref, bff2_ref, preln_ref,
                          o_ref, x_sc, *, num_heads):
    """grid=(B, num_layers).  One grid step == one encoder layer of one batch element.

    Embedding fused into layer 0; pre_head_ln fused into the last layer; the (N, E) activation
    stays resident in the VMEM scratch x_sc across the layer axis.
    """
    layer = pl.program_id(1)
    n_layers = pl.num_programs(1)
    N, E = x_sc.shape
    T = feat_ref.shape[1]
    scale = float(E // num_heads) ** -0.5

    @pl.when(layer == 0)
    def _embed():
        tok = _bdot(feat_ref[0], w_enc_ref[...]) + b_enc_ref[...]        # linear_encoding
        x_sc[0:T, :] = tok + pos_ref[0:T, :]
        x_sc[T:N, :] = cls_ref[...] + pos_ref[T:N, :]                    # cls token appended LAST

    x = x_sc[...]                                                        # (N, E)
    ln = ln_ref[0]                                                       # (4, E)

    # Residual(PreNormDrop(SelfAttention))  (qkv_bias=False)
    h = _ln2d(x, ln[0:1], ln[1:2])
    att = _attention(h, h, wq_ref[0], wkv_ref[0], wproj_ref[0],
                     num_heads=num_heads, scale=scale, bo=bproj_ref[0])
    x1 = x + att

    # Residual(PreNorm(FeedForward))
    h2 = _ln2d(x1, ln[2:3], ln[3:4])
    f = _gelu(_bdot(h2, wff1_ref[0]) + bff1_ref[0])
    f = _bdot(f, wff2_ref[0]) + bff2_ref[0]
    x_new = x1 + f
    x_sc[...] = x_new

    @pl.when(layer == n_layers - 1)
    def _final():
        o_ref[0] = _ln2d(x_new, preln_ref[0:1], preln_ref[1:2])          # pre_head_ln fused


def _decoder_stack_kernel(cross_ref, dec_tok_ref, ln_ref,
                          sa_wq_ref, sa_bq_ref, sa_wkv_ref, sa_bkv_ref, sa_wo_ref, sa_bo_ref,
                          ca_wq_ref, ca_bq_ref, ca_wkv_ref, ca_bkv_ref, ca_wo_ref, ca_bo_ref,
                          w1_ref, b1_ref, w2_ref, b2_ref,
                          dec_norm_ref, cls_w_ref, cls_b_ref,
                          head_wx_ref, head_wd_ref, head_b_ref,
                          out_ref, dec_cls_ref, dec_sc, *, num_heads):
    """grid=(B, dec_layers).  One grid step == one decoder layer of one batch element.

    Decoder state resident in VMEM scratch dec_sc; the epilogue (final LayerNorm, mean over
    queries, classifier head, mlp_head over concat(x[:, -1], dec_mean)) is fused into the last
    layer step.
    """
    layer = pl.program_id(1)
    n_layers = pl.num_programs(1)
    Q, D = dec_sc.shape
    N = cross_ref.shape[1]
    scale = float(D // num_heads) ** -0.5

    @pl.when(layer == 0)
    def _init():
        dec_sc[...] = dec_tok_ref[0]                                     # decoder_cls_token.expand

    # causal additive bias, hoisted out of the head loop (computed once per grid step)
    row = lax.broadcasted_iota(jnp.int32, (Q, Q), 0)
    col = lax.broadcasted_iota(jnp.int32, (Q, Q), 1)
    causal = jnp.where(col > row, -1e30, 0.0)

    x = dec_sc[...]                                                      # (Q, D)
    cross = cross_ref[0]                                                 # (N, D) post pre_head_ln
    ln = ln_ref[0]                                                       # (6, D)

    # x = norm1(x + self_attention(x, x, x))   (causal)
    sa = _attention(x, x, sa_wq_ref[0], sa_wkv_ref[0], sa_wo_ref[0],
                    num_heads=num_heads, scale=scale,
                    bq=sa_bq_ref[0], bkv=sa_bkv_ref[0], bo=sa_bo_ref[0], causal_bias=causal)
    x1 = _ln2d(x + sa, ln[0:1], ln[1:2])

    # x = norm2(x + cross_attention(x, cross, cross))
    ca = _attention(x1, cross, ca_wq_ref[0], ca_wkv_ref[0], ca_wo_ref[0],
                    num_heads=num_heads, scale=scale,
                    bq=ca_bq_ref[0], bkv=ca_bkv_ref[0], bo=ca_bo_ref[0])
    x2 = _ln2d(x1 + ca, ln[2:3], ln[3:4])

    # conv1d(kernel_size=1) == pointwise linear over channels
    y = _gelu(_bdot(x2, w1_ref[0]) + b1_ref[0])
    y = _bdot(y, w2_ref[0]) + b2_ref[0]
    x_new = _ln2d(x2 + y, ln[4:5], ln[5:6])                              # norm3
    dec_sc[...] = x_new

    @pl.when(layer == n_layers - 1)
    def _final():
        dec_n = _ln2d(x_new, dec_norm_ref[0:1], dec_norm_ref[1:2])       # decoder final LayerNorm
        dec_cls_ref[0] = _bdot(dec_n, cls_w_ref[...]) + cls_b_ref[...]   # classifier head
        dec_mean = jnp.mean(dec_n, axis=0, keepdims=True)                # mean over queries
        xt = cross[N - 1:N, :]                                           # x[:, -1]  (cls token)
        # mlp_head(concat(x[:, -1], dec_mean)) as split-weight matmuls (no lane concat)
        out_ref[0] = (_bdot(xt, head_wx_ref[...]) + _bdot(dec_mean, head_wd_ref[...])
                      + head_b_ref[...])


# --------------------------------------------------------------------------- #
# BlockSpec helpers
# --------------------------------------------------------------------------- #
def _full_spec(shape):
    nd = len(shape)
    return pl.BlockSpec(tuple(shape), lambda *_: (0,) * nd)


def _layer_spec(shape):
    nd = len(shape)
    return pl.BlockSpec((1,) + tuple(shape[1:]), lambda b, l: (l,) + (0,) * (nd - 1))


def _batch_spec(shape):
    nd = len(shape)
    return pl.BlockSpec((1,) + tuple(shape[1:]), lambda b, l: (b,) + (0,) * (nd - 1))


# --------------------------------------------------------------------------- #
# Forward pass (2 pallas_call launches)
# --------------------------------------------------------------------------- #
def vision_transformer_v3_forward(packed, sequence_input_rgb, sequence_input_flow):
    cfg = packed["cfg"]
    rgb = sequence_input_rgb.astype(jnp.float32)
    flow = sequence_input_flow.astype(jnp.float32)
    feat = jnp.concatenate([rgb, flow], axis=2)              # torch.cat((rgb, flow), 2)
    B, T, _ = feat.shape
    E = cfg["embedding_dim"]
    N = T + 1
    num_layers = packed["enc_ln"].shape[0]

    # 1) embedding + full encoder stack + pre_head_ln in one launch
    x_enc = pl.pallas_call(
        functools.partial(_encoder_stack_kernel, num_heads=cfg["num_heads"]),
        out_shape=jax.ShapeDtypeStruct((B, N, E), jnp.float32),
        grid=(B, num_layers),
        in_specs=[_batch_spec(feat.shape),
                  _full_spec(packed["w_enc"].shape), _full_spec(packed["b_enc"].shape),
                  _full_spec(packed["cls"].shape), _full_spec(packed["pos"].shape),
                  _layer_spec(packed["enc_ln"].shape),
                  _layer_spec(packed["enc_wq"].shape), _layer_spec(packed["enc_wkv"].shape),
                  _layer_spec(packed["enc_wproj"].shape), _layer_spec(packed["enc_bproj"].shape),
                  _layer_spec(packed["enc_wff1"].shape), _layer_spec(packed["enc_bff1"].shape),
                  _layer_spec(packed["enc_wff2"].shape), _layer_spec(packed["enc_bff2"].shape),
                  _full_spec(packed["preln"].shape)],
        out_specs=_batch_spec((B, N, E)),
        scratch_shapes=[pltpu.VMEM((N, E), jnp.float32)],
        compiler_params=pltpu.CompilerParams(
            dimension_semantics=("parallel", "arbitrary")),
    )(feat, packed["w_enc"], packed["b_enc"], packed["cls"], packed["pos"],
      packed["enc_ln"], packed["enc_wq"], packed["enc_wkv"],
      packed["enc_wproj"], packed["enc_bproj"],
      packed["enc_wff1"], packed["enc_bff1"], packed["enc_wff2"], packed["enc_bff2"],
      packed["preln"])

    # 2) full decoder stack + final norm + classifier + mlp_head epilogue in one launch
    Q = cfg["query_num"]
    d = cfg["d_model"]
    out_dim = packed["cls_b"].shape[1]
    dec_layers = packed["dec_ln"].shape[0]
    out3, dec_cls_out = pl.pallas_call(
        functools.partial(_decoder_stack_kernel, num_heads=cfg["dec_heads"]),
        out_shape=(jax.ShapeDtypeStruct((B, 1, out_dim), jnp.float32),
                   jax.ShapeDtypeStruct((B, Q, out_dim), jnp.float32)),
        grid=(B, dec_layers),
        in_specs=[_batch_spec((B, N, E)),
                  _full_spec(packed["dec_tok"].shape),
                  _layer_spec(packed["dec_ln"].shape),
                  _layer_spec(packed["dec_sa_wq"].shape), _layer_spec(packed["dec_sa_bq"].shape),
                  _layer_spec(packed["dec_sa_wkv"].shape), _layer_spec(packed["dec_sa_bkv"].shape),
                  _layer_spec(packed["dec_sa_wo"].shape), _layer_spec(packed["dec_sa_bo"].shape),
                  _layer_spec(packed["dec_ca_wq"].shape), _layer_spec(packed["dec_ca_bq"].shape),
                  _layer_spec(packed["dec_ca_wkv"].shape), _layer_spec(packed["dec_ca_bkv"].shape),
                  _layer_spec(packed["dec_ca_wo"].shape), _layer_spec(packed["dec_ca_bo"].shape),
                  _layer_spec(packed["dec_w1"].shape), _layer_spec(packed["dec_b1"].shape),
                  _layer_spec(packed["dec_w2"].shape), _layer_spec(packed["dec_b2"].shape),
                  _full_spec(packed["dec_norm"].shape),
                  _full_spec(packed["cls_w"].shape), _full_spec(packed["cls_b"].shape),
                  _full_spec(packed["head_wx"].shape), _full_spec(packed["head_wd"].shape),
                  _full_spec(packed["head_b"].shape)],
        out_specs=(_batch_spec((B, 1, out_dim)), _batch_spec((B, Q, out_dim))),
        scratch_shapes=[pltpu.VMEM((Q, d), jnp.float32)],
        compiler_params=pltpu.CompilerParams(
            dimension_semantics=("parallel", "arbitrary")),
    )(x_enc, packed["dec_tok"], packed["dec_ln"],
      packed["dec_sa_wq"], packed["dec_sa_bq"], packed["dec_sa_wkv"], packed["dec_sa_bkv"],
      packed["dec_sa_wo"], packed["dec_sa_bo"],
      packed["dec_ca_wq"], packed["dec_ca_bq"], packed["dec_ca_wkv"], packed["dec_ca_bkv"],
      packed["dec_ca_wo"], packed["dec_ca_bo"],
      packed["dec_w1"], packed["dec_b1"], packed["dec_w2"], packed["dec_b2"],
      packed["dec_norm"], packed["cls_w"], packed["cls_b"],
      packed["head_wx"], packed["head_wd"], packed["head_b"])

    return out3[:, 0, :], dec_cls_out


# --------------------------------------------------------------------------- #
# Deterministic parameter initialization (PyTorch-like layout)
# --------------------------------------------------------------------------- #
def init_params(key, *, flatten_dim, embedding_dim, num_heads, num_layers, hidden_dim,
                out_dim, d_model, dec_heads, dec_layers, d_ff, query_num, seq_length):
    def nrm(k, shape, scale=0.02):
        return scale * jax.random.normal(k, shape, dtype=jnp.float32)

    keys = iter(jax.random.split(key, 1024))
    E, d = embedding_dim, d_model
    p = {
        "cfg": dict(embedding_dim=E, num_heads=num_heads, d_model=d,
                    dec_heads=dec_heads, query_num=query_num),
        "enc_w": nrm(next(keys), (flatten_dim, E)),
        "enc_b": nrm(next(keys), (E,)),
        "cls_token": nrm(next(keys), (1, 1, E)),
        "pos_embed": nrm(next(keys), (1, seq_length, E)),
        "pre_ln_g": jnp.ones((E,), jnp.float32),
        "pre_ln_b": jnp.zeros((E,), jnp.float32),
        "decoder_cls_token": nrm(next(keys), (1, query_num, d)),
        "dec_norm_g": jnp.ones((d,), jnp.float32),
        "dec_norm_b": jnp.zeros((d,), jnp.float32),
        "cls_w": nrm(next(keys), (d, out_dim)),
        "cls_b": nrm(next(keys), (out_dim,)),
        "head_w": nrm(next(keys), (E + d, out_dim)),
        "head_b": nrm(next(keys), (out_dim,)),
    }

    p["encoder_layers"] = []
    for _ in range(num_layers):
        p["encoder_layers"].append({
            "ln1_g": jnp.ones((E,), jnp.float32), "ln1_b": jnp.zeros((E,), jnp.float32),
            "w_qkv": nrm(next(keys), (E, 3 * E)),
            "w_proj": nrm(next(keys), (E, E)), "b_proj": nrm(next(keys), (E,)),
            "ln2_g": jnp.ones((E,), jnp.float32), "ln2_b": jnp.zeros((E,), jnp.float32),
            "w_ff1": nrm(next(keys), (E, hidden_dim)), "b_ff1": nrm(next(keys), (hidden_dim,)),
            "w_ff2": nrm(next(keys), (hidden_dim, E)), "b_ff2": nrm(next(keys), (E,)),
        })

    def attn_params():
        return {
            "wq": nrm(next(keys), (d, d)), "bq": nrm(next(keys), (d,)),
            "wk": nrm(next(keys), (d, d)), "bk": nrm(next(keys), (d,)),
            "wv": nrm(next(keys), (d, d)), "bv": nrm(next(keys), (d,)),
            "wo": nrm(next(keys), (d, d)), "bo": nrm(next(keys), (d,)),
        }

    p["decoder_layers"] = []
    for _ in range(dec_layers):
        p["decoder_layers"].append({
            "self_attn": attn_params(),
            "cross_attn": attn_params(),
            "ln1_g": jnp.ones((d,), jnp.float32), "ln1_b": jnp.zeros((d,), jnp.float32),
            "ln2_g": jnp.ones((d,), jnp.float32), "ln2_b": jnp.zeros((d,), jnp.float32),
            "ln3_g": jnp.ones((d,), jnp.float32), "ln3_b": jnp.zeros((d,), jnp.float32),
            "w_conv1": nrm(next(keys), (d, d_ff)), "b_conv1": nrm(next(keys), (d_ff,)),
            "w_conv2": nrm(next(keys), (d_ff, d)), "b_conv2": nrm(next(keys), (d,)),
        })
    return p


# --------------------------------------------------------------------------- #
# Host-side one-time packing: per-layer stacks, lane-dense bf16 matmul weights
# --------------------------------------------------------------------------- #
def pack_params(p):
    cfg = p["cfg"]
    E, H = cfg["embedding_dim"], cfg["num_heads"]
    d, Hd = cfg["d_model"], cfg["dec_heads"]
    wdt = jnp.bfloat16   # bf16 matmul weights; biases / LN params / activations stay f32

    def heads_rows(w, nh):        # (D, Dout) -> (nh, D//nh, Dout)   lane-dense per-head Wo slices
        return w.reshape(nh, w.shape[0] // nh, w.shape[1])

    packed = {"cfg": cfg}
    packed["w_enc"] = p["enc_w"].astype(wdt)                        # (flatten_dim, E)
    packed["b_enc"] = p["enc_b"][None, :]
    packed["cls"] = p["cls_token"].reshape(1, E)
    packed["pos"] = p["pos_embed"].reshape(-1, E)
    packed["preln"] = jnp.stack([p["pre_ln_g"], p["pre_ln_b"]])     # (2, E)

    enc_ln, wq, wkv, wproj, bproj, wff1, bff1, wff2, bff2 = ([] for _ in range(9))
    for lp in p["encoder_layers"]:
        enc_ln.append(jnp.stack([lp["ln1_g"], lp["ln1_b"], lp["ln2_g"], lp["ln2_b"]]))
        w = lp["w_qkv"]
        wq.append(w[:, 0:E])
        wkv.append(w[:, E:3 * E])
        wproj.append(heads_rows(lp["w_proj"], H))
        bproj.append(lp["b_proj"][None, :])
        wff1.append(lp["w_ff1"]); bff1.append(lp["b_ff1"][None, :])
        wff2.append(lp["w_ff2"]); bff2.append(lp["b_ff2"][None, :])
    packed["enc_ln"] = jnp.stack(enc_ln)                            # (L, 4, E)  f32
    packed["enc_wq"] = jnp.stack(wq).astype(wdt)                    # (L, E, E)
    packed["enc_wkv"] = jnp.stack(wkv).astype(wdt)                  # (L, E, 2E)
    packed["enc_wproj"] = jnp.stack(wproj).astype(wdt)              # (L, H, dh, E)
    packed["enc_bproj"] = jnp.stack(bproj)                          # (L, 1, E)
    packed["enc_wff1"] = jnp.stack(wff1).astype(wdt)
    packed["enc_bff1"] = jnp.stack(bff1)
    packed["enc_wff2"] = jnp.stack(wff2).astype(wdt)
    packed["enc_bff2"] = jnp.stack(bff2)

    def pack_attn(ap):
        wkv_ = jnp.concatenate([ap["wk"], ap["wv"]], axis=1)        # (d, 2d)
        bkv_ = jnp.concatenate([ap["bk"], ap["bv"]], axis=0)        # (2d,)
        return (ap["wq"], ap["bq"][None, :], wkv_, bkv_[None, :],
                heads_rows(ap["wo"], Hd), ap["bo"][None, :])

    dec_ln = []
    sa = {k: [] for k in ("wq", "bq", "wkv", "bkv", "wo", "bo")}
    ca = {k: [] for k in ("wq", "bq", "wkv", "bkv", "wo", "bo")}
    w1, b1, w2, b2 = [], [], [], []
    for lp in p["decoder_layers"]:
        dec_ln.append(jnp.stack([lp["ln1_g"], lp["ln1_b"], lp["ln2_g"], lp["ln2_b"],
                                 lp["ln3_g"], lp["ln3_b"]]))
        for dst, src in ((sa, lp["self_attn"]), (ca, lp["cross_attn"])):
            vq, vbq, vkv, vbkv, vo, vbo = pack_attn(src)
            dst["wq"].append(vq); dst["bq"].append(vbq)
            dst["wkv"].append(vkv); dst["bkv"].append(vbkv)
            dst["wo"].append(vo); dst["bo"].append(vbo)
        w1.append(lp["w_conv1"]); b1.append(lp["b_conv1"][None, :])
        w2.append(lp["w_conv2"]); b2.append(lp["b_conv2"][None, :])
    packed["dec_ln"] = jnp.stack(dec_ln)                            # (Ld, 6, d)
    for name, dst in (("sa", sa), ("ca", ca)):
        packed[f"dec_{name}_wq"] = jnp.stack(dst["wq"]).astype(wdt)     # (Ld, d, d)
        packed[f"dec_{name}_bq"] = jnp.stack(dst["bq"])                 # (Ld, 1, d)
        packed[f"dec_{name}_wkv"] = jnp.stack(dst["wkv"]).astype(wdt)   # (Ld, d, 2d)
        packed[f"dec_{name}_bkv"] = jnp.stack(dst["bkv"])               # (Ld, 1, 2d)
        packed[f"dec_{name}_wo"] = jnp.stack(dst["wo"]).astype(wdt)     # (Ld, Hd, dh, d)
        packed[f"dec_{name}_bo"] = jnp.stack(dst["bo"])                 # (Ld, 1, d)
    packed["dec_w1"] = jnp.stack(w1).astype(wdt); packed["dec_b1"] = jnp.stack(b1)
    packed["dec_w2"] = jnp.stack(w2).astype(wdt); packed["dec_b2"] = jnp.stack(b2)
    packed["dec_tok"] = p["decoder_cls_token"]                      # (1, Q, d)
    packed["dec_norm"] = jnp.stack([p["dec_norm_g"], p["dec_norm_b"]])
    packed["cls_w"] = p["cls_w"].astype(wdt)
    packed["cls_b"] = p["cls_b"][None, :]
    packed["head_wx"] = p["head_w"][:E].astype(wdt)                 # concat split: x[:, -1] part
    packed["head_wd"] = p["head_w"][E:].astype(wdt)                 # concat split: dec_mean part
    packed["head_b"] = p["head_b"][None, :]
    return packed


# --------------------------------------------------------------------------- #
# Main
# --------------------------------------------------------------------------- #
if __name__ == "__main__":
    # Small config consistent with the module's forward:
    #   num_patches (T) = 8, seq_length = 9, flatten_dim = rgb_dim + flow_dim = 32
    B, T = 2, 8
    rgb_dim, flow_dim = 24, 8
    embedding_dim, num_heads, num_layers, hidden_dim = 32, 4, 2, 64
    out_dim = 10
    d_model, dec_heads, dec_layers, d_ff, query_num = 32, 4, 2, 64, 4
    seq_length = T + 1

    key = jax.random.PRNGKey(0)
    k_rgb, k_flow, k_param = jax.random.split(key, 3)
    rgb = jax.random.normal(k_rgb, (B, T, rgb_dim), dtype=jnp.float32)
    flow = jax.random.normal(k_flow, (B, T, flow_dim), dtype=jnp.float32)

    params = init_params(
        k_param,
        flatten_dim=rgb_dim + flow_dim,
        embedding_dim=embedding_dim, num_heads=num_heads, num_layers=num_layers,
        hidden_dim=hidden_dim, out_dim=out_dim,
        d_model=d_model, dec_heads=dec_heads, dec_layers=dec_layers,
        d_ff=d_ff, query_num=query_num, seq_length=seq_length,
    )
    packed = pack_params(params)

    fwd = jax.jit(lambda r, f: vision_transformer_v3_forward(packed, r, f))
    out, dec_cls_out = fwd(rgb, flow)
    jax.block_until_ready((out, dec_cls_out))

    assert out.shape == (B, out_dim)
    assert dec_cls_out.shape == (B, query_num, out_dim)
    assert jnp.all(jnp.isfinite(out)) and jnp.all(jnp.isfinite(dec_cls_out))
    print("KERNEL_OK")
</pallas_src>

<mosaic_0001>
module attributes {stable_mosaic.version = 11 : i64} {
  func.func @_encoder_stack_kernel(%arg0: i32, %arg1: i32, %arg2: memref<1x8x32xf32, #tpu.memory_space<vmem>>, %arg3: memref<32x32xbf16, #tpu.memory_space<vmem>>, %arg4: memref<1x32xf32, #tpu.memory_space<vmem>>, %arg5: memref<1x32xf32, #tpu.memory_space<vmem>>, %arg6: memref<9x32xf32, #tpu.memory_space<vmem>>, %arg7: memref<1x4x32xf32, #tpu.memory_space<vmem>>, %arg8: memref<1x32x32xbf16, #tpu.memory_space<vmem>>, %arg9: memref<1x32x64xbf16, #tpu.memory_space<vmem>>, %arg10: memref<1x4x8x32xbf16, #tpu.memory_space<vmem>>, %arg11: memref<1x1x32xf32, #tpu.memory_space<vmem>>, %arg12: memref<1x32x64xbf16, #tpu.memory_space<vmem>>, %arg13: memref<1x1x64xf32, #tpu.memory_space<vmem>>, %arg14: memref<1x64x32xbf16, #tpu.memory_space<vmem>>, %arg15: memref<1x1x32xf32, #tpu.memory_space<vmem>>, %arg16: memref<2x32xf32, #tpu.memory_space<vmem>>, %arg17: memref<1x9x32xf32, #tpu.memory_space<vmem>>, %arg18: memref<9x32xf32, #tpu.memory_space<vmem>>) attributes {dimension_semantics = [#tpu.dimension_semantics<parallel>, #tpu.dimension_semantics<arbitrary>], iteration_bounds = array<i64: 2, 2>, scalar_prefetch = 0 : i64, scratch_operands = 1 : i64, tpu.core_type = #tpu.core_type<tc>, window_params = [{transform_indices = @transform_0, window_bounds = array<i64: 1, 8, 32>}, {pipeline_mode = #tpu.pipeline_mode<synchronous>, transform_indices = @transform_1, window_bounds = array<i64: 32, 32>}, {pipeline_mode = #tpu.pipeline_mode<synchronous>, transform_indices = @transform_2, window_bounds = array<i64: 1, 32>}, {pipeline_mode = #tpu.pipeline_mode<synchronous>, transform_indices = @transform_3, window_bounds = array<i64: 1, 32>}, {pipeline_mode = #tpu.pipeline_mode<synchronous>, transform_indices = @transform_4, window_bounds = array<i64: 9, 32>}, {transform_indices = @transform_5, window_bounds = array<i64: 1, 4, 32>}, {transform_indices = @transform_6, window_bounds = array<i64: 1, 32, 32>}, {transform_indices = @transform_7, window_bounds = array<i64: 1, 32, 64>}, {transform_indices = @transform_8, window_bounds = array<i64: 1, 4, 8, 32>}, {transform_indices = @transform_9, window_bounds = array<i64: 1, 1, 32>}, {transform_indices = @transform_10, window_bounds = array<i64: 1, 32, 64>}, {transform_indices = @transform_11, window_bounds = array<i64: 1, 1, 64>}, {transform_indices = @transform_12, window_bounds = array<i64: 1, 64, 32>}, {transform_indices = @transform_13, window_bounds = array<i64: 1, 1, 32>}, {pipeline_mode = #tpu.pipeline_mode<synchronous>, transform_indices = @transform_14, window_bounds = array<i64: 2, 32>}, {transform_indices = @transform_15, window_bounds = array<i64: 1, 9, 32>}]} {
    %c0_i32 = arith.constant 0 : i32
    %0 = arith.cmpi eq, %arg1, %c0_i32 : i32
    %1 = arith.extui %0 : i1 to i32
    %c0_i32_0 = arith.constant 0 : i32
    %2 = arith.cmpi ne, %1, %c0_i32_0 : i32
    scf.if %2 {
      %c0_74 = arith.constant 0 : index
      %c0_75 = arith.constant 0 : index
      %c0_76 = arith.constant 0 : index
      %186 = vector.load %arg2[%c0_74, %c0_75, %c0_76] : memref<1x8x32xf32, #tpu.memory_space<vmem>>, vector<1x8x32xf32>
      %187 = vector.shape_cast %186 : vector<1x8x32xf32> to vector<8x32xf32>
      %c0_77 = arith.constant 0 : index
      %c0_78 = arith.constant 0 : index
      %188 = vector.load %arg3[%c0_77, %c0_78] : memref<32x32xbf16, #tpu.memory_space<vmem>>, vector<32x32xbf16>
      %189 = arith.truncf %187 : vector<8x32xf32> to vector<8x32xbf16>
      %cst_79 = arith.constant dense<0.000000e+00> : vector<8x32xf32>
      %190 = tpu.matmul %189, %188, %cst_79 {dimension_numbers = #tpu.dot_dimension_numbers<[1], [0], [0], [1], [0, 0, 1, 1], [], []>} : vector<8x32xbf16>, vector<32x32xbf16>, vector<8x32xf32> -> vector<8x32xf32>
      %c0_80 = arith.constant 0 : index
      %c0_81 = arith.constant 0 : index
      %191 = vector.load %arg4[%c0_80, %c0_81] : memref<1x32xf32, #tpu.memory_space<vmem>>, vector<1x32xf32>
      %192 = vector.broadcast %191 : vector<1x32xf32> to vector<8x32xf32>
      %193 = arith.addf %190, %192 : vector<8x32xf32>
      %c0_82 = arith.constant 0 : index
      %c0_83 = arith.constant 0 : index
      %194 = vector.load %arg6[%c0_82, %c0_83] : memref<9x32xf32, #tpu.memory_space<vmem>>, vector<8x32xf32>
      %195 = arith.addf %193, %194 : vector<8x32xf32>
      %c0_84 = arith.constant 0 : index
      %c0_85 = arith.constant 0 : index
      %196 = vector.load %arg18[%c0_84, %c0_85] : memref<9x32xf32, #tpu.memory_space<vmem>>, vector<8x32xf32>
      tpu.vector_store %arg18[%c0_84, %c0_85], %195 {strides = array<i32>} : memref<9x32xf32, #tpu.memory_space<vmem>>, vector<8x32xf32>,
      %c0_86 = arith.constant 0 : index
      %c0_87 = arith.constant 0 : index
      %197 = vector.load %arg5[%c0_86, %c0_87] : memref<1x32xf32, #tpu.memory_space<vmem>>, vector<1x32xf32>
      %c8 = arith.constant 8 : index
      %c0_88 = arith.constant 0 : index
      %198 = vector.load %arg6[%c8, %c0_88] : memref<9x32xf32, #tpu.memory_space<vmem>>, vector<1x32xf32>
      %199 = arith.addf %197, %198 : vector<1x32xf32>
      %c8_89 = arith.constant 8 : index
      %c0_90 = arith.constant 0 : index
      %200 = vector.load %arg18[%c8_89, %c0_90] : memref<9x32xf32, #tpu.memory_space<vmem>>, vector<1x32xf32>
      tpu.vector_store %arg18[%c8_89, %c0_90], %199 {strides = array<i32>} : memref<9x32xf32, #tpu.memory_space<vmem>>, vector<1x32xf32>,
    } else {
    }
    %c0 = arith.constant 0 : index
    %c0_1 = arith.constant 0 : index
    %3 = vector.load %arg18[%c0, %c0_1] : memref<9x32xf32, #tpu.memory_space<vmem>>, vector<9x32xf32>
    %c0_2 = arith.constant 0 : index
    %c0_3 = arith.constant 0 : index
    %c0_4 = arith.constant 0 : index
    %4 = vector.load %arg7[%c0_2, %c0_3, %c0_4] : memref<1x4x32xf32, #tpu.memory_space<vmem>>, vector<1x4x32xf32>
    %5 = vector.shape_cast %4 : vector<1x4x32xf32> to vector<4x32xf32>
    %6 = vector.extract_strided_slice %5 {offsets = [0, 0], sizes = [1, 32], strides = [1, 1]} : vector<4x32xf32> to vector<1x32xf32>
    %7 = vector.extract_strided_slice %5 {offsets = [1, 0], sizes = [1, 32], strides = [1, 1]} : vector<4x32xf32> to vector<1x32xf32>
    %cst = arith.constant dense<0.000000e+00> : vector<9xf32>
    %8 = vector.multi_reduction <add>, %3, %cst [1] : vector<9x32xf32> to vector<9xf32>
    %9 = vector.shape_cast %8 : vector<9xf32> to vector<9x1xf32>
    %cst_5 = arith.constant 3.200000e+01 : f32
    %10 = vector.broadcast %cst_5 : f32 to vector<9x1xf32>
    %11 = arith.divf %9, %10 : vector<9x1xf32>
    %12 = vector.broadcast %11 : vector<9x1xf32> to vector<9x32xf32>
    %13 = arith.subf %3, %12 : vector<9x32xf32>
    %14 = arith.mulf %13, %13 : vector<9x32xf32>
    %cst_6 = arith.constant dense<0.000000e+00> : vector<9xf32>
    %15 = vector.multi_reduction <add>, %14, %cst_6 [1] : vector<9x32xf32> to vector<9xf32>
    %16 = vector.shape_cast %15 : vector<9xf32> to vector<9x1xf32>
    %cst_7 = arith.constant 3.200000e+01 : f32
    %17 = vector.broadcast %cst_7 : f32 to vector<9x1xf32>
    %18 = arith.divf %16, %17 : vector<9x1xf32>
    %cst_8 = arith.constant 9.99999974E-6 : f32
    %19 = vector.broadcast %cst_8 : f32 to vector<9x1xf32>
    %20 = arith.addf %18, %19 : vector<9x1xf32>
    %21 = math.rsqrt %20 : vector<9x1xf32>
    %22 = vector.broadcast %21 : vector<9x1xf32> to vector<9x32xf32>
    %23 = arith.mulf %13, %22 : vector<9x32xf32>
    %24 = vector.broadcast %6 : vector<1x32xf32> to vector<9x32xf32>
    %25 = arith.mulf %23, %24 : vector<9x32xf32>
    %26 = vector.broadcast %7 : vector<1x32xf32> to vector<9x32xf32>
    %27 = arith.addf %25, %26 : vector<9x32xf32>
    %c0_9 = arith.constant 0 : index
    %c0_10 = arith.constant 0 : index
    %c0_11 = arith.constant 0 : index
    %28 = vector.load %arg8[%c0_9, %c0_10, %c0_11] : memref<1x32x32xbf16, #tpu.memory_space<vmem>>, vector<1x32x32xbf16>
    %29 = vector.shape_cast %28 : vector<1x32x32xbf16> to vector<32x32xbf16>
    %c0_12 = arith.constant 0 : index
    %c0_13 = arith.constant 0 : index
    %c0_14 = arith.constant 0 : index
    %30 = vector.load %arg9[%c0_12, %c0_13, %c0_14] : memref<1x32x64xbf16, #tpu.memory_space<vmem>>, vector<1x32x64xbf16>
    %31 = vector.shape_cast %30 : vector<1x32x64xbf16> to vector<32x64xbf16>
    %c0_15 = arith.constant 0 : index
    %c0_16 = arith.constant 0 : index
    %c0_17 = arith.constant 0 : index
    %c0_18 = arith.constant 0 : index
    %32 = vector.load %arg10[%c0_15, %c0_16, %c0_17, %c0_18] : memref<1x4x8x32xbf16, #tpu.memory_space<vmem>>, vector<1x4x8x32xbf16>
    %33 = vector.shape_cast %32 : vector<1x4x8x32xbf16> to vector<4x8x32xbf16>
    %c0_19 = arith.constant 0 : index
    %c0_20 = arith.constant 0 : index
    %c0_21 = arith.constant 0 : index
    %34 = vector.load %arg11[%c0_19, %c0_20, %c0_21] : memref<1x1x32xf32, #tpu.memory_space<vmem>>, vector<1x1x32xf32>
    %35 = vector.shape_cast %34 : vector<1x1x32xf32> to vector<1x32xf32>
    %36 = arith.truncf %27 : vector<9x32xf32> to vector<9x32xbf16>
    %cst_22 = arith.constant dense<0.000000e+00> : vector<9x32xf32>
    %37 = tpu.matmul %36, %29, %cst_22 {dimension_numbers = #tpu.dot_dimension_numbers<[1], [0], [0], [1], [0, 0, 1, 1], [], []>} : vector<9x32xbf16>, vector<32x32xbf16>, vector<9x32xf32> -> vector<9x32xf32>
    %38 = arith.truncf %27 : vector<9x32xf32> to vector<9x32xbf16>
    %cst_23 = arith.constant dense<0.000000e+00> : vector<9x64xf32>
    %39 = tpu.matmul %38, %31, %cst_23 {dimension_numbers = #tpu.dot_dimension_numbers<[1], [0], [0], [1], [0, 0, 1, 1], [], []>} : vector<9x32xbf16>, vector<32x64xbf16>, vector<9x64xf32> -> vector<9x64xf32>
    %40 = vector.extract_strided_slice %37 {offsets = [0, 0], sizes = [9, 8], strides = [1, 1]} : vector<9x32xf32> to vector<9x8xf32>
    %41 = vector.extract_strided_slice %39 {offsets = [0, 0], sizes = [9, 8], strides = [1, 1]} : vector<9x64xf32> to vector<9x8xf32>
    %42 = vector.extract_strided_slice %39 {offsets = [0, 32], sizes = [9, 8], strides = [1, 1]} : vector<9x64xf32> to vector<9x8xf32>
    %cst_24 = arith.constant dense<0.000000e+00> : vector<9x9xf32>
    %43 = tpu.matmul %40, %41, %cst_24 {dimension_numbers = #tpu.dot_dimension_numbers<[1], [1], [0], [0], [0, 0, 1, 0], [], []>} : vector<9x8xf32>, vector<9x8xf32>, vector<9x9xf32> -> vector<9x9xf32>
    %cst_25 = arith.constant 0.353553385 : f32
    %44 = vector.broadcast %cst_25 : f32 to vector<9x9xf32>
    %45 = arith.mulf %43, %44 : vector<9x9xf32>
    %cst_26 = arith.constant dense<0xFF800000> : vector<9xf32>
    %46 = vector.multi_reduction <maximumf>, %45, %cst_26 [1] : vector<9x9xf32> to vector<9xf32>
    %47 = vector.shape_cast %46 : vector<9xf32> to vector<9x1xf32>
    %48 = vector.broadcast %47 : vector<9x1xf32> to vector<9x9xf32>
    %49 = arith.subf %45, %48 : vector<9x9xf32>
    %50 = math.exp %49 : vector<9x9xf32>
    %cst_27 = arith.constant dense<0.000000e+00> : vector<9xf32>
    %51 = vector.multi_reduction <add>, %50, %cst_27 [1] : vector<9x9xf32> to vector<9xf32>
    %52 = vector.shape_cast %51 : vector<9xf32> to vector<9x1xf32>
    %53 = tpu.reciprocal %52 {approx = true} : vector<9x1xf32> -> vector<9x1xf32>
    %54 = vector.broadcast %53 : vector<9x1xf32> to vector<9x9xf32>
    %55 = arith.mulf %50, %54 : vector<9x9xf32>
    %cst_28 = arith.constant dense<0.000000e+00> : vector<9x8xf32>
    %56 = tpu.matmul %55, %42, %cst_28 {dimension_numbers = #tpu.dot_dimension_numbers<[1], [0], [0], [1], [0, 0, 1, 1], [], []>} : vector<9x9xf32>, vector<9x8xf32>, vector<9x8xf32> -> vector<9x8xf32>
    %57 = vector.extract_strided_slice %33 {offsets = [0, 0, 0], sizes = [1, 8, 32], strides = [1, 1, 1]} : vector<4x8x32xbf16> to vector<1x8x32xbf16>
    %58 = vector.shape_cast %57 : vector<1x8x32xbf16> to vector<8x32xbf16>
    %59 = arith.truncf %56 : vector<9x8xf32> to vector<9x8xbf16>
    %cst_29 = arith.constant dense<0.000000e+00> : vector<9x32xf32>
    %60 = tpu.matmul %59, %58, %cst_29 {dimension_numbers = #tpu.dot_dimension_numbers<[1], [0], [0], [1], [0, 0, 1, 1], [], []>} : vector<9x8xbf16>, vector<8x32xbf16>, vector<9x32xf32> -> vector<9x32xf32>
    %61 = vector.extract_strided_slice %37 {offsets = [0, 8], sizes = [9, 8], strides = [1, 1]} : vector<9x32xf32> to vector<9x8xf32>
    %62 = vector.extract_strided_slice %39 {offsets = [0, 8], sizes = [9, 8], strides = [1, 1]} : vector<9x64xf32> to vector<9x8xf32>
    %63 = vector.extract_strided_slice %39 {offsets = [0, 40], sizes = [9, 8], strides = [1, 1]} : vector<9x64xf32> to vector<9x8xf32>
    %cst_30 = arith.constant dense<0.000000e+00> : vector<9x9xf32>
    %64 = tpu.matmul %61, %62, %cst_30 {dimension_numbers = #tpu.dot_dimension_numbers<[1], [1], [0], [0], [0, 0, 1, 0], [], []>} : vector<9x8xf32>, vector<9x8xf32>, vector<9x9xf32> -> vector<9x9xf32>
    %cst_31 = arith.constant 0.353553385 : f32
    %65 = vector.broadcast %cst_31 : f32 to vector<9x9xf32>
    %66 = arith.mulf %64, %65 : vector<9x9xf32>
    %cst_32 = arith.constant dense<0xFF800000> : vector<9xf32>
    %67 = vector.multi_reduction <maximumf>, %66, %cst_32 [1] : vector<9x9xf32> to vector<9xf32>
    %68 = vector.shape_cast %67 : vector<9xf32> to vector<9x1xf32>
    %69 = vector.broadcast %68 : vector<9x1xf32> to vector<9x9xf32>
    %70 = arith.subf %66, %69 : vector<9x9xf32>
    %71 = math.exp %70 : vector<9x9xf32>
    %cst_33 = arith.constant dense<0.000000e+00> : vector<9xf32>
    %72 = vector.multi_reduction <add>, %71, %cst_33 [1] : vector<9x9xf32> to vector<9xf32>
    %73 = vector.shape_cast %72 : vector<9xf32> to vector<9x1xf32>
    %74 = tpu.reciprocal %73 {approx = true} : vector<9x1xf32> -> vector<9x1xf32>
    %75 = vector.broadcast %74 : vector<9x1xf32> to vector<9x9xf32>
    %76 = arith.mulf %71, %75 : vector<9x9xf32>
    %cst_34 = arith.constant dense<0.000000e+00> : vector<9x8xf32>
    %77 = tpu.matmul %76, %63, %cst_34 {dimension_numbers = #tpu.dot_dimension_numbers<[1], [0], [0], [1], [0, 0, 1, 1], [], []>} : vector<9x9xf32>, vector<9x8xf32>, vector<9x8xf32> -> vector<9x8xf32>
    %78 = vector.extract_strided_slice %33 {offsets = [1, 0, 0], sizes = [1, 8, 32], strides = [1, 1, 1]} : vector<4x8x32xbf16> to vector<1x8x32xbf16>
    %79 = vector.shape_cast %78 : vector<1x8x32xbf16> to vector<8x32xbf16>
    %80 = arith.truncf %77 : vector<9x8xf32> to vector<9x8xbf16>
    %cst_35 = arith.constant dense<0.000000e+00> : vector<9x32xf32>
    %81 = tpu.matmul %80, %79, %cst_35 {dimension_numbers = #tpu.dot_dimension_numbers<[1], [0], [0], [1], [0, 0, 1, 1], [], []>} : vector<9x8xbf16>, vector<8x32xbf16>, vector<9x32xf32> -> vector<9x32xf32>
    %82 = arith.addf %60, %81 : vector<9x32xf32>
    %83 = vector.extract_strided_slice %37 {offsets = [0, 16], sizes = [9, 8], strides = [1, 1]} : vector<9x32xf32> to vector<9x8xf32>
    %84 = vector.extract_strided_slice %39 {offsets = [0, 16], sizes = [9, 8], strides = [1, 1]} : vector<9x64xf32> to vector<9x8xf32>
    %85 = vector.extract_strided_slice %39 {offsets = [0, 48], sizes = [9, 8], strides = [1, 1]} : vector<9x64xf32> to vector<9x8xf32>
    %cst_36 = arith.constant dense<0.000000e+00> : vector<9x9xf32>
    %86 = tpu.matmul %83, %84, %cst_36 {dimension_numbers = #tpu.dot_dimension_numbers<[1], [1], [0], [0], [0, 0, 1, 0], [], []>} : vector<9x8xf32>, vector<9x8xf32>, vector<9x9xf32> -> vector<9x9xf32>
    %cst_37 = arith.constant 0.353553385 : f32
    %87 = vector.broadcast %cst_37 : f32 to vector<9x9xf32>
    %88 = arith.mulf %86, %87 : vector<9x9xf32>
    %cst_38 = arith.constant dense<0xFF800000> : vector<9xf32>
    %89 = vector.multi_reduction <maximumf>, %88, %cst_38 [1] : vector<9x9xf32> to vector<9xf32>
    %90 = vector.shape_cast %89 : vector<9xf32> to vector<9x1xf32>
    %91 = vector.broadcast %90 : vector<9x1xf32> to vector<9x9xf32>
    %92 = arith.subf %88, %91 : vector<9x9xf32>
    %93 = math.exp %92 : vector<9x9xf32>
    %cst_39 = arith.constant dense<0.000000e+00> : vector<9xf32>
    %94 = vector.multi_reduction <add>, %93, %cst_39 [1] : vector<9x9xf32> to vector<9xf32>
    %95 = vector.shape_cast %94 : vector<9xf32> to vector<9x1xf32>
    %96 = tpu.reciprocal %95 {approx = true} : vector<9x1xf32> -> vector<9x1xf32>
    %97 = vector.broadcast %96 : vector<9x1xf32> to vector<9x9xf32>
    %98 = arith.mulf %93, %97 : vector<9x9xf32>
    %cst_40 = arith.constant dense<0.000000e+00> : vector<9x8xf32>
    %99 = tpu.matmul %98, %85, %cst_40 {dimension_numbers = #tpu.dot_dimension_numbers<[1], [0], [0], [1], [0, 0, 1, 1], [], []>} : vector<9x9xf32>, vector<9x8xf32>, vector<9x8xf32> -> vector<9x8xf32>
    %100 = vector.extract_strided_slice %33 {offsets = [2, 0, 0], sizes = [1, 8, 32], strides = [1, 1, 1]} : vector<4x8x32xbf16> to vector<1x8x32xbf16>
    %101 = vector.shape_cast %100 : vector<1x8x32xbf16> to vector<8x32xbf16>
    %102 = arith.truncf %99 : vector<9x8xf32> to vector<9x8xbf16>
    %cst_41 = arith.constant dense<0.000000e+00> : vector<9x32xf32>
    %103 = tpu.matmul %102, %101, %cst_41 {dimension_numbers = #tpu.dot_dimension_numbers<[1], [0], [0], [1], [0, 0, 1, 1], [], []>} : vector<9x8xbf16>, vector<8x32xbf16>, vector<9x32xf32> -> vector<9x32xf32>
    %104 = arith.addf %82, %103 : vector<9x32xf32>
    %105 = vector.extract_strided_slice %37 {offsets = [0, 24], sizes = [9, 8], strides = [1, 1]} : vector<9x32xf32> to vector<9x8xf32>
    %106 = vector.extract_strided_slice %39 {offsets = [0, 24], sizes = [9, 8], strides = [1, 1]} : vector<9x64xf32> to vector<9x8xf32>
    %107 = vector.extract_strided_slice %39 {offsets = [0, 56], sizes = [9, 8], strides = [1, 1]} : vector<9x64xf32> to vector<9x8xf32>
    %cst_42 = arith.constant dense<0.000000e+00> : vector<9x9xf32>
    %108 = tpu.matmul %105, %106, %cst_42 {dimension_numbers = #tpu.dot_dimension_numbers<[1], [1], [0], [0], [0, 0, 1, 0], [], []>} : vector<9x8xf32>, vector<9x8xf32>, vector<9x9xf32> -> vector<9x9xf32>
    %cst_43 = arith.constant 0.353553385 : f32
    %109 = vector.broadcast %cst_43 : f32 to vector<9x9xf32>
    %110 = arith.mulf %108, %109 : vector<9x9xf32>
    %cst_44 = arith.constant dense<0xFF800000> : vector<9xf32>
    %111 = vector.multi_reduction <maximumf>, %110, %cst_44 [1] : vector<9x9xf32> to vector<9xf32>
    %112 = vector.shape_cast %111 : vector<9xf32> to vector<9x1xf32>
    %113 = vector.broadcast %112 : vector<9x1xf32> to vector<9x9xf32>
    %114 = arith.subf %110, %113 : vector<9x9xf32>
    %115 = math.exp %114 : vector<9x9xf32>
    %cst_45 = arith.constant dense<0.000000e+00> : vector<9xf32>
    %116 = vector.multi_reduction <add>, %115, %cst_45 [1] : vector<9x9xf32> to vector<9xf32>
    %117 = vector.shape_cast %116 : vector<9xf32> to vector<9x1xf32>
    %118 = tpu.reciprocal %117 {approx = true} : vector<9x1xf32> -> vector<9x1xf32>
    %119 = vector.broadcast %118 : vector<9x1xf32> to vector<9x9xf32>
    %120 = arith.mulf %115, %119 : vector<9x9xf32>
    %cst_46 = arith.constant dense<0.000000e+00> : vector<9x8xf32>
    %121 = tpu.matmul %120, %107, %cst_46 {dimension_numbers = #tpu.dot_dimension_numbers<[1], [0], [0], [1], [0, 0, 1, 1], [], []>} : vector<9x9xf32>, vector<9x8xf32>, vector<9x8xf32> -> vector<9x8xf32>
    %122 = vector.extract_strided_slice %33 {offsets = [3, 0, 0], sizes = [1, 8, 32], strides = [1, 1, 1]} : vector<4x8x32xbf16> to vector<1x8x32xbf16>
    %123 = vector.shape_cast %122 : vector<1x8x32xbf16> to vector<8x32xbf16>
    %124 = arith.truncf %121 : vector<9x8xf32> to vector<9x8xbf16>
    %cst_47 = arith.constant dense<0.000000e+00> : vector<9x32xf32>
    %125 = tpu.matmul %124, %123, %cst_47 {dimension_numbers = #tpu.dot_dimension_numbers<[1], [0], [0], [1], [0, 0, 1, 1], [], []>} : vector<9x8xbf16>, vector<8x32xbf16>, vector<9x32xf32> -> vector<9x32xf32>
    %126 = arith.addf %104, %125 : vector<9x32xf32>
    %127 = vector.broadcast %35 : vector<1x32xf32> to vector<9x32xf32>
    %128 = arith.addf %126, %127 : vector<9x32xf32>
    %129 = arith.addf %3, %128 : vector<9x32xf32>
    %130 = vector.extract_strided_slice %5 {offsets = [2, 0], sizes = [1, 32], strides = [1, 1]} : vector<4x32xf32> to vector<1x32xf32>
    %131 = vector.extract_strided_slice %5 {offsets = [3, 0], sizes = [1, 32], strides = [1, 1]} : vector<4x32xf32> to vector<1x32xf32>
    %cst_48 = arith.constant dense<0.000000e+00> : vector<9xf32>
    %132 = vector.multi_reduction <add>, %129, %cst_48 [1] : vector<9x32xf32> to vector<9xf32>
    %133 = vector.shape_cast %132 : vector<9xf32> to vector<9x1xf32>
    %cst_49 = arith.constant 3.200000e+01 : f32
    %134 = vector.broadcast %cst_49 : f32 to vector<9x1xf32>
    %135 = arith.divf %133, %134 : vector<9x1xf32>
    %136 = vector.broadcast %135 : vector<9x1xf32> to vector<9x32xf32>
    %137 = arith.subf %129, %136 : vector<9x32xf32>
    %138 = arith.mulf %137, %137 : vector<9x32xf32>
    %cst_50 = arith.constant dense<0.000000e+00> : vector<9xf32>
    %139 = vector.multi_reduction <add>, %138, %cst_50 [1] : vector<9x32xf32> to vector<9xf32>
    %140 = vector.shape_cast %139 : vector<9xf32> to vector<9x1xf32>
    %cst_51 = arith.constant 3.200000e+01 : f32
    %141 = vector.broadcast %cst_51 : f32 to vector<9x1xf32>
    %142 = arith.divf %140, %141 : vector<9x1xf32>
    %cst_52 = arith.constant 9.99999974E-6 : f32
    %143 = vector.broadcast %cst_52 : f32 to vector<9x1xf32>
    %144 = arith.addf %142, %143 : vector<9x1xf32>
    %145 = math.rsqrt %144 : vector<9x1xf32>
    %146 = vector.broadcast %145 : vector<9x1xf32> to vector<9x32xf32>
    %147 = arith.mulf %137, %146 : vector<9x32xf32>
    %148 = vector.broadcast %130 : vector<1x32xf32> to vector<9x32xf32>
    %149 = arith.mulf %147, %148 : vector<9x32xf32>
    %150 = vector.broadcast %131 : vector<1x32xf32> to vector<9x32xf32>
    %151 = arith.addf %149, %150 : vector<9x32xf32>
    %c0_53 = arith.constant 0 : index
    %c0_54 = arith.constant 0 : index
    %c0_55 = arith.constant 0 : index
    %152 = vector.load %arg12[%c0_53, %c0_54, %c0_55] : memref<1x32x64xbf16, #tpu.memory_space<vmem>>, vector<1x32x64xbf16>
    %153 = vector.shape_cast %152 : vector<1x32x64xbf16> to vector<32x64xbf16>
    %154 = arith.truncf %151 : vector<9x32xf32> to vector<9x32xbf16>
    %cst_56 = arith.constant dense<0.000000e+00> : vector<9x64xf32>
    %155 = tpu.matmul %154, %153, %cst_56 {dimension_numbers = #tpu.dot_dimension_numbers<[1], [0], [0], [1], [0, 0, 1, 1], [], []>} : vector<9x32xbf16>, vector<32x64xbf16>, vector<9x64xf32> -> vector<9x64xf32>
    %c0_57 = arith.constant 0 : index
    %c0_58 = arith.constant 0 : index
    %c0_59 = arith.constant 0 : index
    %156 = vector.load %arg13[%c0_57, %c0_58, %c0_59] : memref<1x1x64xf32, #tpu.memory_space<vmem>>, vector<1x1x64xf32>
    %157 = vector.shape_cast %156 : vector<1x1x64xf32> to vector<1x64xf32>
    %158 = vector.broadcast %157 : vector<1x64xf32> to vector<9x64xf32>
    %159 = arith.addf %155, %158 : vector<9x64xf32>
    %160 = arith.mulf %159, %159 : vector<9x64xf32>
    %161 = arith.mulf %159, %160 : vector<9x64xf32>
    %cst_60 = arith.constant 4.471500e-02 : f32
    %162 = vector.broadcast %cst_60 : f32 to vector<9x64xf32>
    %163 = arith.mulf %162, %161 : vector<9x64xf32>
    %164 = arith.addf %159, %163 : vector<9x64xf32>
    %cst_61 = arith.constant 0.797884583 : f32
    %165 = vector.broadcast %cst_61 : f32 to vector<9x64xf32>
    %166 = arith.mulf %165, %164 : vector<9x64xf32>
    %167 = math.tanh %166 : vector<9x64xf32>
    %cst_62 = arith.constant 1.000000e+00 : f32
    %168 = vector.broadcast %cst_62 : f32 to vector<9x64xf32>
    %169 = arith.addf %168, %167 : vector<9x64xf32>
    %cst_63 = arith.constant 5.000000e-01 : f32
    %170 = vector.broadcast %cst_63 : f32 to vector<9x64xf32>
    %171 = arith.mulf %170, %169 : vector<9x64xf32>
    %172 = arith.mulf %159, %171 : vector<9x64xf32>
    %c0_64 = arith.constant 0 : index
    %c0_65 = arith.constant 0 : index
    %c0_66 = arith.constant 0 : index
    %173 = vector.load %arg14[%c0_64, %c0_65, %c0_66] : memref<1x64x32xbf16, #tpu.memory_space<vmem>>, vector<1x64x32xbf16>
    %174 = vector.shape_cast %173 : vector<1x64x32xbf16> to vector<64x32xbf16>
    %175 = arith.truncf %172 : vector<9x64xf32> to vector<9x64xbf16>
    %cst_67 = arith.constant dense<0.000000e+00> : vector<9x32xf32>
    %176 = tpu.matmul %175, %174, %cst_67 {dimension_numbers = #tpu.dot_dimension_numbers<[1], [0], [0], [1], [0, 0, 1, 1], [], []>} : vector<9x64xbf16>, vector<64x32xbf16>, vector<9x32xf32> -> vector<9x32xf32>
    %c0_68 = arith.constant 0 : index
    %c0_69 = arith.constant 0 : index
    %c0_70 = arith.constant 0 : index
    %177 = vector.load %arg15[%c0_68, %c0_69, %c0_70] : memref<1x1x32xf32, #tpu.memory_space<vmem>>, vector<1x1x32xf32>
    %178 = vector.shape_cast %177 : vector<1x1x32xf32> to vector<1x32xf32>
    %179 = vector.broadcast %178 : vector<1x32xf32> to vector<9x32xf32>
    %180 = arith.addf %176, %179 : vector<9x32xf32>
    %181 = arith.addf %129, %180 : vector<9x32xf32>
    %c0_71 = arith.constant 0 : index
    %c0_72 = arith.constant 0 : index
    %182 = vector.load %arg18[%c0_71, %c0_72] : memref<9x32xf32, #tpu.memory_space<vmem>>, vector<9x32xf32>
    tpu.vector_store %arg18[%c0_71, %c0_72], %181 {strides = array<i32>} : memref<9x32xf32, #tpu.memory_space<vmem>>, vector<9x32xf32>,
    %c1_i32 = arith.constant 1 : i32
    %183 = arith.cmpi eq, %arg1, %c1_i32 : i32
    %184 = arith.extui %183 : i1 to i32
    %c0_i32_73 = arith.constant 0 : i32
    %185 = arith.cmpi ne, %184, %c0_i32_73 : i32
    scf.if %185 {
      %c0_74 = arith.constant 0 : index
      %c0_75 = arith.constant 0 : index
      %186 = vector.load %arg16[%c0_74, %c0_75] : memref<2x32xf32, #tpu.memory_space<vmem>>, vector<1x32xf32>
      %c1 = arith.constant 1 : index
      %c0_76 = arith.constant 0 : index
      %187 = vector.load %arg16[%c1, %c0_76] : memref<2x32xf32, #tpu.memory_space<vmem>>, vector<1x32xf32>
      %cst_77 = arith.constant dense<0.000000e+00> : vector<9xf32>
      %188 = vector.multi_reduction <add>, %181, %cst_77 [1] : vector<9x32xf32> to vector<9xf32>
      %189 = vector.shape_cast %188 : vector<9xf32> to vector<9x1xf32>
      %cst_78 = arith.constant 3.200000e+01 : f32
      %190 = vector.broadcast %cst_78 : f32 to vector<9x1xf32>
      %191 = arith.divf %189, %190 : vector<9x1xf32>
      %192 = vector.broadcast %191 : vector<9x1xf32> to vector<9x32xf32>
      %193 = arith.subf %181, %192 : vector<9x32xf32>
      %194 = arith.mulf %193, %193 : vector<9x32xf32>
      %cst_79 = arith.constant dense<0.000000e+00> : vector<9xf32>
      %195 = vector.multi_reduction <add>, %194, %cst_79 [1] : vector<9x32xf32> to vector<9xf32>
      %196 = vector.shape_cast %195 : vector<9xf32> to vector<9x1xf32>
      %cst_80 = arith.constant 3.200000e+01 : f32
      %197 = vector.broadcast %cst_80 : f32 to vector<9x1xf32>
      %198 = arith.divf %196, %197 : vector<9x1xf32>
      %cst_81 = arith.constant 9.99999974E-6 : f32
      %199 = vector.broadcast %cst_81 : f32 to vector<9x1xf32>
      %200 = arith.addf %198, %199 : vector<9x1xf32>
      %201 = math.rsqrt %200 : vector<9x1xf32>
      %202 = vector.broadcast %201 : vector<9x1xf32> to vector<9x32xf32>
      %203 = arith.mulf %193, %202 : vector<9x32xf32>
      %204 = vector.broadcast %186 : vector<1x32xf32> to vector<9x32xf32>
      %205 = arith.mulf %203, %204 : vector<9x32xf32>
      %206 = vector.broadcast %187 : vector<1x32xf32> to vector<9x32xf32>
      %207 = arith.addf %205, %206 : vector<9x32xf32>
      %c0_82 = arith.constant 0 : index
      %c0_83 = arith.constant 0 : index
      %c0_84 = arith.constant 0 : index
      %208 = vector.load %arg17[%c0_82, %c0_83, %c0_84] : memref<1x9x32xf32, #tpu.memory_space<vmem>>, vector<1x9x32xf32>
      %209 = vector.shape_cast %208 : vector<1x9x32xf32> to vector<9x32xf32>
      %210 = vector.shape_cast %207 : vector<9x32xf32> to vector<1x9x32xf32>
      tpu.vector_store %arg17[%c0_82, %c0_83, %c0_84], %210 {strides = array<i32>} : memref<1x9x32xf32, #tpu.memory_space<vmem>>, vector<1x9x32xf32>,
    } else {
    }
    return
  }
  func.func @transform_0(%arg0: i32, %arg1: i32) -> (i32, i32, i32) {
    %c0_i32 = arith.constant 0 : i32
    %c0_i32_0 = arith.constant 0 : i32
    %c0_i32_1 = arith.constant 0 : i32
    return %arg0, %c0_i32, %c0_i32_0 : i32, i32, i32
  }
  func.func @transform_1(%arg0: i32, %arg1: i32) -> (i32, i32) {
    %c0_i32 = arith.constant 0 : i32
    %c0_i32_0 = arith.constant 0 : i32
    %c0_i32_1 = arith.constant 0 : i32
    return %c0_i32, %c0_i32_0 : i32, i32
  }
  func.func @transform_2(%arg0: i32, %arg1: i32) -> (i32, i32) {
    %c0_i32 = arith.constant 0 : i32
    %c0_i32_0 = arith.constant 0 : i32
    %c0_i32_1 = arith.constant 0 : i32
    return %c0_i32, %c0_i32_0 : i32, i32
  }
  func.func @transform_3(%arg0: i32, %arg1: i32) -> (i32, i32) {
    %c0_i32 = arith.constant 0 : i32
    %c0_i32_0 = arith.constant 0 : i32
    %c0_i32_1 = arith.constant 0 : i32
    return %c0_i32, %c0_i32_0 : i32, i32
  }
  func.func @transform_4(%arg0: i32, %arg1: i32) -> (i32, i32) {
    %c0_i32 = arith.constant 0 : i32
    %c0_i32_0 = arith.constant 0 : i32
    %c0_i32_1 = arith.constant 0 : i32
    return %c0_i32, %c0_i32_0 : i32, i32
  }
  func.func @transform_5(%arg0: i32, %arg1: i32) -> (i32, i32, i32) {
    %c0_i32 = arith.constant 0 : i32
    %c0_i32_0 = arith.constant 0 : i32
    %c0_i32_1 = arith.constant 0 : i32
    return %arg1, %c0_i32, %c0_i32_0 : i32, i32, i32
  }
  func.func @transform_6(%arg0: i32, %arg1: i32) -> (i32, i32, i32) {
    %c0_i32 = arith.constant 0 : i32
    %c0_i32_0 = arith.constant 0 : i32
    %c0_i32_1 = arith.constant 0 : i32
    return %arg1, %c0_i32, %c0_i32_0 : i32, i32, i32
  }
  func.func @transform_7(%arg0: i32, %arg1: i32) -> (i32, i32, i32) {
    %c0_i32 = arith.constant 0 : i32
    %c0_i32_0 = arith.constant 0 : i32
    %c0_i32_1 = arith.constant 0 : i32
    return %arg1, %c0_i32, %c0_i32_0 : i32, i32, i32
  }
  func.func @transform_8(%arg0: i32, %arg1: i32) -> (i32, i32, i32, i32) {
    %c0_i32 = arith.constant 0 : i32
    %c0_i32_0 = arith.constant 0 : i32
    %c0_i32_1 = arith.constant 0 : i32
    %c0_i32_2 = arith.constant 0 : i32
    return %arg1, %c0_i32, %c0_i32_0, %c0_i32_1 : i32, i32, i32, i32
  }
  func.func @transform_9(%arg0: i32, %arg1: i32) -> (i32, i32, i32) {
    %c0_i32 = arith.constant 0 : i32
    %c0_i32_0 = arith.constant 0 : i32
    %c0_i32_1 = arith.constant 0 : i32
    return %arg1, %c0_i32, %c0_i32_0 : i32, i32, i32
  }
  func.func @transform_10(%arg0: i32, %arg1: i32) -> (i32, i32, i32) {
    %c0_i32 = arith.constant 0 : i32
    %c0_i32_0 = arith.constant 0 : i32
    %c0_i32_1 = arith.constant 0 : i32
    return %arg1, %c0_i32, %c0_i32_0 : i32, i32, i32
  }
  func.func @transform_11(%arg0: i32, %arg1: i32) -> (i32, i32, i32) {
    %c0_i32 = arith.constant 0 : i32
    %c0_i32_0 = arith.constant 0 : i32
    %c0_i32_1 = arith.constant 0 : i32
    return %arg1, %c0_i32, %c0_i32_0 : i32, i32, i32
  }
  func.func @transform_12(%arg0: i32, %arg1: i32) -> (i32, i32, i32) {
    %c0_i32 = arith.constant 0 : i32
    %c0_i32_0 = arith.constant 0 : i32
    %c0_i32_1 = arith.constant 0 : i32
    return %arg1, %c0_i32, %c0_i32_0 : i32, i32, i32
  }
  func.func @transform_13(%arg0: i32, %arg1: i32) -> (i32, i32, i32) {
    %c0_i32 = arith.constant 0 : i32
    %c0_i32_0 = arith.constant 0 : i32
    %c0_i32_1 = arith.constant 0 : i32
    return %arg1, %c0_i32, %c0_i32_0 : i32, i32, i32
  }
  func.func @transform_14(%arg0: i32, %arg1: i32) -> (i32, i32) {
    %c0_i32 = arith.constant 0 : i32
    %c0_i32_0 = arith.constant 0 : i32
    %c0_i32_1 = arith.constant 0 : i32
    return %c0_i32, %c0_i32_0 : i32, i32
  }
  func.func @transform_15(%arg0: i32, %arg1: i32) -> (i32, i32, i32) {
    %c0_i32 = arith.constant 0 : i32
    %c0_i32_0 = arith.constant 0 : i32
    %c0_i32_1 = arith.constant 0 : i32
    return %arg0, %c0_i32, %c0_i32_0 : i32, i32, i32
  }
}

module attributes {stable_mosaic.version = 11 : i64} {
  func.func @_decoder_stack_kernel(%arg0: i32, %arg1: i32, %arg2: memref<1x9x32xf32, #tpu.memory_space<vmem>>, %arg3: memref<1x4x32xf32, #tpu.memory_space<vmem>>, %arg4: memref<1x6x32xf32, #tpu.memory_space<vmem>>, %arg5: memref<1x32x32xbf16, #tpu.memory_space<vmem>>, %arg6: memref<1x1x32xf32, #tpu.memory_space<vmem>>, %arg7: memref<1x32x64xbf16, #tpu.memory_space<vmem>>, %arg8: memref<1x1x64xf32, #tpu.memory_space<vmem>>, %arg9: memref<1x4x8x32xbf16, #tpu.memory_space<vmem>>, %arg10: memref<1x1x32xf32, #tpu.memory_space<vmem>>, %arg11: memref<1x32x32xbf16, #tpu.memory_space<vmem>>, %arg12: memref<1x1x32xf32, #tpu.memory_space<vmem>>, %arg13: memref<1x32x64xbf16, #tpu.memory_space<vmem>>, %arg14: memref<1x1x64xf32, #tpu.memory_space<vmem>>, %arg15: memref<1x4x8x32xbf16, #tpu.memory_space<vmem>>, %arg16: memref<1x1x32xf32, #tpu.memory_space<vmem>>, %arg17: memref<1x32x64xbf16, #tpu.memory_space<vmem>>, %arg18: memref<1x1x64xf32, #tpu.memory_space<vmem>>, %arg19: memref<1x64x32xbf16, #tpu.memory_space<vmem>>, %arg20: memref<1x1x32xf32, #tpu.memory_space<vmem>>, %arg21: memref<2x32xf32, #tpu.memory_space<vmem>>, %arg22: memref<32x10xbf16, #tpu.memory_space<vmem>>, %arg23: memref<1x10xf32, #tpu.memory_space<vmem>>, %arg24: memref<32x10xbf16, #tpu.memory_space<vmem>>, %arg25: memref<32x10xbf16, #tpu.memory_space<vmem>>, %arg26: memref<1x10xf32, #tpu.memory_space<vmem>>, %arg27: memref<1x1x10xf32, #tpu.memory_space<vmem>>, %arg28: memref<1x4x10xf32, #tpu.memory_space<vmem>>, %arg29: memref<4x32xf32, #tpu.memory_space<vmem>>) attributes {dimension_semantics = [#tpu.dimension_semantics<parallel>, #tpu.dimension_semantics<arbitrary>], iteration_bounds = array<i64: 2, 2>, scalar_prefetch = 0 : i64, scratch_operands = 1 : i64, tpu.core_type = #tpu.core_type<tc>, window_params = [{transform_indices = @transform_0, window_bounds = array<i64: 1, 9, 32>}, {pipeline_mode = #tpu.pipeline_mode<synchronous>, transform_indices = @transform_1, window_bounds = array<i64: 1, 4, 32>}, {transform_indices = @transform_2, window_bounds = array<i64: 1, 6, 32>}, {transform_indices = @transform_3, window_bounds = array<i64: 1, 32, 32>}, {transform_indices = @transform_4, window_bounds = array<i64: 1, 1, 32>}, {transform_indices = @transform_5, window_bounds = array<i64: 1, 32, 64>}, {transform_indices = @transform_6, window_bounds = array<i64: 1, 1, 64>}, {transform_indices = @transform_7, window_bounds = array<i64: 1, 4, 8, 32>}, {transform_indices = @transform_8, window_bounds = array<i64: 1, 1, 32>}, {transform_indices = @transform_9, window_bounds = array<i64: 1, 32, 32>}, {transform_indices = @transform_10, window_bounds = array<i64: 1, 1, 32>}, {transform_indices = @transform_11, window_bounds = array<i64: 1, 32, 64>}, {transform_indices = @transform_12, window_bounds = array<i64: 1, 1, 64>}, {transform_indices = @transform_13, window_bounds = array<i64: 1, 4, 8, 32>}, {transform_indices = @transform_14, window_bounds = array<i64: 1, 1, 32>}, {transform_indices = @transform_15, window_bounds = array<i64: 1, 32, 64>}, {transform_indices = @transform_16, window_bounds = array<i64: 1, 1, 64>}, {transform_indices = @transform_17, window_bounds = array<i64: 1, 64, 32>}, {transform_indices = @transform_18, window_bounds = array<i64: 1, 1, 32>}, {pipeline_mode = #tpu.pipeline_mode<synchronous>, transform_indices = @transform_19, window_bounds = array<i64: 2, 32>}, {pipeline_mode = #tpu.pipeline_mode<synchronous>, transform_indices = @transform_20, window_bounds = array<i64: 32, 10>}, {pipeline_mode = #tpu.pipeline_mode<synchronous>, transform_indices = @transform_21, window_bounds = array<i64: 1, 10>}, {pipeline_mode = #tpu.pipeline_mode<synchronous>, transform_indices = @transform_22, window_bounds = array<i64: 32, 10>}, {pipeline_mode = #tpu.pipeline_mode<synchronous>, transform_indices = @transform_23, window_bounds = array<i64: 32, 10>}, {pipeline_mode = #tpu.pipeline_mode<synchronous>, transform_indices = @transform_24, window_bounds = array<i64: 1, 10>}, {transform_indices = @transform_25, window_bounds = array<i64: 1, 1, 10>}, {transform_indices = @transform_26, window_bounds = array<i64: 1, 4, 10>}]} {
    %c0_i32 = arith.constant 0 : i32
    %0 = arith.cmpi eq, %arg1, %c0_i32 : i32
    %1 = arith.extui %0 : i1 to i32
    %c0_i32_0 = arith.constant 0 : i32
    %2 = arith.cmpi ne, %1, %c0_i32_0 : i32
    scf.if %2 {
      %c0_135 = arith.constant 0 : index
      %c0_136 = arith.constant 0 : index
      %c0_137 = arith.constant 0 : index
      %338 = vector.load %arg3[%c0_135, %c0_136, %c0_137] : memref<1x4x32xf32, #tpu.memory_space<vmem>>, vector<1x4x32xf32>
      %339 = vector.shape_cast %338 : vector<1x4x32xf32> to vector<4x32xf32>
      %c0_138 = arith.constant 0 : index
      %c0_139 = arith.constant 0 : index
      %340 = vector.load %arg29[%c0_138, %c0_139] : memref<4x32xf32, #tpu.memory_space<vmem>>, vector<4x32xf32>
      tpu.vector_store %arg29[%c0_138, %c0_139], %339 {strides = array<i32>} : memref<4x32xf32, #tpu.memory_space<vmem>>, vector<4x32xf32>,
    } else {
    }
    %3 = tpu.iota {dimensions = array<i32: 0>} : vector<4x4xi32>
    %4 = tpu.iota {dimensions = array<i32: 1>} : vector<4x4xi32>
    %5 = arith.cmpi sgt, %4, %3 : vector<4x4xi32>
    %cst = arith.constant -1.000000e+30 : f32
    %cst_1 = arith.constant 0.000000e+00 : f32
    %6 = vector.broadcast %cst : f32 to vector<4x4xf32>
    %7 = vector.broadcast %cst_1 : f32 to vector<4x4xf32>
    %8 = arith.select %5, %6, %7 : vector<4x4xi1>, vector<4x4xf32>
    %c0 = arith.constant 0 : index
    %c0_2 = arith.constant 0 : index
    %9 = vector.load %arg29[%c0, %c0_2] : memref<4x32xf32, #tpu.memory_space<vmem>>, vector<4x32xf32>
    %c0_3 = arith.constant 0 : index
    %c0_4 = arith.constant 0 : index
    %c0_5 = arith.constant 0 : index
    %10 = vector.load %arg2[%c0_3, %c0_4, %c0_5] : memref<1x9x32xf32, #tpu.memory_space<vmem>>, vector<1x9x32xf32>
    %11 = vector.shape_cast %10 : vector<1x9x32xf32> to vector<9x32xf32>
    %c0_6 = arith.constant 0 : index
    %c0_7 = arith.constant 0 : index
    %c0_8 = arith.constant 0 : index
    %12 = vector.load %arg4[%c0_6, %c0_7, %c0_8] : memref<1x6x32xf32, #tpu.memory_space<vmem>>, vector<1x6x32xf32>
    %13 = vector.shape_cast %12 : vector<1x6x32xf32> to vector<6x32xf32>
    %c0_9 = arith.constant 0 : index
    %c0_10 = arith.constant 0 : index
    %c0_11 = arith.constant 0 : index
    %14 = vector.load %arg5[%c0_9, %c0_10, %c0_11] : memref<1x32x32xbf16, #tpu.memory_space<vmem>>, vector<1x32x32xbf16>
    %15 = vector.shape_cast %14 : vector<1x32x32xbf16> to vector<32x32xbf16>
    %c0_12 = arith.constant 0 : index
    %c0_13 = arith.constant 0 : index
    %c0_14 = arith.constant 0 : index
    %16 = vector.load %arg7[%c0_12, %c0_13, %c0_14] : memref<1x32x64xbf16, #tpu.memory_space<vmem>>, vector<1x32x64xbf16>
    %17 = vector.shape_cast %16 : vector<1x32x64xbf16> to vector<32x64xbf16>
    %c0_15 = arith.constant 0 : index
    %c0_16 = arith.constant 0 : index
    %c0_17 = arith.constant 0 : index
    %c0_18 = arith.constant 0 : index
    %18 = vector.load %arg9[%c0_15, %c0_16, %c0_17, %c0_18] : memref<1x4x8x32xbf16, #tpu.memory_space<vmem>>, vector<1x4x8x32xbf16>
    %19 = vector.shape_cast %18 : vector<1x4x8x32xbf16> to vector<4x8x32xbf16>
    %c0_19 = arith.constant 0 : index
    %c0_20 = arith.constant 0 : index
    %c0_21 = arith.constant 0 : index
    %20 = vector.load %arg6[%c0_19, %c0_20, %c0_21] : memref<1x1x32xf32, #tpu.memory_space<vmem>>, vector<1x1x32xf32>
    %21 = vector.shape_cast %20 : vector<1x1x32xf32> to vector<1x32xf32>
    %c0_22 = arith.constant 0 : index
    %c0_23 = arith.constant 0 : index
    %c0_24 = arith.constant 0 : index
    %22 = vector.load %arg8[%c0_22, %c0_23, %c0_24] : memref<1x1x64xf32, #tpu.memory_space<vmem>>, vector<1x1x64xf32>
    %23 = vector.shape_cast %22 : vector<1x1x64xf32> to vector<1x64xf32>
    %c0_25 = arith.constant 0 : index
    %c0_26 = arith.constant 0 : index
    %c0_27 = arith.constant 0 : index
    %24 = vector.load %arg10[%c0_25, %c0_26, %c0_27] : memref<1x1x32xf32, #tpu.memory_space<vmem>>, vector<1x1x32xf32>
    %25 = vector.shape_cast %24 : vector<1x1x32xf32> to vector<1x32xf32>
    %26 = arith.truncf %9 : vector<4x32xf32> to vector<4x32xbf16>
    %cst_28 = arith.constant dense<0.000000e+00> : vector<4x32xf32>
    %27 = tpu.matmul %26, %15, %cst_28 {dimension_numbers = #tpu.dot_dimension_numbers<[1], [0], [0], [1], [0, 0, 1, 1], [], []>} : vector<4x32xbf16>, vector<32x32xbf16>, vector<4x32xf32> -> vector<4x32xf32>
    %28 = vector.broadcast %21 : vector<1x32xf32> to vector<4x32xf32>
    %29 = arith.addf %27, %28 : vector<4x32xf32>
    %30 = arith.truncf %9 : vector<4x32xf32> to vector<4x32xbf16>
    %cst_29 = arith.constant dense<0.000000e+00> : vector<4x64xf32>
    %31 = tpu.matmul %30, %17, %cst_29 {dimension_numbers = #tpu.dot_dimension_numbers<[1], [0], [0], [1], [0, 0, 1, 1], [], []>} : vector<4x32xbf16>, vector<32x64xbf16>, vector<4x64xf32> -> vector<4x64xf32>
    %32 = vector.broadcast %23 : vector<1x64xf32> to vector<4x64xf32>
    %33 = arith.addf %31, %32 : vector<4x64xf32>
    %34 = vector.extract_strided_slice %29 {offsets = [0, 0], sizes = [4, 8], strides = [1, 1]} : vector<4x32xf32> to vector<4x8xf32>
    %35 = vector.extract_strided_slice %33 {offsets = [0, 0], sizes = [4, 8], strides = [1, 1]} : vector<4x64xf32> to vector<4x8xf32>
    %36 = vector.extract_strided_slice %33 {offsets = [0, 32], sizes = [4, 8], strides = [1, 1]} : vector<4x64xf32> to vector<4x8xf32>
    %cst_30 = arith.constant dense<0.000000e+00> : vector<4x4xf32>
    %37 = tpu.matmul %34, %35, %cst_30 {dimension_numbers = #tpu.dot_dimension_numbers<[1], [1], [0], [0], [0, 0, 1, 0], [], []>} : vector<4x8xf32>, vector<4x8xf32>, vector<4x4xf32> -> vector<4x4xf32>
    %cst_31 = arith.constant 0.353553385 : f32
    %38 = vector.broadcast %cst_31 : f32 to vector<4x4xf32>
    %39 = arith.mulf %37, %38 : vector<4x4xf32>
    %40 = arith.addf %39, %8 : vector<4x4xf32>
    %cst_32 = arith.constant dense<0xFF800000> : vector<4xf32>
    %41 = vector.multi_reduction <maximumf>, %40, %cst_32 [1] : vector<4x4xf32> to vector<4xf32>
    %42 = vector.shape_cast %41 : vector<4xf32> to vector<4x1xf32>
    %43 = vector.broadcast %42 : vector<4x1xf32> to vector<4x4xf32>
    %44 = arith.subf %40, %43 : vector<4x4xf32>
    %45 = math.exp %44 : vector<4x4xf32>
    %cst_33 = arith.constant dense<0.000000e+00> : vector<4xf32>
    %46 = vector.multi_reduction <add>, %45, %cst_33 [1] : vector<4x4xf32> to vector<4xf32>
    %47 = vector.shape_cast %46 : vector<4xf32> to vector<4x1xf32>
    %48 = tpu.reciprocal %47 {approx = true} : vector<4x1xf32> -> vector<4x1xf32>
    %49 = vector.broadcast %48 : vector<4x1xf32> to vector<4x4xf32>
    %50 = arith.mulf %45, %49 : vector<4x4xf32>
    %cst_34 = arith.constant dense<0.000000e+00> : vector<4x8xf32>
    %51 = tpu.matmul %50, %36, %cst_34 {dimension_numbers = #tpu.dot_dimension_numbers<[1], [0], [0], [1], [0, 0, 1, 1], [], []>} : vector<4x4xf32>, vector<4x8xf32>, vector<4x8xf32> -> vector<4x8xf32>
    %52 = vector.extract_strided_slice %19 {offsets = [0, 0, 0], sizes = [1, 8, 32], strides = [1, 1, 1]} : vector<4x8x32xbf16> to vector<1x8x32xbf16>
    %53 = vector.shape_cast %52 : vector<1x8x32xbf16> to vector<8x32xbf16>
    %54 = arith.truncf %51 : vector<4x8xf32> to vector<4x8xbf16>
    %cst_35 = arith.constant dense<0.000000e+00> : vector<4x32xf32>
    %55 = tpu.matmul %54, %53, %cst_35 {dimension_numbers = #tpu.dot_dimension_numbers<[1], [0], [0], [1], [0, 0, 1, 1], [], []>} : vector<4x8xbf16>, vector<8x32xbf16>, vector<4x32xf32> -> vector<4x32xf32>
    %56 = vector.extract_strided_slice %29 {offsets = [0, 8], sizes = [4, 8], strides = [1, 1]} : vector<4x32xf32> to vector<4x8xf32>
    %57 = vector.extract_strided_slice %33 {offsets = [0, 8], sizes = [4, 8], strides = [1, 1]} : vector<4x64xf32> to vector<4x8xf32>
    %58 = vector.extract_strided_slice %33 {offsets = [0, 40], sizes = [4, 8], strides = [1, 1]} : vector<4x64xf32> to vector<4x8xf32>
    %cst_36 = arith.constant dense<0.000000e+00> : vector<4x4xf32>
    %59 = tpu.matmul %56, %57, %cst_36 {dimension_numbers = #tpu.dot_dimension_numbers<[1], [1], [0], [0], [0, 0, 1, 0], [], []>} : vector<4x8xf32>, vector<4x8xf32>, vector<4x4xf32> -> vector<4x4xf32>
    %cst_37 = arith.constant 0.353553385 : f32
    %60 = vector.broadcast %cst_37 : f32 to vector<4x4xf32>
    %61 = arith.mulf %59, %60 : vector<4x4xf32>
    %62 = arith.addf %61, %8 : vector<4x4xf32>
    %cst_38 = arith.constant dense<0xFF800000> : vector<4xf32>
    %63 = vector.multi_reduction <maximumf>, %62, %cst_38 [1] : vector<4x4xf32> to vector<4xf32>
    %64 = vector.shape_cast %63 : vector<4xf32> to vector<4x1xf32>
    %65 = vector.broadcast %64 : vector<4x1xf32> to vector<4x4xf32>
    %66 = arith.subf %62, %65 : vector<4x4xf32>
    %67 = math.exp %66 : vector<4x4xf32>
    %cst_39 = arith.constant dense<0.000000e+00> : vector<4xf32>
    %68 = vector.multi_reduction <add>, %67, %cst_39 [1] : vector<4x4xf32> to vector<4xf32>
    %69 = vector.shape_cast %68 : vector<4xf32> to vector<4x1xf32>
    %70 = tpu.reciprocal %69 {approx = true} : vector<4x1xf32> -> vector<4x1xf32>
    %71 = vector.broadcast %70 : vector<4x1xf32> to vector<4x4xf32>
    %72 = arith.mulf %67, %71 : vector<4x4xf32>
    %cst_40 = arith.constant dense<0.000000e+00> : vector<4x8xf32>
    %73 = tpu.matmul %72, %58, %cst_40 {dimension_numbers = #tpu.dot_dimension_numbers<[1], [0], [0], [1], [0, 0, 1, 1], [], []>} : vector<4x4xf32>, vector<4x8xf32>, vector<4x8xf32> -> vector<4x8xf32>
    %74 = vector.extract_strided_slice %19 {offsets = [1, 0, 0], sizes = [1, 8, 32], strides = [1, 1, 1]} : vector<4x8x32xbf16> to vector<1x8x32xbf16>
    %75 = vector.shape_cast %74 : vector<1x8x32xbf16> to vector<8x32xbf16>
    %76 = arith.truncf %73 : vector<4x8xf32> to vector<4x8xbf16>
    %cst_41 = arith.constant dense<0.000000e+00> : vector<4x32xf32>
    %77 = tpu.matmul %76, %75, %cst_41 {dimension_numbers = #tpu.dot_dimension_numbers<[1], [0], [0], [1], [0, 0, 1, 1], [], []>} : vector<4x8xbf16>, vector<8x32xbf16>, vector<4x32xf32> -> vector<4x32xf32>
    %78 = arith.addf %55, %77 : vector<4x32xf32>
    %79 = vector.extract_strided_slice %29 {offsets = [0, 16], sizes = [4, 8], strides = [1, 1]} : vector<4x32xf32> to vector<4x8xf32>
    %80 = vector.extract_strided_slice %33 {offsets = [0, 16], sizes = [4, 8], strides = [1, 1]} : vector<4x64xf32> to vector<4x8xf32>
    %81 = vector.extract_strided_slice %33 {offsets = [0, 48], sizes = [4, 8], strides = [1, 1]} : vector<4x64xf32> to vector<4x8xf32>
    %cst_42 = arith.constant dense<0.000000e+00> : vector<4x4xf32>
    %82 = tpu.matmul %79, %80, %cst_42 {dimension_numbers = #tpu.dot_dimension_numbers<[1], [1], [0], [0], [0, 0, 1, 0], [], []>} : vector<4x8xf32>, vector<4x8xf32>, vector<4x4xf32> -> vector<4x4xf32>
    %cst_43 = arith.constant 0.353553385 : f32
    %83 = vector.broadcast %cst_43 : f32 to vector<4x4xf32>
    %84 = arith.mulf %82, %83 : vector<4x4xf32>
    %85 = arith.addf %84, %8 : vector<4x4xf32>
    %cst_44 = arith.constant dense<0xFF800000> : vector<4xf32>
    %86 = vector.multi_reduction <maximumf>, %85, %cst_44 [1] : vector<4x4xf32> to vector<4xf32>
    %87 = vector.shape_cast %86 : vector<4xf32> to vector<4x1xf32>
    %88 = vector.broadcast %87 : vector<4x1xf32> to vector<4x4xf32>
    %89 = arith.subf %85, %88 : vector<4x4xf32>
    %90 = math.exp %89 : vector<4x4xf32>
    %cst_45 = arith.constant dense<0.000000e+00> : vector<4xf32>
    %91 = vector.multi_reduction <add>, %90, %cst_45 [1] : vector<4x4xf32> to vector<4xf32>
    %92 = vector.shape_cast %91 : vector<4xf32> to vector<4x1xf32>
    %93 = tpu.reciprocal %92 {approx = true} : vector<4x1xf32> -> vector<4x1xf32>
    %94 = vector.broadcast %93 : vector<4x1xf32> to vector<4x4xf32>
    %95 = arith.mulf %90, %94 : vector<4x4xf32>
    %cst_46 = arith.constant dense<0.000000e+00> : vector<4x8xf32>
    %96 = tpu.matmul %95, %81, %cst_46 {dimension_numbers = #tpu.dot_dimension_numbers<[1], [0], [0], [1], [0, 0, 1, 1], [], []>} : vector<4x4xf32>, vector<4x8xf32>, vector<4x8xf32> -> vector<4x8xf32>
    %97 = vector.extract_strided_slice %19 {offsets = [2, 0, 0], sizes = [1, 8, 32], strides = [1, 1, 1]} : vector<4x8x32xbf16> to vector<1x8x32xbf16>
    %98 = vector.shape_cast %97 : vector<1x8x32xbf16> to vector<8x32xbf16>
    %99 = arith.truncf %96 : vector<4x8xf32> to vector<4x8xbf16>
    %cst_47 = arith.constant dense<0.000000e+00> : vector<4x32xf32>
    %100 = tpu.matmul %99, %98, %cst_47 {dimension_numbers = #tpu.dot_dimension_numbers<[1], [0], [0], [1], [0, 0, 1, 1], [], []>} : vector<4x8xbf16>, vector<8x32xbf16>, vector<4x32xf32> -> vector<4x32xf32>
    %101 = arith.addf %78, %100 : vector<4x32xf32>
    %102 = vector.extract_strided_slice %29 {offsets = [0, 24], sizes = [4, 8], strides = [1, 1]} : vector<4x32xf32> to vector<4x8xf32>
    %103 = vector.extract_strided_slice %33 {offsets = [0, 24], sizes = [4, 8], strides = [1, 1]} : vector<4x64xf32> to vector<4x8xf32>
    %104 = vector.extract_strided_slice %33 {offsets = [0, 56], sizes = [4, 8], strides = [1, 1]} : vector<4x64xf32> to vector<4x8xf32>
    %cst_48 = arith.constant dense<0.000000e+00> : vector<4x4xf32>
    %105 = tpu.matmul %102, %103, %cst_48 {dimension_numbers = #tpu.dot_dimension_numbers<[1], [1], [0], [0], [0, 0, 1, 0], [], []>} : vector<4x8xf32>, vector<4x8xf32>, vector<4x4xf32> -> vector<4x4xf32>
    %cst_49 = arith.constant 0.353553385 : f32
    %106 = vector.broadcast %cst_49 : f32 to vector<4x4xf32>
    %107 = arith.mulf %105, %106 : vector<4x4xf32>
    %108 = arith.addf %107, %8 : vector<4x4xf32>
    %cst_50 = arith.constant dense<0xFF800000> : vector<4xf32>
    %109 = vector.multi_reduction <maximumf>, %108, %cst_50 [1] : vector<4x4xf32> to vector<4xf32>
    %110 = vector.shape_cast %109 : vector<4xf32> to vector<4x1xf32>
    %111 = vector.broadcast %110 : vector<4x1xf32> to vector<4x4xf32>
    %112 = arith.subf %108, %111 : vector<4x4xf32>
    %113 = math.exp %112 : vector<4x4xf32>
    %cst_51 = arith.constant dense<0.000000e+00> : vector<4xf32>
    %114 = vector.multi_reduction <add>, %113, %cst_51 [1] : vector<4x4xf32> to vector<4xf32>
    %115 = vector.shape_cast %114 : vector<4xf32> to vector<4x1xf32>
    %116 = tpu.reciprocal %115 {approx = true} : vector<4x1xf32> -> vector<4x1xf32>
    %117 = vector.broadcast %116 : vector<4x1xf32> to vector<4x4xf32>
    %118 = arith.mulf %113, %117 : vector<4x4xf32>
    %cst_52 = arith.constant dense<0.000000e+00> : vector<4x8xf32>
    %119 = tpu.matmul %118, %104, %cst_52 {dimension_numbers = #tpu.dot_dimension_numbers<[1], [0], [0], [1], [0, 0, 1, 1], [], []>} : vector<4x4xf32>, vector<4x8xf32>, vector<4x8xf32> -> vector<4x8xf32>
    %120 = vector.extract_strided_slice %19 {offsets = [3, 0, 0], sizes = [1, 8, 32], strides = [1, 1, 1]} : vector<4x8x32xbf16> to vector<1x8x32xbf16>
    %121 = vector.shape_cast %120 : vector<1x8x32xbf16> to vector<8x32xbf16>
    %122 = arith.truncf %119 : vector<4x8xf32> to vector<4x8xbf16>
    %cst_53 = arith.constant dense<0.000000e+00> : vector<4x32xf32>
    %123 = tpu.matmul %122, %121, %cst_53 {dimension_numbers = #tpu.dot_dimension_numbers<[1], [0], [0], [1], [0, 0, 1, 1], [], []>} : vector<4x8xbf16>, vector<8x32xbf16>, vector<4x32xf32> -> vector<4x32xf32>
    %124 = arith.addf %101, %123 : vector<4x32xf32>
    %125 = vector.broadcast %25 : vector<1x32xf32> to vector<4x32xf32>
    %126 = arith.addf %124, %125 : vector<4x32xf32>
    %127 = arith.addf %9, %126 : vector<4x32xf32>
    %128 = vector.extract_strided_slice %13 {offsets = [0, 0], sizes = [1, 32], strides = [1, 1]} : vector<6x32xf32> to vector<1x32xf32>
    %129 = vector.extract_strided_slice %13 {offsets = [1, 0], sizes = [1, 32], strides = [1, 1]} : vector<6x32xf32> to vector<1x32xf32>
    %cst_54 = arith.constant dense<0.000000e+00> : vector<4xf32>
    %130 = vector.multi_reduction <add>, %127, %cst_54 [1] : vector<4x32xf32> to vector<4xf32>
    %131 = vector.shape_cast %130 : vector<4xf32> to vector<4x1xf32>
    %cst_55 = arith.constant 3.200000e+01 : f32
    %132 = vector.broadcast %cst_55 : f32 to vector<4x1xf32>
    %133 = arith.divf %131, %132 : vector<4x1xf32>
    %134 = vector.broadcast %133 : vector<4x1xf32> to vector<4x32xf32>
    %135 = arith.subf %127, %134 : vector<4x32xf32>
    %136 = arith.mulf %135, %135 : vector<4x32xf32>
    %cst_56 = arith.constant dense<0.000000e+00> : vector<4xf32>
    %137 = vector.multi_reduction <add>, %136, %cst_56 [1] : vector<4x32xf32> to vector<4xf32>
    %138 = vector.shape_cast %137 : vector<4xf32> to vector<4x1xf32>
    %cst_57 = arith.constant 3.200000e+01 : f32
    %139 = vector.broadcast %cst_57 : f32 to vector<4x1xf32>
    %140 = arith.divf %138, %139 : vector<4x1xf32>
    %cst_58 = arith.constant 9.99999974E-6 : f32
    %141 = vector.broadcast %cst_58 : f32 to vector<4x1xf32>
    %142 = arith.addf %140, %141 : vector<4x1xf32>
    %143 = math.rsqrt %142 : vector<4x1xf32>
    %144 = vector.broadcast %143 : vector<4x1xf32> to vector<4x32xf32>
    %145 = arith.mulf %135, %144 : vector<4x32xf32>
    %146 = vector.broadcast %128 : vector<1x32xf32> to vector<4x32xf32>
    %147 = arith.mulf %145, %146 : vector<4x32xf32>
    %148 = vector.broadcast %129 : vector<1x32xf32> to vector<4x32xf32>
    %149 = arith.addf %147, %148 : vector<4x32xf32>
    %c0_59 = arith.constant 0 : index
    %c0_60 = arith.constant 0 : index
    %c0_61 = arith.constant 0 : index
    %150 = vector.load %arg11[%c0_59, %c0_60, %c0_61] : memref<1x32x32xbf16, #tpu.memory_space<vmem>>, vector<1x32x32xbf16>
    %151 = vector.shape_cast %150 : vector<1x32x32xbf16> to vector<32x32xbf16>
    %c0_62 = arith.constant 0 : index
    %c0_63 = arith.constant 0 : index
    %c0_64 = arith.constant 0 : index
    %152 = vector.load %arg13[%c0_62, %c0_63, %c0_64] : memref<1x32x64xbf16, #tpu.memory_space<vmem>>, vector<1x32x64xbf16>
    %153 = vector.shape_cast %152 : vector<1x32x64xbf16> to vector<32x64xbf16>
    %c0_65 = arith.constant 0 : index
    %c0_66 = arith.constant 0 : index
    %c0_67 = arith.constant 0 : index
    %c0_68 = arith.constant 0 : index
    %154 = vector.load %arg15[%c0_65, %c0_66, %c0_67, %c0_68] : memref<1x4x8x32xbf16, #tpu.memory_space<vmem>>, vector<1x4x8x32xbf16>
    %155 = vector.shape_cast %154 : vector<1x4x8x32xbf16> to vector<4x8x32xbf16>
    %c0_69 = arith.constant 0 : index
    %c0_70 = arith.constant 0 : index
    %c0_71 = arith.constant 0 : index
    %156 = vector.load %arg12[%c0_69, %c0_70, %c0_71] : memref<1x1x32xf32, #tpu.memory_space<vmem>>, vector<1x1x32xf32>
    %157 = vector.shape_cast %156 : vector<1x1x32xf32> to vector<1x32xf32>
    %c0_72 = arith.constant 0 : index
    %c0_73 = arith.constant 0 : index
    %c0_74 = arith.constant 0 : index
    %158 = vector.load %arg14[%c0_72, %c0_73, %c0_74] : memref<1x1x64xf32, #tpu.memory_space<vmem>>, vector<1x1x64xf32>
    %159 = vector.shape_cast %158 : vector<1x1x64xf32> to vector<1x64xf32>
    %c0_75 = arith.constant 0 : index
    %c0_76 = arith.constant 0 : index
    %c0_77 = arith.constant 0 : index
    %160 = vector.load %arg16[%c0_75, %c0_76, %c0_77] : memref<1x1x32xf32, #tpu.memory_space<vmem>>, vector<1x1x32xf32>
    %161 = vector.shape_cast %160 : vector<1x1x32xf32> to vector<1x32xf32>
    %162 = arith.truncf %149 : vector<4x32xf32> to vector<4x32xbf16>
    %cst_78 = arith.constant dense<0.000000e+00> : vector<4x32xf32>
    %163 = tpu.matmul %162, %151, %cst_78 {dimension_numbers = #tpu.dot_dimension_numbers<[1], [0], [0], [1], [0, 0, 1, 1], [], []>} : vector<4x32xbf16>, vector<32x32xbf16>, vector<4x32xf32> -> vector<4x32xf32>
    %164 = vector.broadcast %157 : vector<1x32xf32> to vector<4x32xf32>
    %165 = arith.addf %163, %164 : vector<4x32xf32>
    %166 = arith.truncf %11 : vector<9x32xf32> to vector<9x32xbf16>
    %cst_79 = arith.constant dense<0.000000e+00> : vector<9x64xf32>
    %167 = tpu.matmul %166, %153, %cst_79 {dimension_numbers = #tpu.dot_dimension_numbers<[1], [0], [0], [1], [0, 0, 1, 1], [], []>} : vector<9x32xbf16>, vector<32x64xbf16>, vector<9x64xf32> -> vector<9x64xf32>
    %168 = vector.broadcast %159 : vector<1x64xf32> to vector<9x64xf32>
    %169 = arith.addf %167, %168 : vector<9x64xf32>
    %170 = vector.extract_strided_slice %165 {offsets = [0, 0], sizes = [4, 8], strides = [1, 1]} : vector<4x32xf32> to vector<4x8xf32>
    %171 = vector.extract_strided_slice %169 {offsets = [0, 0], sizes = [9, 8], strides = [1, 1]} : vector<9x64xf32> to vector<9x8xf32>
    %172 = vector.extract_strided_slice %169 {offsets = [0, 32], sizes = [9, 8], strides = [1, 1]} : vector<9x64xf32> to vector<9x8xf32>
    %cst_80 = arith.constant dense<0.000000e+00> : vector<4x9xf32>
    %173 = tpu.matmul %170, %171, %cst_80 {dimension_numbers = #tpu.dot_dimension_numbers<[1], [1], [0], [0], [0, 0, 1, 0], [], []>} : vector<4x8xf32>, vector<9x8xf32>, vector<4x9xf32> -> vector<4x9xf32>
    %cst_81 = arith.constant 0.353553385 : f32
    %174 = vector.broadcast %cst_81 : f32 to vector<4x9xf32>
    %175 = arith.mulf %173, %174 : vector<4x9xf32>
    %cst_82 = arith.constant dense<0xFF800000> : vector<4xf32>
    %176 = vector.multi_reduction <maximumf>, %175, %cst_82 [1] : vector<4x9xf32> to vector<4xf32>
    %177 = vector.shape_cast %176 : vector<4xf32> to vector<4x1xf32>
    %178 = vector.broadcast %177 : vector<4x1xf32> to vector<4x9xf32>
    %179 = arith.subf %175, %178 : vector<4x9xf32>
    %180 = math.exp %179 : vector<4x9xf32>
    %cst_83 = arith.constant dense<0.000000e+00> : vector<4xf32>
    %181 = vector.multi_reduction <add>, %180, %cst_83 [1] : vector<4x9xf32> to vector<4xf32>
    %182 = vector.shape_cast %181 : vector<4xf32> to vector<4x1xf32>
    %183 = tpu.reciprocal %182 {approx = true} : vector<4x1xf32> -> vector<4x1xf32>
    %184 = vector.broadcast %183 : vector<4x1xf32> to vector<4x9xf32>
    %185 = arith.mulf %180, %184 : vector<4x9xf32>
    %cst_84 = arith.constant dense<0.000000e+00> : vector<4x8xf32>
    %186 = tpu.matmul %185, %172, %cst_84 {dimension_numbers = #tpu.dot_dimension_numbers<[1], [0], [0], [1], [0, 0, 1, 1], [], []>} : vector<4x9xf32>, vector<9x8xf32>, vector<4x8xf32> -> vector<4x8xf32>
    %187 = vector.extract_strided_slice %155 {offsets = [0, 0, 0], sizes = [1, 8, 32], strides = [1, 1, 1]} : vector<4x8x32xbf16> to vector<1x8x32xbf16>
    %188 = vector.shape_cast %187 : vector<1x8x32xbf16> to vector<8x32xbf16>
    %189 = arith.truncf %186 : vector<4x8xf32> to vector<4x8xbf16>
    %cst_85 = arith.constant dense<0.000000e+00> : vector<4x32xf32>
    %190 = tpu.matmul %189, %188, %cst_85 {dimension_numbers = #tpu.dot_dimension_numbers<[1], [0], [0], [1], [0, 0, 1, 1], [], []>} : vector<4x8xbf16>, vector<8x32xbf16>, vector<4x32xf32> -> vector<4x32xf32>
    %191 = vector.extract_strided_slice %165 {offsets = [0, 8], sizes = [4, 8], strides = [1, 1]} : vector<4x32xf32> to vector<4x8xf32>
    %192 = vector.extract_strided_slice %169 {offsets = [0, 8], sizes = [9, 8], strides = [1, 1]} : vector<9x64xf32> to vector<9x8xf32>
    %193 = vector.extract_strided_slice %169 {offsets = [0, 40], sizes = [9, 8], strides = [1, 1]} : vector<9x64xf32> to vector<9x8xf32>
    %cst_86 = arith.constant dense<0.000000e+00> : vector<4x9xf32>
    %194 = tpu.matmul %191, %192, %cst_86 {dimension_numbers = #tpu.dot_dimension_numbers<[1], [1], [0], [0], [0, 0, 1, 0], [], []>} : vector<4x8xf32>, vector<9x8xf32>, vector<4x9xf32> -> vector<4x9xf32>
    %cst_87 = arith.constant 0.353553385 : f32
    %195 = vector.broadcast %cst_87 : f32 to vector<4x9xf32>
    %196 = arith.mulf %194, %195 : vector<4x9xf32>
    %cst_88 = arith.constant dense<0xFF800000> : vector<4xf32>
    %197 = vector.multi_reduction <maximumf>, %196, %cst_88 [1] : vector<4x9xf32> to vector<4xf32>
    %198 = vector.shape_cast %197 : vector<4xf32> to vector<4x1xf32>
    %199 = vector.broadcast %198 : vector<4x1xf32> to vector<4x9xf32>
    %200 = arith.subf %196, %199 : vector<4x9xf32>
    %201 = math.exp %200 : vector<4x9xf32>
    %cst_89 = arith.constant dense<0.000000e+00> : vector<4xf32>
    %202 = vector.multi_reduction <add>, %201, %cst_89 [1] : vector<4x9xf32> to vector<4xf32>
    %203 = vector.shape_cast %202 : vector<4xf32> to vector<4x1xf32>
    %204 = tpu.reciprocal %203 {approx = true} : vector<4x1xf32> -> vector<4x1xf32>
    %205 = vector.broadcast %204 : vector<4x1xf32> to vector<4x9xf32>
    %206 = arith.mulf %201, %205 : vector<4x9xf32>
    %cst_90 = arith.constant dense<0.000000e+00> : vector<4x8xf32>
    %207 = tpu.matmul %206, %193, %cst_90 {dimension_numbers = #tpu.dot_dimension_numbers<[1], [0], [0], [1], [0, 0, 1, 1], [], []>} : vector<4x9xf32>, vector<9x8xf32>, vector<4x8xf32> -> vector<4x8xf32>
    %208 = vector.extract_strided_slice %155 {offsets = [1, 0, 0], sizes = [1, 8, 32], strides = [1, 1, 1]} : vector<4x8x32xbf16> to vector<1x8x32xbf16>
    %209 = vector.shape_cast %208 : vector<1x8x32xbf16> to vector<8x32xbf16>
    %210 = arith.truncf %207 : vector<4x8xf32> to vector<4x8xbf16>
    %cst_91 = arith.constant dense<0.000000e+00> : vector<4x32xf32>
    %211 = tpu.matmul %210, %209, %cst_91 {dimension_numbers = #tpu.dot_dimension_numbers<[1], [0], [0], [1], [0, 0, 1, 1], [], []>} : vector<4x8xbf16>, vector<8x32xbf16>, vector<4x32xf32> -> vector<4x32xf32>
    %212 = arith.addf %190, %211 : vector<4x32xf32>
    %213 = vector.extract_strided_slice %165 {offsets = [0, 16], sizes = [4, 8], strides = [1, 1]} : vector<4x32xf32> to vector<4x8xf32>
    %214 = vector.extract_strided_slice %169 {offsets = [0, 16], sizes = [9, 8], strides = [1, 1]} : vector<9x64xf32> to vector<9x8xf32>
    %215 = vector.extract_strided_slice %169 {offsets = [0, 48], sizes = [9, 8], strides = [1, 1]} : vector<9x64xf32> to vector<9x8xf32>
    %cst_92 = arith.constant dense<0.000000e+00> : vector<4x9xf32>
    %216 = tpu.matmul %213, %214, %cst_92 {dimension_numbers = #tpu.dot_dimension_numbers<[1], [1], [0], [0], [0, 0, 1, 0], [], []>} : vector<4x8xf32>, vector<9x8xf32>, vector<4x9xf32> -> vector<4x9xf32>
    %cst_93 = arith.constant 0.353553385 : f32
    %217 = vector.broadcast %cst_93 : f32 to vector<4x9xf32>
    %218 = arith.mulf %216, %217 : vector<4x9xf32>
    %cst_94 = arith.constant dense<0xFF800000> : vector<4xf32>
    %219 = vector.multi_reduction <maximumf>, %218, %cst_94 [1] : vector<4x9xf32> to vector<4xf32>
    %220 = vector.shape_cast %219 : vector<4xf32> to vector<4x1xf32>
    %221 = vector.broadcast %220 : vector<4x1xf32> to vector<4x9xf32>
    %222 = arith.subf %218, %221 : vector<4x9xf32>
    %223 = math.exp %222 : vector<4x9xf32>
    %cst_95 = arith.constant dense<0.000000e+00> : vector<4xf32>
    %224 = vector.multi_reduction <add>, %223, %cst_95 [1] : vector<4x9xf32> to vector<4xf32>
    %225 = vector.shape_cast %224 : vector<4xf32> to vector<4x1xf32>
    %226 = tpu.reciprocal %225 {approx = true} : vector<4x1xf32> -> vector<4x1xf32>
    %227 = vector.broadcast %226 : vector<4x1xf32> to vector<4x9xf32>
    %228 = arith.mulf %223, %227 : vector<4x9xf32>
    %cst_96 = arith.constant dense<0.000000e+00> : vector<4x8xf32>
    %229 = tpu.matmul %228, %215, %cst_96 {dimension_numbers = #tpu.dot_dimension_numbers<[1], [0], [0], [1], [0, 0, 1, 1], [], []>} : vector<4x9xf32>, vector<9x8xf32>, vector<4x8xf32> -> vector<4x8xf32>
    %230 = vector.extract_strided_slice %155 {offsets = [2, 0, 0], sizes = [1, 8, 32], strides = [1, 1, 1]} : vector<4x8x32xbf16> to vector<1x8x32xbf16>
    %231 = vector.shape_cast %230 : vector<1x8x32xbf16> to vector<8x32xbf16>
    %232 = arith.truncf %229 : vector<4x8xf32> to vector<4x8xbf16>
    %cst_97 = arith.constant dense<0.000000e+00> : vector<4x32xf32>
    %233 = tpu.matmul %232, %231, %cst_97 {dimension_numbers = #tpu.dot_dimension_numbers<[1], [0], [0], [1], [0, 0, 1, 1], [], []>} : vector<4x8xbf16>, vector<8x32xbf16>, vector<4x32xf32> -> vector<4x32xf32>
    %234 = arith.addf %212, %233 : vector<4x32xf32>
    %235 = vector.extract_strided_slice %165 {offsets = [0, 24], sizes = [4, 8], strides = [1, 1]} : vector<4x32xf32> to vector<4x8xf32>
    %236 = vector.extract_strided_slice %169 {offsets = [0, 24], sizes = [9, 8], strides = [1, 1]} : vector<9x64xf32> to vector<9x8xf32>
    %237 = vector.extract_strided_slice %169 {offsets = [0, 56], sizes = [9, 8], strides = [1, 1]} : vector<9x64xf32> to vector<9x8xf32>
    %cst_98 = arith.constant dense<0.000000e+00> : vector<4x9xf32>
    %238 = tpu.matmul %235, %236, %cst_98 {dimension_numbers = #tpu.dot_dimension_numbers<[1], [1], [0], [0], [0, 0, 1, 0], [], []>} : vector<4x8xf32>, vector<9x8xf32>, vector<4x9xf32> -> vector<4x9xf32>
    %cst_99 = arith.constant 0.353553385 : f32
    %239 = vector.broadcast %cst_99 : f32 to vector<4x9xf32>
    %240 = arith.mulf %238, %239 : vector<4x9xf32>
    %cst_100 = arith.constant dense<0xFF800000> : vector<4xf32>
    %241 = vector.multi_reduction <maximumf>, %240, %cst_100 [1] : vector<4x9xf32> to vector<4xf32>
    %242 = vector.shape_cast %241 : vector<4xf32> to vector<4x1xf32>
    %243 = vector.broadcast %242 : vector<4x1xf32> to vector<4x9xf32>
    %244 = arith.subf %240, %243 : vector<4x9xf32>
    %245 = math.exp %244 : vector<4x9xf32>
    %cst_101 = arith.constant dense<0.000000e+00> : vector<4xf32>
    %246 = vector.multi_reduction <add>, %245, %cst_101 [1] : vector<4x9xf32> to vector<4xf32>
    %247 = vector.shape_cast %246 : vector<4xf32> to vector<4x1xf32>
    %248 = tpu.reciprocal %247 {approx = true} : vector<4x1xf32> -> vector<4x1xf32>
    %249 = vector.broadcast %248 : vector<4x1xf32> to vector<4x9xf32>
    %250 = arith.mulf %245, %249 : vector<4x9xf32>
    %cst_102 = arith.constant dense<0.000000e+00> : vector<4x8xf32>
    %251 = tpu.matmul %250, %237, %cst_102 {dimension_numbers = #tpu.dot_dimension_numbers<[1], [0], [0], [1], [0, 0, 1, 1], [], []>} : vector<4x9xf32>, vector<9x8xf32>, vector<4x8xf32> -> vector<4x8xf32>
    %252 = vector.extract_strided_slice %155 {offsets = [3, 0, 0], sizes = [1, 8, 32], strides = [1, 1, 1]} : vector<4x8x32xbf16> to vector<1x8x32xbf16>
    %253 = vector.shape_cast %252 : vector<1x8x32xbf16> to vector<8x32xbf16>
    %254 = arith.truncf %251 : vector<4x8xf32> to vector<4x8xbf16>
    %cst_103 = arith.constant dense<0.000000e+00> : vector<4x32xf32>
    %255 = tpu.matmul %254, %253, %cst_103 {dimension_numbers = #tpu.dot_dimension_numbers<[1], [0], [0], [1], [0, 0, 1, 1], [], []>} : vector<4x8xbf16>, vector<8x32xbf16>, vector<4x32xf32> -> vector<4x32xf32>
    %256 = arith.addf %234, %255 : vector<4x32xf32>
    %257 = vector.broadcast %161 : vector<1x32xf32> to vector<4x32xf32>
    %258 = arith.addf %256, %257 : vector<4x32xf32>
    %259 = arith.addf %149, %258 : vector<4x32xf32>
    %260 = vector.extract_strided_slice %13 {offsets = [2, 0], sizes = [1, 32], strides = [1, 1]} : vector<6x32xf32> to vector<1x32xf32>
    %261 = vector.extract_strided_slice %13 {offsets = [3, 0], sizes = [1, 32], strides = [1, 1]} : vector<6x32xf32> to vector<1x32xf32>
    %cst_104 = arith.constant dense<0.000000e+00> : vector<4xf32>
    %262 = vector.multi_reduction <add>, %259, %cst_104 [1] : vector<4x32xf32> to vector<4xf32>
    %263 = vector.shape_cast %262 : vector<4xf32> to vector<4x1xf32>
    %cst_105 = arith.constant 3.200000e+01 : f32
    %264 = vector.broadcast %cst_105 : f32 to vector<4x1xf32>
    %265 = arith.divf %263, %264 : vector<4x1xf32>
    %266 = vector.broadcast %265 : vector<4x1xf32> to vector<4x32xf32>
    %267 = arith.subf %259, %266 : vector<4x32xf32>
    %268 = arith.mulf %267, %267 : vector<4x32xf32>
    %cst_106 = arith.constant dense<0.000000e+00> : vector<4xf32>
    %269 = vector.multi_reduction <add>, %268, %cst_106 [1] : vector<4x32xf32> to vector<4xf32>
    %270 = vector.shape_cast %269 : vector<4xf32> to vector<4x1xf32>
    %cst_107 = arith.constant 3.200000e+01 : f32
    %271 = vector.broadcast %cst_107 : f32 to vector<4x1xf32>
    %272 = arith.divf %270, %271 : vector<4x1xf32>
    %cst_108 = arith.constant 9.99999974E-6 : f32
    %273 = vector.broadcast %cst_108 : f32 to vector<4x1xf32>
    %274 = arith.addf %272, %273 : vector<4x1xf32>
    %275 = math.rsqrt %274 : vector<4x1xf32>
    %276 = vector.broadcast %275 : vector<4x1xf32> to vector<4x32xf32>
    %277 = arith.mulf %267, %276 : vector<4x32xf32>
    %278 = vector.broadcast %260 : vector<1x32xf32> to vector<4x32xf32>
    %279 = arith.mulf %277, %278 : vector<4x32xf32>
    %280 = vector.broadcast %261 : vector<1x32xf32> to vector<4x32xf32>
    %281 = arith.addf %279, %280 : vector<4x32xf32>
    %c0_109 = arith.constant 0 : index
    %c0_110 = arith.constant 0 : index
    %c0_111 = arith.constant 0 : index
    %282 = vector.load %arg17[%c0_109, %c0_110, %c0_111] : memref<1x32x64xbf16, #tpu.memory_space<vmem>>, vector<1x32x64xbf16>
    %283 = vector.shape_cast %282 : vector<1x32x64xbf16> to vector<32x64xbf16>
    %284 = arith.truncf %281 : vector<4x32xf32> to vector<4x32xbf16>
    %cst_112 = arith.constant dense<0.000000e+00> : vector<4x64xf32>
    %285 = tpu.matmul %284, %283, %cst_112 {dimension_numbers = #tpu.dot_dimension_numbers<[1], [0], [0], [1], [0, 0, 1, 1], [], []>} : vector<4x32xbf16>, vector<32x64xbf16>, vector<4x64xf32> -> vector<4x64xf32>
    %c0_113 = arith.constant 0 : index
    %c0_114 = arith.constant 0 : index
    %c0_115 = arith.constant 0 : index
    %286 = vector.load %arg18[%c0_113, %c0_114, %c0_115] : memref<1x1x64xf32, #tpu.memory_space<vmem>>, vector<1x1x64xf32>
    %287 = vector.shape_cast %286 : vector<1x1x64xf32> to vector<1x64xf32>
    %288 = vector.broadcast %287 : vector<1x64xf32> to vector<4x64xf32>
    %289 = arith.addf %285, %288 : vector<4x64xf32>
    %290 = arith.mulf %289, %289 : vector<4x64xf32>
    %291 = arith.mulf %289, %290 : vector<4x64xf32>
    %cst_116 = arith.constant 4.471500e-02 : f32
    %292 = vector.broadcast %cst_116 : f32 to vector<4x64xf32>
    %293 = arith.mulf %292, %291 : vector<4x64xf32>
    %294 = arith.addf %289, %293 : vector<4x64xf32>
    %cst_117 = arith.constant 0.797884583 : f32
    %295 = vector.broadcast %cst_117 : f32 to vector<4x64xf32>
    %296 = arith.mulf %295, %294 : vector<4x64xf32>
    %297 = math.tanh %296 : vector<4x64xf32>
    %cst_118 = arith.constant 1.000000e+00 : f32
    %298 = vector.broadcast %cst_118 : f32 to vector<4x64xf32>
    %299 = arith.addf %298, %297 : vector<4x64xf32>
    %cst_119 = arith.constant 5.000000e-01 : f32
    %300 = vector.broadcast %cst_119 : f32 to vector<4x64xf32>
    %301 = arith.mulf %300, %299 : vector<4x64xf32>
    %302 = arith.mulf %289, %301 : vector<4x64xf32>
    %c0_120 = arith.constant 0 : index
    %c0_121 = arith.constant 0 : index
    %c0_122 = arith.constant 0 : index
    %303 = vector.load %arg19[%c0_120, %c0_121, %c0_122] : memref<1x64x32xbf16, #tpu.memory_space<vmem>>, vector<1x64x32xbf16>
    %304 = vector.shape_cast %303 : vector<1x64x32xbf16> to vector<64x32xbf16>
    %305 = arith.truncf %302 : vector<4x64xf32> to vector<4x64xbf16>
    %cst_123 = arith.constant dense<0.000000e+00> : vector<4x32xf32>
    %306 = tpu.matmul %305, %304, %cst_123 {dimension_numbers = #tpu.dot_dimension_numbers<[1], [0], [0], [1], [0, 0, 1, 1], [], []>} : vector<4x64xbf16>, vector<64x32xbf16>, vector<4x32xf32> -> vector<4x32xf32>
    %c0_124 = arith.constant 0 : index
    %c0_125 = arith.constant 0 : index
    %c0_126 = arith.constant 0 : index
    %307 = vector.load %arg20[%c0_124, %c0_125, %c0_126] : memref<1x1x32xf32, #tpu.memory_space<vmem>>, vector<1x1x32xf32>
    %308 = vector.shape_cast %307 : vector<1x1x32xf32> to vector<1x32xf32>
    %309 = vector.broadcast %308 : vector<1x32xf32> to vector<4x32xf32>
    %310 = arith.addf %306, %309 : vector<4x32xf32>
    %311 = arith.addf %281, %310 : vector<4x32xf32>
    %312 = vector.extract_strided_slice %13 {offsets = [4, 0], sizes = [1, 32], strides = [1, 1]} : vector<6x32xf32> to vector<1x32xf32>
    %313 = vector.extract_strided_slice %13 {offsets = [5, 0], sizes = [1, 32], strides = [1, 1]} : vector<6x32xf32> to vector<1x32xf32>
    %cst_127 = arith.constant dense<0.000000e+00> : vector<4xf32>
    %314 = vector.multi_reduction <add>, %311, %cst_127 [1] : vector<4x32xf32> to vector<4xf32>
    %315 = vector.shape_cast %314 : vector<4xf32> to vector<4x1xf32>
    %cst_128 = arith.constant 3.200000e+01 : f32
    %316 = vector.broadcast %cst_128 : f32 to vector<4x1xf32>
    %317 = arith.divf %315, %316 : vector<4x1xf32>
    %318 = vector.broadcast %317 : vector<4x1xf32> to vector<4x32xf32>
    %319 = arith.subf %311, %318 : vector<4x32xf32>
    %320 = arith.mulf %319, %319 : vector<4x32xf32>
    %cst_129 = arith.constant dense<0.000000e+00> : vector<4xf32>
    %321 = vector.multi_reduction <add>, %320, %cst_129 [1] : vector<4x32xf32> to vector<4xf32>
    %322 = vector.shape_cast %321 : vector<4xf32> to vector<4x1xf32>
    %cst_130 = arith.constant 3.200000e+01 : f32
    %323 = vector.broadcast %cst_130 : f32 to vector<4x1xf32>
    %324 = arith.divf %322, %323 : vector<4x1xf32>
    %cst_131 = arith.constant 9.99999974E-6 : f32
    %325 = vector.broadcast %cst_131 : f32 to vector<4x1xf32>
    %326 = arith.addf %324, %325 : vector<4x1xf32>
    %327 = math.rsqrt %326 : vector<4x1xf32>
    %328 = vector.broadcast %327 : vector<4x1xf32> to vector<4x32xf32>
    %329 = arith.mulf %319, %328 : vector<4x32xf32>
    %330 = vector.broadcast %312 : vector<1x32xf32> to vector<4x32xf32>
    %331 = arith.mulf %329, %330 : vector<4x32xf32>
    %332 = vector.broadcast %313 : vector<1x32xf32> to vector<4x32xf32>
    %333 = arith.addf %331, %332 : vector<4x32xf32>
    %c0_132 = arith.constant 0 : index
    %c0_133 = arith.constant 0 : index
    %334 = vector.load %arg29[%c0_132, %c0_133] : memref<4x32xf32, #tpu.memory_space<vmem>>, vector<4x32xf32>
    tpu.vector_store %arg29[%c0_132, %c0_133], %333 {strides = array<i32>} : memref<4x32xf32, #tpu.memory_space<vmem>>, vector<4x32xf32>,
    %c1_i32 = arith.constant 1 : i32
    %335 = arith.cmpi eq, %arg1, %c1_i32 : i32
    %336 = arith.extui %335 : i1 to i32
    %c0_i32_134 = arith.constant 0 : i32
    %337 = arith.cmpi ne, %336, %c0_i32_134 : i32
    scf.if %337 {
      %c0_135 = arith.constant 0 : index
      %c0_136 = arith.constant 0 : index
      %338 = vector.load %arg21[%c0_135, %c0_136] : memref<2x32xf32, #tpu.memory_space<vmem>>, vector<1x32xf32>
      %c1 = arith.constant 1 : index
      %c0_137 = arith.constant 0 : index
      %339 = vector.load %arg21[%c1, %c0_137] : memref<2x32xf32, #tpu.memory_space<vmem>>, vector<1x32xf32>
      %cst_138 = arith.constant dense<0.000000e+00> : vector<4xf32>
      %340 = vector.multi_reduction <add>, %333, %cst_138 [1] : vector<4x32xf32> to vector<4xf32>
      %341 = vector.shape_cast %340 : vector<4xf32> to vector<4x1xf32>
      %cst_139 = arith.constant 3.200000e+01 : f32
      %342 = vector.broadcast %cst_139 : f32 to vector<4x1xf32>
      %343 = arith.divf %341, %342 : vector<4x1xf32>
      %344 = vector.broadcast %343 : vector<4x1xf32> to vector<4x32xf32>
      %345 = arith.subf %333, %344 : vector<4x32xf32>
      %346 = arith.mulf %345, %345 : vector<4x32xf32>
      %cst_140 = arith.constant dense<0.000000e+00> : vector<4xf32>
      %347 = vector.multi_reduction <add>, %346, %cst_140 [1] : vector<4x32xf32> to vector<4xf32>
      %348 = vector.shape_cast %347 : vector<4xf32> to vector<4x1xf32>
      %cst_141 = arith.constant 3.200000e+01 : f32
      %349 = vector.broadcast %cst_141 : f32 to vector<4x1xf32>
      %350 = arith.divf %348, %349 : vector<4x1xf32>
      %cst_142 = arith.constant 9.99999974E-6 : f32
      %351 = vector.broadcast %cst_142 : f32 to vector<4x1xf32>
      %352 = arith.addf %350, %351 : vector<4x1xf32>
      %353 = math.rsqrt %352 : vector<4x1xf32>
      %354 = vector.broadcast %353 : vector<4x1xf32> to vector<4x32xf32>
      %355 = arith.mulf %345, %354 : vector<4x32xf32>
      %356 = vector.broadcast %338 : vector<1x32xf32> to vector<4x32xf32>
      %357 = arith.mulf %355, %356 : vector<4x32xf32>
      %358 = vector.broadcast %339 : vector<1x32xf32> to vector<4x32xf32>
      %359 = arith.addf %357, %358 : vector<4x32xf32>
      %c0_143 = arith.constant 0 : index
      %c0_144 = arith.constant 0 : index
      %360 = vector.load %arg22[%c0_143, %c0_144] : memref<32x10xbf16, #tpu.memory_space<vmem>>, vector<32x10xbf16>
      %361 = arith.truncf %359 : vector<4x32xf32> to vector<4x32xbf16>
      %cst_145 = arith.constant dense<0.000000e+00> : vector<4x10xf32>
      %362 = tpu.matmul %361, %360, %cst_145 {dimension_numbers = #tpu.dot_dimension_numbers<[1], [0], [0], [1], [0, 0, 1, 1], [], []>} : vector<4x32xbf16>, vector<32x10xbf16>, vector<4x10xf32> -> vector<4x10xf32>
      %c0_146 = arith.constant 0 : index
      %c0_147 = arith.constant 0 : index
      %363 = vector.load %arg23[%c0_146, %c0_147] : memref<1x10xf32, #tpu.memory_space<vmem>>, vector<1x10xf32>
      %364 = vector.broadcast %363 : vector<1x10xf32> to vector<4x10xf32>
      %365 = arith.addf %362, %364 : vector<4x10xf32>
      %c0_148 = arith.constant 0 : index
      %c0_149 = arith.constant 0 : index
      %c0_150 = arith.constant 0 : index
      %366 = vector.load %arg28[%c0_148, %c0_149, %c0_150] : memref<1x4x10xf32, #tpu.memory_space<vmem>>, vector<1x4x10xf32>
      %367 = vector.shape_cast %366 : vector<1x4x10xf32> to vector<4x10xf32>
      %368 = vector.shape_cast %365 : vector<4x10xf32> to vector<1x4x10xf32>
      tpu.vector_store %arg28[%c0_148, %c0_149, %c0_150], %368 {strides = array<i32>} : memref<1x4x10xf32, #tpu.memory_space<vmem>>, vector<1x4x10xf32>,
      %cst_151 = arith.constant dense<0.000000e+00> : vector<32xf32>
      %369 = vector.multi_reduction <add>, %359, %cst_151 [0] : vector<4x32xf32> to vector<32xf32>
      %370 = vector.shape_cast %369 : vector<32xf32> to vector<1x32xf32>
      %cst_152 = arith.constant 4.000000e+00 : f32
      %371 = vector.broadcast %cst_152 : f32 to vector<1x32xf32>
      %372 = arith.divf %370, %371 : vector<1x32xf32>
      %373 = vector.extract_strided_slice %11 {offsets = [8, 0], sizes = [1, 32], strides = [1, 1]} : vector<9x32xf32> to vector<1x32xf32>
      %c0_153 = arith.constant 0 : index
      %c0_154 = arith.constant 0 : index
      %374 = vector.load %arg24[%c0_153, %c0_154] : memref<32x10xbf16, #tpu.memory_space<vmem>>, vector<32x10xbf16>
      %375 = arith.truncf %373 : vector<1x32xf32> to vector<1x32xbf16>
      %cst_155 = arith.constant dense<0.000000e+00> : vector<1x10xf32>
      %376 = tpu.matmul %375, %374, %cst_155 {dimension_numbers = #tpu.dot_dimension_numbers<[1], [0], [0], [1], [0, 0, 1, 1], [], []>} : vector<1x32xbf16>, vector<32x10xbf16>, vector<1x10xf32> -> vector<1x10xf32>
      %c0_156 = arith.constant 0 : index
      %c0_157 = arith.constant 0 : index
      %377 = vector.load %arg25[%c0_156, %c0_157] : memref<32x10xbf16, #tpu.memory_space<vmem>>, vector<32x10xbf16>
      %378 = arith.truncf %372 : vector<1x32xf32> to vector<1x32xbf16>
      %cst_158 = arith.constant dense<0.000000e+00> : vector<1x10xf32>
      %379 = tpu.matmul %378, %377, %cst_158 {dimension_numbers = #tpu.dot_dimension_numbers<[1], [0], [0], [1], [0, 0, 1, 1], [], []>} : vector<1x32xbf16>, vector<32x10xbf16>, vector<1x10xf32> -> vector<1x10xf32>
      %380 = arith.addf %376, %379 : vector<1x10xf32>
      %c0_159 = arith.constant 0 : index
      %c0_160 = arith.constant 0 : index
      %381 = vector.load %arg26[%c0_159, %c0_160] : memref<1x10xf32, #tpu.memory_space<vmem>>, vector<1x10xf32>
      %382 = arith.addf %380, %381 : vector<1x10xf32>
      %c0_161 = arith.constant 0 : index
      %c0_162 = arith.constant 0 : index
      %c0_163 = arith.constant 0 : index
      %383 = vector.load %arg27[%c0_161, %c0_162, %c0_163] : memref<1x1x10xf32, #tpu.memory_space<vmem>>, vector<1x1x10xf32>
      %384 = vector.shape_cast %383 : vector<1x1x10xf32> to vector<1x10xf32>
      %385 = vector.shape_cast %382 : vector<1x10xf32> to vector<1x1x10xf32>
      tpu.vector_store %arg27[%c0_161, %c0_162, %c0_163], %385 {strides = array<i32>} : memref<1x1x10xf32, #tpu.memory_space<vmem>>, vector<1x1x10xf32>,
    } else {
    }
    return
  }
  func.func @transform_0(%arg0: i32, %arg1: i32) -> (i32, i32, i32) {
    %c0_i32 = arith.constant 0 : i32
    %c0_i32_0 = arith.constant 0 : i32
    %c0_i32_1 = arith.constant 0 : i32
    return %arg0, %c0_i32, %c0_i32_0 : i32, i32, i32
  }
  func.func @transform_1(%arg0: i32, %arg1: i32) -> (i32, i32, i32) {
    %c0_i32 = arith.constant 0 : i32
    %c0_i32_0 = arith.constant 0 : i32
    %c0_i32_1 = arith.constant 0 : i32
    %c0_i32_2 = arith.constant 0 : i32
    return %c0_i32, %c0_i32_0, %c0_i32_1 : i32, i32, i32
  }
  func.func @transform_2(%arg0: i32, %arg1: i32) -> (i32, i32, i32) {
    %c0_i32 = arith.constant 0 : i32
    %c0_i32_0 = arith.constant 0 : i32
    %c0_i32_1 = arith.constant 0 : i32
    return %arg1, %c0_i32, %c0_i32_0 : i32, i32, i32
  }
  func.func @transform_3(%arg0: i32, %arg1: i32) -> (i32, i32, i32) {
    %c0_i32 = arith.constant 0 : i32
    %c0_i32_0 = arith.constant 0 : i32
    %c0_i32_1 = arith.constant 0 : i32
    return %arg1, %c0_i32, %c0_i32_0 : i32, i32, i32
  }
  func.func @transform_4(%arg0: i32, %arg1: i32) -> (i32, i32, i32) {
    %c0_i32 = arith.constant 0 : i32
    %c0_i32_0 = arith.constant 0 : i32
    %c0_i32_1 = arith.constant 0 : i32
    return %arg1, %c0_i32, %c0_i32_0 : i32, i32, i32
  }
  func.func @transform_5(%arg0: i32, %arg1: i32) -> (i32, i32, i32) {
    %c0_i32 = arith.constant 0 : i32
    %c0_i32_0 = arith.constant 0 : i32
    %c0_i32_1 = arith.constant 0 : i32
    return %arg1, %c0_i32, %c0_i32_0 : i32, i32, i32
  }
  func.func @transform_6(%arg0: i32, %arg1: i32) -> (i32, i32, i32) {
    %c0_i32 = arith.constant 0 : i32
    %c0_i32_0 = arith.constant 0 : i32
    %c0_i32_1 = arith.constant 0 : i32
    return %arg1, %c0_i32, %c0_i32_0 : i32, i32, i32
  }
  func.func @transform_7(%arg0: i32, %arg1: i32) -> (i32, i32, i32, i32) {
    %c0_i32 = arith.constant 0 : i32
    %c0_i32_0 = arith.constant 0 : i32
    %c0_i32_1 = arith.constant 0 : i32
    %c0_i32_2 = arith.constant 0 : i32
    return %arg1, %c0_i32, %c0_i32_0, %c0_i32_1 : i32, i32, i32, i32
  }
  func.func @transform_8(%arg0: i32, %arg1: i32) -> (i32, i32, i32) {
    %c0_i32 = arith.constant 0 : i32
    %c0_i32_0 = arith.constant 0 : i32
    %c0_i32_1 = arith.constant 0 : i32
    return %arg1, %c0_i32, %c0_i32_0 : i32, i32, i32
  }
  func.func @transform_9(%arg0: i32, %arg1: i32) -> (i32, i32, i32) {
    %c0_i32 = arith.constant 0 : i32
    %c0_i32_0 = arith.constant 0 : i32
    %c0_i32_1 = arith.constant 0 : i32
    return %arg1, %c0_i32, %c0_i32_0 : i32, i32, i32
  }
  func.func @transform_10(%arg0: i32, %arg1: i32) -> (i32, i32, i32) {
    %c0_i32 = arith.constant 0 : i32
    %c0_i32_0 = arith.constant 0 : i32
    %c0_i32_1 = arith.constant 0 : i32
    return %arg1, %c0_i32, %c0_i32_0 : i32, i32, i32
  }
  func.func @transform_11(%arg0: i32, %arg1: i32) -> (i32, i32, i32) {
    %c0_i32 = arith.constant 0 : i32
    %c0_i32_0 = arith.constant 0 : i32
    %c0_i32_1 = arith.constant 0 : i32
    return %arg1, %c0_i32, %c0_i32_0 : i32, i32, i32
  }
  func.func @transform_12(%arg0: i32, %arg1: i32) -> (i32, i32, i32) {
    %c0_i32 = arith.constant 0 : i32
    %c0_i32_0 = arith.constant 0 : i32
    %c0_i32_1 = arith.constant 0 : i32
    return %arg1, %c0_i32, %c0_i32_0 : i32, i32, i32
  }
  func.func @transform_13(%arg0: i32, %arg1: i32) -> (i32, i32, i32, i32) {
    %c0_i32 = arith.constant 0 : i32
    %c0_i32_0 = arith.constant 0 : i32
    %c0_i32_1 = arith.constant 0 : i32
    %c0_i32_2 = arith.constant 0 : i32
    return %arg1, %c0_i32, %c0_i32_0, %c0_i32_1 : i32, i32, i32, i32
  }
  func.func @transform_14(%arg0: i32, %arg1: i32) -> (i32, i32, i32) {
    %c0_i32 = arith.constant 0 : i32
    %c0_i32_0 = arith.constant 0 : i32
    %c0_i32_1 = arith.constant 0 : i32
    return %arg1, %c0_i32, %c0_i32_0 : i32, i32, i32
  }
  func.func @transform_15(%arg0: i32, %arg1: i32) -> (i32, i32, i32) {
    %c0_i32 = arith.constant 0 : i32
    %c0_i32_0 = arith.constant 0 : i32
    %c0_i32_1 = arith.constant 0 : i32
    return %arg1, %c0_i32, %c0_i32_0 : i32, i32, i32
  }
  func.func @transform_16(%arg0: i32, %arg1: i32) -> (i32, i32, i32) {
    %c0_i32 = arith.constant 0 : i32
    %c0_i32_0 = arith.constant 0 : i32
    %c0_i32_1 = arith.constant 0 : i32
    return %arg1, %c0_i32, %c0_i32_0 : i32, i32, i32
  }
  func.func @transform_17(%arg0: i32, %arg1: i32) -> (i32, i32, i32) {
    %c0_i32 = arith.constant 0 : i32
    %c0_i32_0 = arith.constant 0 : i32
    %c0_i32_1 = arith.constant 0 : i32
    return %arg1, %c0_i32, %c0_i32_0 : i32, i32, i32
  }
  func.func @transform_18(%arg0: i32, %arg1: i32) -> (i32, i32, i32) {
    %c0_i32 = arith.constant 0 : i32
    %c0_i32_0 = arith.constant 0 : i32
    %c0_i32_1 = arith.constant 0 : i32
    return %arg1, %c0_i32, %c0_i32_0 : i32, i32, i32
  }
  func.func @transform_19(%arg0: i32, %arg1: i32) -> (i32, i32) {
    %c0_i32 = arith.constant 0 : i32
    %c0_i32_0 = arith.constant 0 : i32
    %c0_i32_1 = arith.constant 0 : i32
    return %c0_i32, %c0_i32_0 : i32, i32
  }
  func.func @transform_20(%arg0: i32, %arg1: i32) -> (i32, i32) {
    %c0_i32 = arith.constant 0 : i32
    %c0_i32_0 = arith.constant 0 : i32
    %c0_i32_1 = arith.constant 0 : i32
    return %c0_i32, %c0_i32_0 : i32, i32
  }
  func.func @transform_21(%arg0: i32, %arg1: i32) -> (i32, i32) {
    %c0_i32 = arith.constant 0 : i32
    %c0_i32_0 = arith.constant 0 : i32
    %c0_i32_1 = arith.constant 0 : i32
    return %c0_i32, %c0_i32_0 : i32, i32
  }
  func.func @transform_22(%arg0: i32, %arg1: i32) -> (i32, i32) {
    %c0_i32 = arith.constant 0 : i32
    %c0_i32_0 = arith.constant 0 : i32
    %c0_i32_1 = arith.constant 0 : i32
    return %c0_i32, %c0_i32_0 : i32, i32
  }
  func.func @transform_23(%arg0: i32, %arg1: i32) -> (i32, i32) {
    %c0_i32 = arith.constant 0 : i32
    %c0_i32_0 = arith.constant 0 : i32
    %c0_i32_1 = arith.constant 0 : i32
    return %c0_i32, %c0_i32_0 : i32, i32
  }
  func.func @transform_24(%arg0: i32, %arg1: i32) -> (i32, i32) {
    %c0_i32 = arith.constant 0 : i32
    %c0_i32_0 = arith.constant 0 : i32
    %c0_i32_1 = arith.constant 0 : i32
    return %c0_i32, %c0_i32_0 : i32, i32
  }
  func.func @transform_25(%arg0: i32, %arg1: i32) -> (i32, i32, i32) {
    %c0_i32 = arith.constant 0 : i32
    %c0_i32_0 = arith.constant 0 : i32
    %c0_i32_1 = arith.constant 0 : i32
    return %arg0, %c0_i32, %c0_i32_0 : i32, i32, i32
  }
  func.func @transform_26(%arg0: i32, %arg1: i32) -> (i32, i32, i32) {
    %c0_i32 = arith.constant 0 : i32
    %c0_i32_0 = arith.constant 0 : i32
    %c0_i32_1 = arith.constant 0 : i32
    return %arg0, %c0_i32, %c0_i32_0 : i32, i32, i32
  }
}

</mosaic_0001>

<bundles_post_ra>
// kernel: _lambda_.2
= control target key start
LH: loop header
LB: loop body
LE: loop exit
PB: predicated region body
PF: predicated region fallthrough
CT: control target
= control target key end

     0   :  { %s4075_s0 = inlined_call_operand.vmem [shape: f32[2,8,32], index: 0, kind: input, shape index: {}]   ;;  %s4076_s1 = inlined_call_operand.hbm [shape: bf16[32,32], index: 1, kind: input, shape index: {}]   ;;  %s4077_s2 = inlined_call_operand.hbm [shape: f32[1,32], index: 2, kind: input, shape index: {}]   ;;  %s4078_s3 = inlined_call_operand.hbm [shape: f32[1,32], index: 3, kind: input, shape index: {}]   ;;  %s4079_s4 = inlined_call_operand.hbm [shape: f32[9,32], index: 4, kind: input, shape index: {}]   ;;  %s4080_s5 = inlined_call_operand.hbm [shape: f32[2,4,32], index: 5, kind: input, shape index: {}]   ;;  %s4081_s6 = inlined_call_operand.vmem [shape: bf16[2,32,32], index: 6, kind: input, shape index: {}]   ;;  %s4082_s7 = inlined_call_operand.vmem [shape: bf16[2,32,64], index: 7, kind: input, shape index: {}]   ;;  %s4083_s8 = inlined_call_operand.hbm [shape: bf16[2,4,8,32], index: 8, kind: input, shape index: {}]   ;;  %s4084_s9 = inlined_call_operand.hbm [shape: f32[2,1,32], index: 9, kind: input, shape index: {}]   ;;  %s4085_s10 = inlined_call_operand.vmem [shape: bf16[2,32,64], index: 10, kind: input, shape index: {}]   ;;  %s4086_s11 = inlined_call_operand.vmem [shape: f32[2,1,64], index: 11, kind: input, shape index: {}]   ;;  %s4087_s12 = inlined_call_operand.vmem [shape: bf16[2,64,32], index: 12, kind: input, shape index: {}]   ;;  %s4088_s13 = inlined_call_operand.vmem [shape: f32[2,1,32], index: 13, kind: input, shape index: {}]   ;;  %s4089_s14 = inlined_call_operand.vmem [shape: f32[2,32], index: 14, kind: input, shape index: {}]   ;;  %s4090_s15 = inlined_call_operand.vmem [shape: f32[2,9,32], index: 15, kind: output, shape index: {}]  }
   0x1   :  { %4112 = sst [smem:[#allocation26_spill]] %s4075_s0 }
   0x2   :  { %4113 = sst [smem:[#allocation27_spill]] %s4076_s1 }
   0x3   :  { %4114 = sst [smem:[#allocation28_spill]] %s4077_s2 }
   0x4   :  { %4115 = sst [smem:[#allocation29_spill]] %s4078_s3 }
   0x5   :  { %4116 = sst [smem:[#allocation30_spill]] %s4079_s4 }
   0x6   :  { %4117 = sst [smem:[#allocation31_spill]] %s4080_s5 }
   0x7   :  { %4118 = sst [smem:[#allocation32_spill]] %s4081_s6 }
   0x8   :  { %4119 = sst [smem:[#allocation33_spill]] %s4082_s7 }
   0x9   :  { %4120 = sst [smem:[#allocation34_spill]] %s4083_s8 }
   0xa   :  { %4121 = sst [smem:[#allocation35_spill]] %s4084_s9 }
   0xb   :  { %4122 = sst [smem:[#allocation36_spill]] %s4085_s10 }
   0xc   :  { %4123 = sst [smem:[#allocation37_spill]] %s4086_s11 }
   0xd   :  { %4124 = sst [smem:[#allocation38_spill]] %s4087_s12 }
   0xe   :  { %4125 = sst [smem:[#allocation39_spill]] %s4088_s13 }
   0xf   :  { %4126 = sst [smem:[#allocation40_spill]] %s4089_s14 }
  0x10   :  { %4127 = sst [smem:[#allocation41_spill]] %s4090_s15 }
  0x11   :  { %20 = vsyncpa [#allocation4], 0 }
  0x12   :  { %21 = vsyncpa [#allocation6], 0 }
  0x13   :  { %22 = vsyncpa [#allocation9], 0  ;;  %s3471_s18 = smov 0   ;;  %s3473_s19 = smov 0  }
  0x14   :  { %s3475_s20 = smov 0   ;;  %s3477_s21 = smov 0  }
  0x15   :  { %s3479_s22 = smov 0   ;;  %s3481_s23 = smov 0  }
  0x16   :  { %s3483_s24 = smov 0   ;;  %s3485_s25 = smov 0  }
  0x17 LB: > { %4128 = sst [smem:[#allocation17_spill]] %s3342_s19  ;;  %s4091_s26 = sadd.s32 4294967295, %s3366_s25   ;;  %s3366_s25 = sphi %s3485_s25, %s28_s25   ;;  %s3362_s24 = sphi %s3483_s24, %s4186_s24   ;;  %s3358_s23 = sphi %s3481_s23, %s4185_s23   ;;  %s3354_s22 = sphi %s3479_s22, %s4184_s22   ;;  %s3350_s21 = sphi %s3477_s21, %s4183_s21   ;;  %s3346_s20 = sphi %s3475_s20, %s4182_s20   ;;  %s3342_s19 = sphi %s3473_s19, %s4181_s19   ;;  %s3338_s18 = sphi %s3471_s18, %s4180_s18  }
  0x18   : > { %4129 = sst [smem:[#allocation18_spill]] %s3346_s20  ;;  %p170_p0 = scmp.ne.s32.totalorder %s3342_s19, %s3338_s18 }
  0x19   : > { %4130 = sst [smem:[#allocation19_spill]] %s3350_s21  ;;  %p3513_p1 = scmp.eq.s32.totalorder %s4091_s26, 0 }
  0x1a   : > { %4131 = sst [smem:[#allocation20_spill]] %s3354_s22  ;;  %p2529_p2 = scmp.ge.s32.totalorder %s3366_s25, 1 }
  0x1b   : > { %4132 = sst [smem:[#allocation21_spill]] %s3358_s23  ;;  %p436_p3 = scmp.lt.s32.totalorder %s3366_s25, 5 }
  0x1c   : > { %4133 = sst [smem:[#allocation22_spill]] %s3362_s24  ;;  %p3521_p4 = por %p3513_p1, %p170_p0 }
  0x1d   : > { %s4134_s27 = scalar_select %p3513_p1, 1, 0 }
  0x1e   : > { %s4135_s28 = scalar_select %p3521_p4, 1, 0 }
  0x1f   : > { %p3525_p5 = pnand %p2529_p2, %p436_p3  ;;  %s3368_s30 = smov [#allocation3]  }
  0x20   : > { %s448_s16 = sshll.u32 %s3368_s30, 4  ;;  %s4138_s1 = sld [smem:[#allocation27_spill]]  ;;  %s449_s16 = int_to_ptr.vmem [resolvable:$true] %s448_s16 }
  0x21   : > { %s4136_s29 = scalar_select %p3525_p5, 1, 0 }
  0x22   : > { %p2875_p6 = pneg %p3525_p5 }
  0x24   : > { %p3533_p7 = pnand %p2875_p6, %p3513_p1 }
  0x26   : > { %s4137_s17 = scalar_select %p3533_p7, 1, 0 }
  0x27   : > { %s3086_s14 = scalar_lea.hbm %s4138_s1, 256  ;;  %p3545_p9 = pneg %p3533_p7 }
  0x28   : > { %p3087_p8 = scmp.ne.s32.totalorder %s4138_s1, %s3086_s14  ;;  %p3093_p12 = scmp.lt.u32.totalorder %s3086_s14, %s4138_s1 }
  0x29   : > { %s4139_s30 = scalar_select %p3545_p9, 1, 0 }
  0x2a   : > { %p3089_p10 = pnand %p3545_p9, %p3087_p8 }
  0x2c   : > { %p3090_p11 = pneg %p3089_p10 }
  0x2e   : > { %p3095_p13 = pnand %p3093_p12, %p3090_p11 }
  0x30   : > { %3098 = shalt.err (!%p3095_p13)
}
  0x31   : > { %s3099_s26 = scalar_lea.vmem %s449_s16, 256  ;;  %p3107_p6 = scmp.lt.s32.totalorder %s449_s16, %s449_s16 }
  0x32   : > { %p3100_p0 = scmp.ne.s32.totalorder %s449_s16, %s3099_s26  ;;  %p3108_p4 = scmp.lt.s32.totalorder %s3099_s26, %s3099_s26 }
  0x34   : > { %p3102_p2 = pnand %p3100_p0, %p3545_p9  ;;  %p3109_p1 = por %p3108_p4, %p3107_p6 }
  0x36   : > { %p3103_p3 = pneg %p3102_p2 }
  0x38   : > { %p3110_p5 = pnand %p3109_p1, %p3103_p3 }
  0x3a   : > { %3113 = shalt.err (!%p3110_p5)
}
  0x3b   : > { %s4097_s12 = smov 64   ;;  %s4098_s11 = smov 4  }
  0x3c   : > { %2878 = dma.hbm_to_vmem [thread:$0]  (!%p3533_p7), %s4138_s1, 256, %s449_s16, [#allocation4], %s4097_s12, %s4097_s12, %s4098_s11  }
  0x3d   : > { %s37_s15 = sadd.s32 1, %s3358_s23  ;;  %s40_s18 = sadd.s32 1, %s3362_s24 }
  0x3e   : > { %p38_p1 = scmp.ge.s32.totalorder %s37_s15, 2  ;;  %s157_s26 = sadd.s32 1, %s3346_s20 }
  0x3f   : > { %p164_p4 = scmp.ne.s32.totalorder %s3346_s20, %s3342_s19  ;;  %p165_p5 = scmp.eq.s32.totalorder %s3366_s25, 0 }
  0x40   : > { %s4188_s15 = smov (%p38_p1, %s37_s15), 0  ;;  %s4190_s18 = smov (!%p38_p1, %s40_s18), %s3362_s24 }
  0x41   : > { %4140 = sst [smem:[#allocation23_spill]] %s4188_s15  ;;  %s154_s10 = ssub.s32 %s3358_s23, %s4188_s15 }
  0x42   : > { %p42_p8 = scmp.ge.s32.totalorder %s4190_s18, 2  ;;  %p155_p10 = scmp.eq.s32.totalorder %s154_s10, 0 }
  0x43   : > { %p166_p11 = por %p165_p5, %p164_p4  ;;  %p2902_p12 = scmp.lt.s32.totalorder %s3366_s25, 4 }
  0x44   : > { %s4192_s18 = smov (%p42_p8, %s4190_s18), 0  ;;  %s507_s13 = sand.u32 1, %s3366_s25  }
  0x45   : > { %4141 = sst [smem:[#allocation24_spill]] %s4192_s18  ;;  %s3583_s14 = sand.u32 1, %s3346_s20  }
  0x46   : > { %s3579_s16 = scalar_select %p155_p10, %s3346_s20, %s157_s26  }
  0x47   : > { %s2535_s12 = sshll.u32 %s3583_s14, 2  ;;  %s2536_s11 = sshll.u32 %s3358_s23, 6 }
  0x48   : > { %4142 = sst [smem:[#allocation25_spill]] %s3579_s16  ;;  %s4143_s5 = sld [smem:[#allocation31_spill]] }
  0x49   : > { %s511_s10 = scalar_lea.vmem [#allocation10], %s2535_s12  ;;  %p3594_p13 = pnand %p2902_p12, %p166_p11 }
  0x4a   : > { %s518_s18 = sshll.u32 %s511_s10, 4  ;;  %s2537_s24 = sshll.u32 %s3583_s14, 4  ;;  %s3592_s18 = int_to_ptr.vmem [resolvable:$true] %s518_s18 }
  0x4b   : > { %s4144_s26 = scalar_select %p3594_p13, 1, 0 }
  0x4c   : > { %s3599_s16 = scalar_lea.sflag [#allocation4], %s507_s13  ;;  %p3605_p2 = pneg %p3594_p13 }
  0x4e   : > { %s3590_s15 = scalar_lea.hbm %s4143_s5, %s2536_s11  ;;  %s3119_s11 = scalar_lea.hbm %s4143_s5, 128 }
  0x4f   : > { %s3114_s20 = scalar_lea.hbm %s3590_s15, 64  ;;  %p3120_p1 = scmp.lt.u32.totalorder %s3590_s15, %s4143_s5 }
  0x50   : > { %p3115_p0 = scmp.ne.s32.totalorder %s3590_s15, %s3114_s20  ;;  %p3121_p4 = scmp.lt.u32.totalorder %s3119_s11, %s3114_s20 }
  0x51   : > { %p3123_p8 = scmp.lt.u32.totalorder %s3114_s20, %s3590_s15 }
  0x52   : > { %p3117_p3 = pnand %p3605_p2, %p3115_p0  ;;  %p3122_p5 = por %p3121_p4, %p3120_p1 }
  0x54   : > { %p3118_p6 = pneg %p3117_p3  ;;  %p3124_p10 = por %p3123_p8, %p3122_p5 }
  0x56   : > { %p3125_p11 = pnand %p3124_p10, %p3118_p6 }
  0x58   : > { %3128 = shalt.err (!%p3125_p11)
}
  0x59   : > { %s3129_s13 = scalar_lea.vmem %s3592_s18, 64  ;;  %s3371_s7 = smov [#allocation10]  }
  0x5a   : > { %p3130_p12 = scmp.ne.s32.totalorder %s3592_s18, %s3129_s13  ;;  %s3134_s12 = sshll.u32 %s3371_s7, 4  ;;  %s3135_s12 = int_to_ptr.vmem [resolvable:$false] %s3134_s12 }
  0x5b   : > { %s3136_s6 = scalar_lea.vmem %s3135_s12, 128  ;;  %p3137_p7 = scmp.lt.s32.totalorder %s3592_s18, %s3135_s12 }
  0x5c   : > { %p3132_p0 = pnand %p3130_p12, %p3605_p2  ;;  %p3138_p9 = scmp.lt.s32.totalorder %s3136_s6, %s3129_s13 }
  0x5e   : > { %p3133_p3 = pneg %p3132_p0  ;;  %p3139_p1 = por %p3138_p9, %p3137_p7 }
  0x60   : > { %p3140_p4 = pnand %p3139_p1, %p3133_p3 }
  0x62   : > { %3143 = shalt.err (!%p3140_p4)
}
  0x63   : > { %2891 = dma.hbm_to_vmem [thread:$0]  (!%p3594_p13), %s3590_s15, 64, %s3592_s18, %s3599_s16  }
  0x64   : > { %s545_s20 = scalar_lea.vmem [#allocation11], %s2537_s24  ;;  %s3372_s10 = smov [#allocation5]  }
  0x65   : > { %s552_s11 = sshll.u32 %s545_s20, 4  ;;  %s462_s7 = sshll.u32 %s3372_s10, 4  ;;  %s463_s7 = int_to_ptr.vmem [resolvable:$true] %s462_s7  ;;  %s3655_s11 = int_to_ptr.vmem [resolvable:$true] %s552_s11 }
  0x66   : > { %s2618_s12 = sshll.u32 %s3358_s23, 8  ;;  %s4146_s2 = sld [smem:[#allocation28_spill]] }
  0x67   : > { %p4147_p9 = scmp.ne.s32.totalorder %s4139_s30, 0 }
  0x6c   : > { %s3144_s5 = scalar_lea.hbm %s4146_s2, 16 }
  0x6d   : > { %p3145_p7 = scmp.ne.s32.totalorder %s4146_s2, %s3144_s5  ;;  %p3151_p8 = scmp.lt.u32.totalorder %s3144_s5, %s4146_s2 }
  0x6f   : > { %p3147_p6 = pnand %p3145_p7, %p4147_p9 }
  0x71   : > { %p3148_p5 = pneg %p3147_p6 }
  0x73   : > { %p3153_p10 = pnand %p3151_p8, %p3148_p5 }
  0x75   : > { %3156 = shalt.err (!%p3153_p10)
}
  0x76   : > { %s3157_s24 = scalar_lea.vmem %s463_s7, 16  ;;  %s3164_s18 = scalar_lea.vmem %s463_s7, 32 }
  0x77   : > { %p3158_p11 = scmp.ne.s32.totalorder %s463_s7, %s3157_s24  ;;  %p3165_p3 = scmp.lt.s32.totalorder %s463_s7, %s463_s7 }
  0x78   : > { %p3166_p1 = scmp.lt.s32.totalorder %s3164_s18, %s3157_s24 }
  0x79   : > { %p3160_p12 = pnand %p3158_p11, %p4147_p9 }
  0x7a   : > { %p3167_p4 = por %p3166_p1, %p3165_p3 }
  0x7b   : > { %p3161_p0 = pneg %p3160_p12 }
  0x7d   : > { %p3168_p13 = pnand %p3167_p4, %p3161_p0 }
  0x7f   : > { %3171 = shalt.err (!%p3168_p13)
}
  0x80   : > { %p4148_p7 = scmp.ne.s32.totalorder %s4137_s17, 0  ;;  %s4149_s8 = sld [smem:[#allocation34_spill]] }
  0x82   : > { %2881 = dma.hbm_to_vmem [thread:$0]  (!%p4148_p7), %s4146_s2, 16, %s463_s7, [#allocation6]  }
  0x86   : > { %s3653_s20 = scalar_lea.hbm %s4149_s8, %s2618_s12  ;;  %s3177_s7 = scalar_lea.hbm %s4149_s8, 512 }
  0x87   : > { %s3172_s10 = scalar_lea.hbm %s3653_s20, 256  ;;  %p3178_p8 = scmp.lt.u32.totalorder %s3653_s20, %s4149_s8 }
  0x88   : > { %p3173_p13 = scmp.ne.s32.totalorder %s3653_s20, %s3172_s10  ;;  %p3179_p10 = scmp.lt.u32.totalorder %s3177_s7, %s3172_s10 }
  0x89   : > { %p3181_p12 = scmp.lt.u32.totalorder %s3172_s10, %s3653_s20 }
  0x8a   : > { %p3175_p6 = pnand %p3173_p13, %p3605_p2  ;;  %p3180_p11 = por %p3179_p10, %p3178_p8 }
  0x8c   : > { %p3176_p5 = pneg %p3175_p6  ;;  %p3182_p0 = por %p3181_p12, %p3180_p11 }
  0x8e   : > { %p3183_p3 = pnand %p3182_p0, %p3176_p5 }
  0x90   : > { %3186 = shalt.err (!%p3183_p3)
}
  0x91   : > { %s3187_s12 = scalar_lea.vmem %s3655_s11, 256  ;;  %s3373_s18 = smov [#allocation11]  }
  0x92   : > { %p3188_p1 = scmp.ne.s32.totalorder %s3655_s11, %s3187_s12  ;;  %s3192_s0 = sshll.u32 %s3373_s18, 4  ;;  %s3193_s0 = int_to_ptr.vmem [resolvable:$false] %s3192_s0 }
  0x93   : > { %s3194_s21 = scalar_lea.vmem %s3193_s0, 512  ;;  %p3195_p6 = scmp.lt.s32.totalorder %s3655_s11, %s3193_s0 }
  0x94   : > { %p3190_p4 = pnand %p3188_p1, %p3605_p2  ;;  %p3196_p7 = scmp.lt.s32.totalorder %s3194_s21, %s3187_s12 }
  0x96   : > { %p3191_p13 = pneg %p3190_p4  ;;  %p3197_p8 = por %p3196_p7, %p3195_p6 }
  0x98   : > { %p3198_p10 = pnand %p3197_p8, %p3191_p13 }
  0x9a   : > { %3201 = shalt.err (!%p3198_p10)
}
  0x9b   : > { %p4150_p5 = scmp.ne.s32.totalorder %s4144_s26, 0  ;;  %s4151_s5 = smov 4  }
  0x9c   : > { %s4152_s22 = smov 64   ;;  %s3374_s10 = smov [#allocation7]  }
  0x9d   : > { %2894 = dma.hbm_to_vmem [thread:$0]  (!%p4150_p5), %s3653_s20, 256, %s3655_s11, %s3599_s16, %s4152_s22, %s4152_s22, %s4151_s5  }
  0x9e   : > { %s473_s13 = sshll.u32 %s3374_s10, 4  ;;  %s3375_s6 = smov [#allocation8]   ;;  %s474_s13 = int_to_ptr.vmem [resolvable:$true] %s473_s13 }
  0x9f   : > { %s483_s7 = sshll.u32 %s3375_s6, 4  ;;  %s4153_s3 = sld [smem:[#allocation29_spill]]  ;;  %s3682_s7 = int_to_ptr.vmem [resolvable:$true] %s483_s7 }
  0xa5   : > { %s3202_s12 = scalar_lea.hbm %s4153_s3, 16 }
  0xa6   : > { %p3203_p7 = scmp.ne.s32.totalorder %s4153_s3, %s3202_s12  ;;  %p3209_p0 = scmp.lt.u32.totalorder %s3202_s12, %s4153_s3 }
  0xa8   : > { %p3205_p11 = pnand %p3203_p7, %p4147_p9 }
  0xaa   : > { %p3206_p12 = pneg %p3205_p11 }
  0xac   : > { %p3211_p3 = pnand %p3209_p0, %p3206_p12 }
  0xae   : > { %3214 = shalt.err (!%p3211_p3)
}
  0xaf   : > { %s3215_s20 = scalar_lea.vmem %s474_s13, 16  ;;  %s3222_s5 = scalar_lea.vmem %s474_s13, 32 }
  0xb0   : > { %p3216_p1 = scmp.ne.s32.totalorder %s474_s13, %s3215_s20  ;;  %p3223_p6 = scmp.lt.s32.totalorder %s474_s13, %s474_s13 }
  0xb1   : > { %p3224_p8 = scmp.lt.s32.totalorder %s3222_s5, %s3215_s20 }
  0xb2   : > { %p3218_p4 = pnand %p3216_p1, %p4147_p9 }
  0xb3   : > { %p3225_p10 = por %p3224_p8, %p3223_p6 }
  0xb4   : > { %p3219_p13 = pneg %p3218_p4 }
  0xb6   : > { %p3226_p5 = pnand %p3225_p10, %p3219_p13 }
  0xb8   : > { %3229 = shalt.err (!%p3226_p5)
}
  0xb9   : > { %p4154_p7 = scmp.ne.s32.totalorder %s4137_s17, 0  ;;  %s4155_s4 = sld [smem:[#allocation30_spill]] }
  0xbb   : > { %2884 = dma.hbm_to_vmem [thread:$0]  (!%p4154_p7), %s4153_s3, 16, %s474_s13, [#allocation6]  }
  0xbf   : > { %s3230_s24 = scalar_lea.hbm %s4155_s4, 256 }
  0xc0   : > { %p3231_p11 = scmp.ne.s32.totalorder %s4155_s4, %s3230_s24  ;;  %p3237_p5 = scmp.lt.u32.totalorder %s3230_s24, %s4155_s4 }
  0xc2   : > { %p3233_p12 = pnand %p3231_p11, %p4147_p9 }
  0xc4   : > { %p3234_p0 = pneg %p3233_p12 }
  0xc6   : > { %p3239_p3 = pnand %p3237_p5, %p3234_p0 }
  0xc8   : > { %3242 = shalt.err (!%p3239_p3)
}
  0xc9   : > { %s3243_s13 = scalar_lea.vmem %s3682_s7, 256  ;;  %p3251_p6 = scmp.lt.s32.totalorder %s3682_s7, %s3682_s7 }
  0xca   : > { %p3244_p1 = scmp.ne.s32.totalorder %s3682_s7, %s3243_s13  ;;  %p3252_p8 = scmp.lt.s32.totalorder %s3243_s13, %s3243_s13 }
  0xcc   : > { %p3246_p4 = pnand %p3244_p1, %p4147_p9  ;;  %p3253_p10 = por %p3252_p8, %p3251_p6 }
  0xce   : > { %p3247_p13 = pneg %p3246_p4 }
  0xd0   : > { %p3254_p11 = pnand %p3253_p10, %p3247_p13 }
  0xd2   : > { %3257 = shalt.err (!%p3254_p11)
}
  0xd3   : > { %s3376_s11 = smov 128   ;;  %s3377_s20 = smov 8  }
  0xd4   : > { %2887 = dma.hbm_to_vmem [thread:$0]  (!%p4154_p7), %s4155_s4, 256, %s3682_s7, [#allocation9], %s3376_s11, %s3376_s11, %s3377_s20  }
  0xd5   : > { %s2540_s30 = sshll.u32 %s3358_s23, 4  ;;  %s4156_s9 = sld [smem:[#allocation35_spill]] }
  0xd6   : > { %s565_s24 = scalar_lea.vmem [#allocation12], %s3583_s14 }
  0xd7   : > { %s572_s12 = sshll.u32 %s565_s24, 4  ;;  %s573_s12 = int_to_ptr.vmem [resolvable:$true] %s572_s12 }
  0xdb   : > { %s3729_s15 = scalar_lea.hbm %s4156_s9, %s2540_s30  ;;  %s3263_s0 = scalar_lea.hbm %s4156_s9, 32 }
  0xdc   : > { %s3258_s18 = scalar_lea.hbm %s3729_s15, 16  ;;  %p3264_p7 = scmp.lt.u32.totalorder %s3729_s15, %s4156_s9 }
  0xdd   : > { %p3259_p9 = scmp.ne.s32.totalorder %s3729_s15, %s3258_s18  ;;  %p3265_p5 = scmp.lt.u32.totalorder %s3263_s0, %s3258_s18 }
  0xde   : > { %p3267_p1 = scmp.lt.u32.totalorder %s3258_s18, %s3729_s15 }
  0xdf   : > { %p3261_p12 = pnand %p3259_p9, %p3605_p2  ;;  %p3266_p3 = por %p3265_p5, %p3264_p7 }
  0xe1   : > { %p3262_p0 = pneg %p3261_p12  ;;  %p3268_p4 = por %p3267_p1, %p3266_p3 }
  0xe3   : > { %p3269_p13 = pnand %p3268_p4, %p3262_p0 }
  0xe5   : > { %3272 = shalt.err (!%p3269_p13)
}
  0xe6   : > { %s3273_s14 = scalar_lea.vmem %s573_s12, 16  ;;  %s3378_s11 = smov [#allocation12]  }
  0xe7   : > { %p3274_p6 = scmp.ne.s32.totalorder %s573_s12, %s3273_s14  ;;  %s3278_s20 = sshll.u32 %s3378_s11, 4  ;;  %s3279_s20 = int_to_ptr.vmem [resolvable:$false] %s3278_s20 }
  0xe8   : > { %s3280_s5 = scalar_lea.vmem %s3279_s20, 32  ;;  %p3281_p11 = scmp.lt.s32.totalorder %s573_s12, %s3279_s20 }
  0xe9   : > { %p3276_p8 = pnand %p3274_p6, %p3605_p2  ;;  %p3282_p9 = scmp.lt.s32.totalorder %s3280_s5, %s3273_s14 }
  0xeb   : > { %p3277_p10 = pneg %p3276_p8  ;;  %p3283_p12 = por %p3282_p9, %p3281_p11 }
  0xed   : > { %p3284_p5 = pnand %p3283_p12, %p3277_p10 }
  0xef   : > { %3287 = shalt.err (!%p3284_p5)
}
  0xf0   : > { %p4157_p7 = scmp.ne.s32.totalorder %s4144_s26, 0  ;;  %p4158_p0 = scmp.ne.s32.totalorder %s4136_s29, 0 }
  0xf1   : > { %p4159_p2 = scmp.ne.s32.totalorder (!%p4158_p0), %s4134_s27, 0 }
  0xf2   : > { %2897 = dma.hbm_to_vmem [thread:$0]  (!%p4157_p7), %s3729_s15, 16, %s573_s12, %s3599_s16  }
  0xf3   : > { %609 = sbr.rel (%p4158_p0) target bundleno = 4529 (0x11b1), region = 80 }
  0xfa   : > { %3321 = dma.done.wait (%p4159_p2), [#allocation4], 256  }
  0xfb   : > { %3323 = vsyncadd (%p4159_p2), [#allocation4], 4294967040 }
  0xfc   : > { %3325 = dma.done.wait (%p4159_p2), [#allocation6], 32  }
  0xfd   : > { %3327 = vsyncadd (%p4159_p2), [#allocation6], 4294967264 }
  0xfe   : > { %3329 = dma.done.wait (%p4159_p2), [#allocation9], 256  }
  0xff   : > { %3331 = vsyncadd (%p4159_p2), [#allocation9], 4294967040  ;;  %s4160_s29 = sadd.s32 4294967295, %s3366_s25   ;;  %s3767_s26 = sand.u32 1, %s3342_s19  }
 0x100   : > { %s627_s16 = sand.u32 1, %s4160_s29   ;;  %s2546_s1 = sshll.u32 %s3767_s26, 2 }
 0x101   : > { %s628_s22 = scalar_lea.sflag [#allocation4], %s627_s16  ;;  %s3770_s30 = scalar_lea.vmem [#allocation10], %s2546_s1 }
 0x102   : > { %p4161_p3 = scmp.ne.s32.totalorder %s4135_s28, 0 }
 0x104   : > { %3333 = dma.done.wait (%p4161_p3), %s628_s22, 336  }
 0x105   : > { %3335 = vsyncadd (%p4161_p3), %s628_s22, 4294966960  ;;  %s4162_s27 = sld [smem:[#allocation20_spill]]  ;;  %s4163_s10 = sld [smem:[#allocation19_spill]] }
 0x106   : > { %s2547_s6 = sshll.u32 %s3767_s26, 4  ;;  %s4164_s17 = sld [smem:[#allocation26_spill]] }
 0x107   : > { %s4165_s14 = sld [smem:[#allocation32_spill]]  ;;  %s4166_s29 = sld [smem:[#allocation33_spill]] }
 0x108   : > { %s4167_s2 = sld [smem:[#allocation36_spill]]  ;;  %s4168_s28 = sld [smem:[#allocation37_spill]] }
 0x109   : > { %s4169_s21 = sld [smem:[#allocation39_spill]]  ;;  %s4170_s23 = sld [smem:[#allocation38_spill]] }
 0x10a   : > { %s4171_s19 = sld [smem:[#allocation41_spill]] }
 0x10b   : > { %p734_p1 = scmp.lt.s32.totalorder %s4162_s27, 1  ;;  %p738_p4 = scmp.lt.s32.totalorder %s4163_s10, 1 }
 0x10c   : > { %p2559_p13 = scmp.ne.s32.totalorder %s4163_s10, 0 }
 0x10d   : > { %s4194_s27 = smov (!%p734_p1, %s4162_s27), 1  ;;  %v2991_v0 = vld [vmem:[#allocation3] sm:$0xff] (!%p2559_p13)   ;;  %v3379_v1 = vmov (!%p2559_p13), 0.0   ;;  %v2992_v2 = vld [vmem:[#allocation3 + $0x8] sm:$0xff] (!%p2559_p13)   ;;  %vm3380_vm0 = vmmov (!%p2559_p13), 0   ;;  %vm799_vm1 = vcmask (!%p2559_p13), 261120  }
 0x10e   : > { %s3781_s15 = scalar_select %p738_p4, %s4163_s10, 1 }
 0x10f   : > { %s2548_s24 = sshll.u32 %s4194_s27, 3  ;;  %s2623_s12 = sshll.u32 %s4194_s27, 4  ;;  %2681 = vmatprep.subr.bf16.mxu0 (!%p2559_p13), %v3379_v1  ;;  %2685 = vmatprep.mubr.msk.bf16.mxu0 (!%p2559_p13), %vm3380_vm0, %v3379_v1  ;;  %v846_v5 = vld [vmem:[#allocation7] sm:$0x1] (!%p2559_p13)  ;;  %v847_v6 = vld [vmem:[#allocation8 + $0x8] sm:$0x1] (!%p2559_p13) }
 0x110   : > { %s737_s7 = scalar_lea.vmem %s4164_s17, %s2548_s24  ;;  %s2619_s0 = sshll.u32 %s3781_s15, 4  ;;  %2682 = vmatpush3.bf16.msra.mxu0 (!%p2559_p13), %v2991_v0  ;;  %v848_v7 = vadd.f32 (!%p2559_p13), %v847_v6, %v846_v5  ;;  %vm849_vm2 = vcmask (!%p2559_p13), 253952   ;;  %v2560_v8 = vld [vmem:[#allocation5] ss:$0 sm:$0xff] (!%p2559_p13)  ;;  %v843_v10 = vld [vmem:[#allocation8] sm:$0xff] (!%p2559_p13) }
 0x111   : > { %s3790_s11 = scalar_lea.vmem %s4165_s14, %s2619_s0  ;;  %s3795_s16 = scalar_lea.vmem %s4166_s29, %s2619_s0  ;;  %v774_v3 = vld [vmem:[%s737_s7] sm:$0xff] (!%p2559_p13)  ;;  %2683 = vmatprep.subr.bf16.mxu0 (!%p2559_p13), %v3379_v1 }
 0x112   : > { %s3800_s3 = scalar_lea.vmem %s4167_s2, %s2619_s0  ;;  %s755_s24 = scalar_lea.vmem %s4168_s28, %s3781_s15  ;;  %v779_v4 = vpack.c.bf16 (!%p2559_p13), %v774_v3, %v774_v3  ;;  %850 = vst.msk [vmem:[#allocation2 + $0x8] sm:$0x1] (!%p2559_p13), %vm849_vm2, %v848_v7 }
 0x113   : > { %s2622_s18 = sshll.u32 %s3781_s15, 5  ;;  %s763_s13 = scalar_lea.vmem %s4169_s21, %s3781_s15 }
 0x114   : > { %s3814_s20 = scalar_lea.vmem %s4170_s23, %s2622_s18  ;;  %s3819_s1 = scalar_lea.vmem %s4171_s19, %s2623_s12  ;;  %2684 = vmatpush3.bf16.msra.mxu0 (!%p2559_p13), %v2992_v2 }
 0x115   : > { %s3821_s2 = scalar_lea.vmem [#allocation11], %s2547_s6  ;;  %s648_s0 = scalar_lea.vmem [#allocation12], %s3767_s26 }
 0x116   : > { %773 = sbr.rel (%p2559_p13) target bundleno = 496 (0x1f0), region = 112 }
 0x117   : > { %2686 = vmatmul.mubr.msk.bf16.vlgmr.msra.gmra.mrb[0].mxu0 (!%p2559_p13), %vm799_vm1, %v779_v4 }
 0x1ea   : > { %v837_v9 = vpop.f32.mrb[0].mxu0 }
 0x1eb   : > { %v838_v11 = vadd.f32 %v2560_v8, %v837_v9  ;;  %v2687_v12 = vpop.f32.mrb[1].mxu0 }
 0x1ec   : > { %v840_v13 = vpop.f32.mrb[2].mxu0 }
 0x1ed   : > { %v844_v14 = vadd.f32 %v843_v10, %v838_v11  ;;  %v2688_v15 = vpop.f32.mrb[3].mxu0 }
 0x1ef   : > { %845 = vst.msk [vmem:[#allocation2] sm:$0xff] %vm799_vm1, %v844_v14 }
 0x1f0 PF: > { %vm854_vm3 = vcmask 261120   ;;  %v3827_v17 = vld [vmem:[#allocation2 + $0x8] sm:$0x1]  ;;  %vm858_vm4 = vcmask 253952   ;;  %v3028_v30 = vld [vmem:[%s3790_s11] sm:$0xff]   ;;  %v3381_v32 = vmov 0.0   ;;  %v883_v39 = vlaneseq }
 0x1f1   : > { %v859_v19 = vsel %vm858_vm4, %v3827_v17, 0.0  ;;  %v3029_v31 = vld [vmem:[%s3795_s16] sm:$0xff]   ;;  %2689 = vmatprep.subr.bf16.mxu0 %v3381_v32  ;;  %2697 = vmatprep.subr.bf16.mxu1 %v3381_v32  ;;  %v3030_v33 = vld [vmem:[%s3790_s11 + $0x8] sm:$0xff]   ;;  %vm3382_vm5 = vmmov 0   ;;  %v3853_v44 = vld [vmem:[%s3770_s30] sm:$0xf] }
 0x1f2   : > { %2690 = vmatpush3.bf16.msra.mxu0 %v3028_v30  ;;  %2698 = vmatpush3.bf16.msra.mxu1 %v3029_v31  ;;  %v3031_v34 = vld [vmem:[%s3795_s16 + $0x8] sm:$0xff]   ;;  %v3849_v42 = vshrl.u32 %v883_v39, 7  ;;  %vm1018_vm6 = vcmask 64512   ;;  %s3383_s4 = smov 120   ;;  %vm1112_vm8 = vcmask 65536   ;;  %vm1108_vm9 = vcmask 72704  }
 0x1f3   : > { %2691 = vmatprep.subr.bf16.mxu0 %v3381_v32  ;;  %2699 = vmatprep.subr.bf16.mxu1 %v3381_v32  ;;  %vm3869_vm7 = vmpackc.low %vm1018_vm6, %vm1018_vm6  ;;  %s3384_s8 = smov 96   ;;  %s3385_s9 = smov 112   ;;  %vm1143_vm10 = vcmask 1040384   ;;  %vm3387_vm11 = vmmov 1   ;;  %vm1429_vm13 = vcmask 1043456   ;;  %vm2201_vm14 = vcmask 523264  }
 0x1f4   : > { %2693 = vmatprep.mubr.msk.bf16.mxu0 %vm3382_vm5, %v3381_v32  ;;  %2701 = vmatprep.mubr.msk.bf16.mxu1 %vm3382_vm5, %v3381_v32  ;;  %v885_v43 = vsub.s32 0, %v3849_v42  ;;  %v891_v48 = vsub.s32 1, %v3849_v42  ;;  %s3386_s19 = smov 88   ;;  %vm3906_vm12 = vmpackc.low %vm1143_vm10, %vm3387_vm11  ;;  %s3388_s23 = smov 104  }
 0x1f5   : > { %s3389_s30 = smov 80   ;;  %s3390_s10 = smov 72  }
 0x1f6   : > { %v3825_v16 = vld [vmem:[#allocation2] sm:$0xff]  ;;  %2692 = vmatpush3.bf16.msra.mxu0 %v3030_v33  ;;  %2700 = vmatpush3.bf16.msra.mxu1 %v3031_v34  ;;  %v886_v47 = vrot.slane %v3853_v44, %v885_v43  ;;  %v892_v52 = vrot.slane %v3853_v44, %v891_v48  ;;  %s4178_s16 = sld [smem:[#allocation19_spill]] }
 0x1f7   : > { %v855_v18 = vsel %vm854_vm3, %v3825_v16, 0.0 }
 0x1f8   : > { %856 = vadd.xlane.f32.xlu0 %v855_v18 }
 0x1fc   : > { %860 = vadd.xlane.f32.xlu0 %v859_v19  ;;  %p2613_p6 = scmp.ne.s32.totalorder %s4178_s16, 1 }
 0x1fd   : > { %s4179_s27 = sld [smem:[#allocation40_spill]] (!%p2613_p6) }
 0x285   : > { %v857_v20 = vpop.xlane.xlu0 %856 }
 0x286   : > { %v863_v21 = vmul.f32 0.03125, %v857_v20 }
 0x288   : > { %v865_v22 = vsub.f32 %v3825_v16, %v863_v21 }
 0x289   : > { %v861_v23 = vpop.xlane.xlu0 %860 }
 0x28a   : > { %v864_v24 = vmul.f32 0.03125, %v861_v23  ;;  %v867_v25 = vmul.f32 %v865_v22, %v865_v22 }
 0x28c   : > { %v866_v26 = vsub.f32 %v3827_v17, %v864_v24  ;;  %v869_v27 = vsel %vm854_vm3, %v867_v25, 0.0 }
 0x28d   : > { %870 = vadd.xlane.f32.xlu1 %v869_v27 }
 0x28e   : > { %v868_v28 = vmul.f32 %v866_v26, %v866_v26 }
 0x290   : > { %v872_v29 = vsel %vm858_vm4, %v868_v28, 0.0 }
 0x291   : > { %873 = vadd.xlane.f32.xlu1 %v872_v29 }
 0x31a   : > { %v871_v35 = vpop.xlane.xlu1 %870 }
 0x31b   : > { %v875_v36 = vmul.f32 0.03125, %v871_v35 }
 0x31d   : > { %v877_v37 = vadd.f32 1e-05, %v875_v36 }
 0x31e   : > { %v874_v38 = vpop.xlane.xlu1 %873 }
 0x31f   : > { %3038 = vrsqrt.f32 %v877_v37  ;;  %v876_v40 = vmul.f32 0.03125, %v874_v38 }
 0x321   : > { %v878_v41 = vadd.f32 1e-05, %v876_v40 }
 0x323   : > { %3040 = vrsqrt.f32 %v878_v41 }
 0x329   : > { %v3039_v45 = vpop.eup %3038 }
 0x32a   : > { %v881_v46 = vmul.f32 %v3039_v45, %v865_v22 }
 0x32c   : > { %v887_v51 = vmul.f32 %v886_v47, %v881_v46 }
 0x32d   : > { %v3041_v49 = vpop.eup %3040 }
 0x32e   : > { %v882_v50 = vmul.f32 %v3041_v49, %v866_v26  ;;  %v893_v54 = vadd.f32 %v892_v52, %v887_v51 }
 0x330   : > { %v888_v53 = vmul.f32 %v886_v47, %v882_v50 }
 0x332   : > { %v894_v55 = vadd.f32 %v892_v52, %v888_v53 }
 0x334   : > { %v908_v56 = vpack.c.bf16 %v894_v55, %v893_v54 }
 0x336   : > { %2694 = vmatmul.mubr.msk.bf16.vlgmr.msra.gmra.mrb[0].mxu0 %vm854_vm3, %v908_v56  ;;  %2702 = vmatmul.mubr.msk.bf16.vlgmr.msra.gmra.mrb[0].mxu1 %vm854_vm3, %v908_v56 }
 0x409   : > { %v3860_v57 = vpop.f32.mrb[0].mxu0  ;;  %v1011_v58 = vpop.f32.mrb[0].mxu1 }
 0x40a   : > { %v2703_v59 = vpop.f32.mrb[1].mxu1  ;;  %1222 = vrot.lane.b32.xlu1 %v3860_v57, %s3383_s4  ;;  %v2695_v60 = vpop.f32.mrb[1].mxu0  ;;  %2709 = vmatprep.mubr.msk.f32.mxu1 %vm1018_vm6, %v3860_v57 }
 0x40b   : > { %v3865_v61 = vpop.f32.mrb[2].mxu0  ;;  %v1014_v62 = vpop.f32.mrb[2].mxu1 }
 0x40c   : > { %v2696_v0 = vpop.f32.mrb[3].mxu0  ;;  %v2704_v1 = vpop.f32.mrb[3].mxu1  ;;  %v3873_v2 = vpack.i.bf16 %v1014_v62, %v1011_v58  ;;  %v2805_v3 = vpack.c.bf16 %v1014_v62, %v1011_v58 }
 0x40e   : > { %2994 = vrot.lane.b32.xlu0 %v3873_v2, %s3383_s4  ;;  %2807 = vmatprep.subr.msk.bf16.mxu1 %vm3869_vm7, %v2805_v3 }
 0x40f   : > { %1224 = vrot.lane.b32.xlu1 %v3865_v61, %s3383_s4  ;;  %2810 = vmatpush3.bf16.xpose.msk.msra.mxu1 %vm3869_vm7, %v2805_v3 }
 0x416   : > { %2710 = vmatmul.mubr.msk.f32.vlgmr.msra.gmra.mrb[4].mxu1 %vm1018_vm6, %v3865_v61 }
 0x47c   : > { %v1223_v4 = vpop.permute.xlu1 %1222 }
 0x47d   : > { %2723 = vmatprep.mubr.msk.f32.mxu0 %vm1018_vm6, %v1223_v4 }
 0x480   : > { %v2995_v5 = vpop.permute.xlu0 %2994 }
 0x481   : > { %v2997_v6 = vunpack.i.h.bf16 %v2995_v5  ;;  %v2996_v7 = vunpack.i.l.bf16 %v2995_v5  ;;  %v1225_v9 = vpop.permute.xlu1 %1224 }
 0x483   : > { %v2817_v8 = vpack.c.bf16 %v2997_v6, %v2996_v7  ;;  %v904_v7 = vld [vmem:[%s3821_s2 + $0x4] sm:$0xf] }
 0x485   : > { %2819 = vmatprep.subr.msk.bf16.mxu0 %vm3869_vm7, %v2817_v8 }
 0x486   : > { %2822 = vmatpush3.bf16.xpose.msk.msra.mxu0 %vm3869_vm7, %v2817_v8 }
 0x487   : > { %2739 = vmatprep.subr.bf16.mxu0 %v3381_v32 }
 0x48d   : > { %2724 = vmatmul.mubr.msk.f32.vlgmr.msra.gmra.mrb[4].mxu0 %vm1018_vm6, %v1225_v9 }
 0x48e   : > { %2741 = vmatprep.mubr.msk.bf16.mxu0 %vm3382_vm5, %v3381_v32 }
 0x4e9   : > { %v2711_v10 = vpop.f32.mrb[4].mxu1 }
 0x4ea   : > { %v1107_v11 = vmul.f32 0.35355338, %v2711_v10  ;;  %v1097_v12 = vpop.f32.mrb[5].mxu1 }
 0x4eb   : > { %v1106_v13 = vmul.f32 0.35355338, %v1097_v12  ;;  %v1431_v12 = vsel %vm1429_vm13, %v904_v7, 0 }
 0x4ec   : > { %v1113_v14 = vsel %vm1112_vm8, %v1107_v11, -inf }
 0x4ed   : > { %1114 = vmax.xlane.f32.xlu0 %v1113_v14  ;;  %v1109_v15 = vsel %vm1108_vm9, %v1106_v13, -inf  ;;  %v903_v14 = vld [vmem:[%s3821_s2] sm:$0xf] }
 0x4ee   : > { %1110 = vmax.xlane.f32.xlu1 %v1109_v15  ;;  %v1478_v15 = vsel %vm1429_vm13, %v903_v14, 0 }
 0x4ef   : > { %2740 = vmatpush3.bf16.msra.mxu0 %v1478_v15 }
 0x560   : > { %v2725_v18 = vpop.f32.mrb[4].mxu0 }
 0x561   : > { %v1304_v19 = vpop.f32.mrb[5].mxu0  ;;  %v1314_v21 = vmul.f32 0.35355338, %v2725_v18 }
 0x562   : > { %v1313_v20 = vmul.f32 0.35355338, %v1304_v19 }
 0x563   : > { %v1318_v23 = vsel %vm1112_vm8, %v1314_v21, -inf }
 0x564   : > { %v1315_v22 = vsel %vm1108_vm9, %v1313_v20, -inf }
 0x565   : > { %1316 = vmax.xlane.f32.xlu0 %v1315_v22 }
 0x569   : > { %1319 = vmax.xlane.f32.xlu0 %v1318_v23 }
 0x57a   : > { %v1115_v24 = vpop.xlane.xlu0 %1114 }
 0x57b   : > { %v1117_v25 = vsub.f32 %v1107_v11, %v1115_v24  ;;  %v1111_v26 = vpop.xlane.xlu1 %1110 }
 0x57c   : > { %v1116_v27 = vsub.f32 %v1106_v13, %v1111_v26 }
 0x57d   : > { %v1120_v28 = vmul.f32 1.442695, %v1117_v25 }
 0x57e   : > { %v1118_v29 = vmul.f32 1.442695, %v1116_v27 }
 0x57f   : > { %3042 = vpow2.f32 %v1120_v28 }
 0x580   : > { %3044 = vpow2.f32 %v1118_v29 }
 0x589   : > { %v3043_v30 = vpop.eup %3042 }
 0x58a   : > { %v3045_v31 = vpop.eup %3044  ;;  %v1125_v33 = vsel %vm1112_vm8, %v3043_v30, 0.0 }
 0x58b   : > { %1126 = vadd.xlane.f32.xlu0 %v1125_v33  ;;  %v1122_v34 = vsel %vm1108_vm9, %v3045_v31, 0.0 }
 0x58c   : > { %1123 = vadd.xlane.f32.xlu1 %v1122_v34 }
 0x5f2   : > { %v1317_v35 = vpop.xlane.xlu0 %1316 }
 0x5f3   : > { %v1321_v36 = vsub.f32 %v1313_v20, %v1317_v35 }
 0x5f5   : > { %v1323_v37 = vmul.f32 1.442695, %v1321_v36 }
 0x5f6   : > { %v1320_v38 = vpop.xlane.xlu0 %1319 }
 0x5f7   : > { %3046 = vpow2.f32 %v1323_v37  ;;  %v1322_v39 = vsub.f32 %v1314_v21, %v1320_v38 }
 0x5f9   : > { %v1325_v40 = vmul.f32 1.442695, %v1322_v39 }
 0x5fb   : > { %3048 = vpow2.f32 %v1325_v40 }
 0x601   : > { %v3047_v41 = vpop.eup %3046 }
 0x602   : > { %v1327_v43 = vsel %vm1108_vm9, %v3047_v41, 0.0 }
 0x603   : > { %1328 = vadd.xlane.f32.xlu1 %v1327_v43 }
 0x605   : > { %v3049_v45 = vpop.eup %3048 }
 0x606   : > { %v1330_v46 = vsel %vm1112_vm8, %v3049_v45, 0.0 }
 0x607   : > { %1331 = vadd.xlane.f32.xlu0 %v1330_v46 }
 0x614   : > { %2999 = vrot.lane.b32.xlu1 %v3873_v2, %s3384_s8 }
 0x618   : > { %3009 = vrot.lane.b32.xlu1 %v3873_v2, %s3385_s9  ;;  %v1127_v50 = vpop.xlane.xlu0 %1126 }
 0x619   : > { %v1124_v47 = vpop.xlane.xlu1 %1123 }
 0x61a   : > { %3050 = vrcp.f32 %v1124_v47 }
 0x61b   : > { %3052 = vrcp.f32 %v1127_v50 }
 0x61c   : > { %1521 = vrot.lane.b32.xlu1 %v3860_v57, %s3385_s9 }
 0x61d   : > { %3004 = vrot.lane.b32.xlu0 %v3873_v2, %s3386_s19 }
 0x620   : > { %1523 = vrot.lane.b32.xlu1 %v3865_v61, %s3385_s9 }
 0x624   : > { %v3051_v48 = vpop.eup %3050 }
 0x625   : > { %v1130_v49 = vmul.f32 %v3051_v48, %v3045_v31  ;;  %v3053_v59 = vpop.eup %3052 }
 0x626   : > { %v1131_v3 = vmul.f32 %v3053_v59, %v3043_v30 }
 0x627   : > { %2716 = vmatprep.mubr.msk.f32.mxu1 %vm1108_vm9, %v1130_v49 }
 0x690   : > { %v1329_v51 = vpop.xlane.xlu1 %1328 }
 0x691   : > { %3054 = vrcp.f32 %v1329_v51 }
 0x694   : > { %v3000_v52 = vpop.permute.xlu1 %2999  ;;  %v1332_v53 = vpop.xlane.xlu0 %1331 }
 0x695   : > { %v3002_v54 = vunpack.i.h.bf16 %v3000_v52  ;;  %v3001_v55 = vunpack.i.l.bf16 %v3000_v52  ;;  %3056 = vrcp.f32 %v1332_v53 }
 0x697   : > { %v2811_v58 = vpack.c.bf16 %v3002_v54, %v3001_v55 }
 0x698   : > { %v3005_v60 = vpop.permute.xlu0 %3004  ;;  %v3010_v4 = vpop.permute.xlu1 %3009 }
 0x699   : > { %v3007_v62 = vunpack.i.h.bf16 %v3005_v60  ;;  %v3006_v0 = vunpack.i.l.bf16 %v3005_v60  ;;  %2813 = vmatprep.subr.msk.bf16.mxu1 %vm3906_vm12, %v2811_v58  ;;  %v3012_v8 = vunpack.i.h.bf16 %v3010_v4  ;;  %v3011_v9 = vunpack.i.l.bf16 %v3010_v4 }
 0x69a   : > { %2816 = vmatpush3.bf16.msk.msra.mxu1 %vm3906_vm12, %v2811_v58 }
 0x69b   : > { %v3055_v1 = vpop.eup %3054  ;;  %v2823_v5 = vpack.c.bf16 %v3007_v62, %v3006_v0  ;;  %v2829_v13 = vpack.c.bf16 %v3012_v8, %v3011_v9 }
 0x69c   : > { %v1335_v6 = vmul.f32 %v3055_v1, %v3047_v41  ;;  %v1522_v24 = vpop.permute.xlu1 %1521 }
 0x69d   : > { %2717 = vmatmul.mubr.msk.f32.vlgmr.msra.gmra.mrb[6].mxu1 %vm1108_vm9, %v1131_v3  ;;  %2825 = vmatprep.subr.msk.bf16.mxu1 %vm3906_vm12, %v2823_v5 }
 0x69e   : > { %2828 = vmatpush3.bf16.msk.msra.mxu1 %vm3906_vm12, %v2823_v5  ;;  %2730 = vmatprep.mubr.msk.f32.mxu1 %vm1108_vm9, %v1335_v6 }
 0x69f   : > { %v3057_v10 = vpop.eup %3056  ;;  %2733 = vmatprep.subr.bf16.mxu1 %v3381_v32 }
 0x6a0   : > { %v1336_v11 = vmul.f32 %v3057_v10, %v3049_v45  ;;  %v1524_v25 = vpop.permute.xlu1 %1523  ;;  %v905_v10 = vld [vmem:[%s3821_s2 + $0x8] sm:$0xf] }
 0x6a2   : > { %2731 = vmatmul.mubr.msk.f32.vlgmr.msra.gmra.mrb[8].mxu1 %vm1108_vm9, %v1336_v11  ;;  %v1729_v11 = vsel %vm1429_vm13, %v905_v10, 0 }
 0x6a3   : > { %2734 = vmatpush3.bf16.msra.mxu1 %v1431_v12  ;;  %2735 = vmatprep.mubr.msk.bf16.mxu1 %vm3382_vm5, %v3381_v32 }
 0x6a4   : > { %2831 = vmatprep.subr.msk.bf16.mxu1 %vm3869_vm7, %v2829_v13 }
 0x770   : > { %v2718_v18 = vpop.f32.mrb[6].mxu1 }
 0x771   : > { %v1212_v19 = vpop.f32.mrb[7].mxu1 }
 0x772   : > { %v1221_v20 = vpack.c.bf16 %v2718_v18, %v1212_v19 }
 0x774   : > { %2742 = vmatmul.mubr.msk.bf16.vlgmr.msra.gmra.mrb[8].mxu0 %vm1018_vm6, %v1221_v20 }
 0x775   : > { %v2732_v21 = vpop.f32.mrb[8].mxu1 }
 0x776   : > { %v1416_v22 = vpop.f32.mrb[9].mxu1 }
 0x777   : > { %v1425_v23 = vpack.c.bf16 %v2732_v21, %v1416_v22 }
 0x779   : > { %2736 = vmatmul.mubr.msk.bf16.vlgmr.msra.gmra.mrb[12].mxu1 %vm1018_vm6, %v1425_v23 }
 0x77a   : > { %2834 = vmatpush3.bf16.xpose.msk.msra.mxu1 %vm3869_vm7, %v2829_v13  ;;  %2749 = vmatprep.mubr.msk.f32.mxu1 %vm1018_vm6, %v1522_v24 }
 0x77b   : > { %2759 = vmatprep.subr.bf16.mxu1 %v3381_v32 }
 0x781   : > { %2750 = vmatmul.mubr.msk.f32.vlgmr.msra.gmra.mrb[10].mxu1 %vm1018_vm6, %v1524_v25 }
 0x782   : > { %2761 = vmatprep.mubr.msk.bf16.mxu1 %vm3382_vm5, %v3381_v32  ;;  %2760 = vmatpush3.bf16.msra.mxu1 %v1729_v11 }
 0x847   : > { %v1514_v26 = vpop.f32.mrb[8].mxu0 }
 0x848   : > { %v2743_v27 = vpop.f32.mrb[9].mxu0 }
 0x849   : > { %v1517_v28 = vpop.f32.mrb[10].mxu0 }
 0x84a   : > { %v2744_v29 = vpop.f32.mrb[11].mxu0 }
 0x84c   : > { %v1467_v30 = vpop.f32.mrb[12].mxu1 }
 0x84d   : > { %v3939_v31 = vadd.f32 %v1514_v26, %v1467_v30  ;;  %v2737_v33 = vpop.f32.mrb[13].mxu1 }
 0x84e   : > { %v1470_v34 = vpop.f32.mrb[14].mxu1 }
 0x84f   : > { %v3941_v35 = vadd.f32 %v1517_v28, %v1470_v34  ;;  %v2738_v36 = vpop.f32.mrb[15].mxu1 }
 0x854   : > { %v2751_v37 = vpop.f32.mrb[10].mxu1 }
 0x855   : > { %v1613_v38 = vmul.f32 0.35355338, %v2751_v37  ;;  %v1603_v39 = vpop.f32.mrb[11].mxu1 }
 0x856   : > { %v1612_v40 = vmul.f32 0.35355338, %v1603_v39 }
 0x857   : > { %v1617_v41 = vsel %vm1112_vm8, %v1613_v38, -inf }
 0x858   : > { %1618 = vmax.xlane.f32.xlu1 %v1617_v41  ;;  %v1614_v43 = vsel %vm1108_vm9, %v1612_v40, -inf }
 0x859   : > { %1615 = vmax.xlane.f32.xlu0 %v1614_v43 }
 0x869   : > { %3019 = vrot.lane.b32.xlu1 %v3873_v2, %s3388_s23 }
 0x86d   : > { %1774 = vrot.lane.b32.xlu1 %v3860_v57, %s3388_s23 }
 0x871   : > { %1776 = vrot.lane.b32.xlu1 %v3865_v61, %s3388_s23 }
 0x8e5   : > { %v1619_v45 = vpop.xlane.xlu1 %1618 }
 0x8e6   : > { %v1621_v46 = vsub.f32 %v1613_v38, %v1619_v45  ;;  %v1616_v47 = vpop.xlane.xlu0 %1615 }
 0x8e7   : > { %v1620_v48 = vsub.f32 %v1612_v40, %v1616_v47 }
 0x8e8   : > { %v1624_v49 = vmul.f32 1.442695, %v1621_v46 }
 0x8e9   : > { %v1622_v50 = vmul.f32 1.442695, %v1620_v48  ;;  %v3020_v55 = vpop.permute.xlu1 %3019 }
 0x8ea   : > { %3058 = vpow2.f32 %v1624_v49  ;;  %v3022_v59 = vunpack.i.h.bf16 %v3020_v55  ;;  %v3021_v60 = vunpack.i.l.bf16 %v3020_v55 }
 0x8eb   : > { %3060 = vpow2.f32 %v1622_v50  ;;  %v906_v50 = vld [vmem:[%s3821_s2 + $0xc] sm:$0xf] }
 0x8ec   : > { %v2841_v3 = vpack.c.bf16 %v3022_v59, %v3021_v60 }
 0x8ed   : > { %v1775_v8 = vpop.permute.xlu1 %1774 }
 0x8f1   : > { %v1777_v9 = vpop.permute.xlu1 %1776 }
 0x8f4   : > { %v3059_v51 = vpop.eup %3058 }
 0x8f5   : > { %v1629_v52 = vsel %vm1112_vm8, %v3059_v51, 0.0  ;;  %v3061_v53 = vpop.eup %3060 }
 0x8f6   : > { %1630 = vadd.xlane.f32.xlu0 %v1629_v52  ;;  %v1626_v54 = vsel %vm1108_vm9, %v3061_v53, 0.0 }
 0x8fa   : > { %1627 = vadd.xlane.f32.xlu0 %v1626_v54  ;;  %v2602_v54 = vld [vmem:[%s648_s0] ss:$0 sm:$0xff] }
 0x910   : > { %3014 = vrot.lane.b32.xlu0 %v3873_v2, %s3389_s30 }
 0x983   : > { %v1631_v57 = vpop.xlane.xlu0 %1630 }
 0x984   : > { %3062 = vrcp.f32 %v1631_v57 }
 0x987   : > { %v1628_v61 = vpop.xlane.xlu0 %1627 }
 0x988   : > { %3064 = vrcp.f32 %v1628_v61 }
 0x98b   : > { %v3015_v58 = vpop.permute.xlu0 %3014 }
 0x98c   : > { %v3017_v62 = vunpack.i.h.bf16 %v3015_v58  ;;  %v3016_v0 = vunpack.i.l.bf16 %v3015_v58 }
 0x98e   : > { %v2835_v1 = vpack.c.bf16 %v3017_v62, %v3016_v0  ;;  %v3063_v4 = vpop.eup %3062 }
 0x98f   : > { %v1635_v7 = vmul.f32 %v3063_v4, %v3059_v51  ;;  %v1982_v51 = vsel %vm1429_vm13, %v906_v50, 0 }
 0x990   : > { %2837 = vmatprep.subr.msk.bf16.mxu0 %vm3906_vm12, %v2835_v1 }
 0x991   : > { %2840 = vmatpush3.bf16.msk.msra.mxu0 %vm3906_vm12, %v2835_v1 }
 0x992   : > { %v3065_v5 = vpop.eup %3064  ;;  %2843 = vmatprep.subr.msk.bf16.mxu0 %vm3869_vm7, %v2841_v3 }
 0x993   : > { %v1634_v6 = vmul.f32 %v3065_v5, %v3061_v53 }
 0x995   : > { %2756 = vmatprep.mubr.msk.f32.mxu0 %vm1108_vm9, %v1634_v6 }
 0x996   : > { %2757 = vmatmul.mubr.msk.f32.vlgmr.msra.gmra.mrb[6].mxu0 %vm1108_vm9, %v1635_v7 }
 0x997   : > { %2769 = vmatprep.mubr.msk.f32.mxu0 %vm1018_vm6, %v1775_v8 }
 0x99a   : > { %2846 = vmatpush3.bf16.xpose.msk.msra.mxu0 %vm3869_vm7, %v2841_v3 }
 0x99b   : > { %2779 = vmatprep.subr.bf16.mxu0 %v3381_v32 }
 0x9a1   : > { %2770 = vmatmul.mubr.msk.f32.vlgmr.msra.gmra.mrb[12].mxu0 %vm1018_vm6, %v1777_v9 }
 0x9a2   : > { %2781 = vmatprep.mubr.msk.bf16.mxu0 %vm3382_vm5, %v3381_v32  ;;  %2780 = vmatpush3.bf16.msra.mxu0 %v1982_v51 }
 0x9a3   : > { %2793 = vmatprep.subr.bf16.mxu0 %v3381_v32 }
 0xa69   : > { %v2758_v12 = vpop.f32.mrb[6].mxu0 }
 0xa6a   : > { %v1715_v13 = vpop.f32.mrb[7].mxu0 }
 0xa6b   : > { %v1724_v14 = vpack.c.bf16 %v2758_v12, %v1715_v13 }
 0xa6d   : > { %2762 = vmatmul.mubr.msk.bf16.vlgmr.msra.gmra.mrb[16].mxu1 %vm1018_vm6, %v1724_v14  ;;  %v3032_v14 = vld [vmem:[%s3800_s3] sm:$0xff]  }
 0xa74   : > { %v2771_v15 = vpop.f32.mrb[12].mxu0 }
 0xa75   : > { %v1866_v63 = vmul.f32 0.35355338, %v2771_v15  ;;  %v1856_v18 = vpop.f32.mrb[13].mxu0  ;;  %v3033_v15 = vld [vmem:[%s3800_s3 + $0x8] sm:$0xff]  }
 0xa76   : > { %v1865_v19 = vmul.f32 0.35355338, %v1856_v18 }
 0xa77   : > { %v1870_v20 = vsel %vm1112_vm8, %v1866_v63, -inf }
 0xa78   : > { %1871 = vmax.xlane.f32.xlu1 %v1870_v20  ;;  %v1867_v21 = vsel %vm1108_vm9, %v1865_v19, -inf }
 0xa79   : > { %1868 = vmax.xlane.f32.xlu0 %v1867_v21 }
 0xb05   : > { %v1872_v22 = vpop.xlane.xlu1 %1871 }
 0xb06   : > { %v1874_v23 = vsub.f32 %v1866_v63, %v1872_v22  ;;  %v1869_v24 = vpop.xlane.xlu0 %1868 }
 0xb07   : > { %v1873_v25 = vsub.f32 %v1865_v19, %v1869_v24 }
 0xb08   : > { %v1877_v26 = vmul.f32 1.442695, %v1874_v23  ;;  %v2065_v23 = vsub.s32 2, %v3849_v42 }
 0xb09   : > { %v1875_v27 = vmul.f32 1.442695, %v1873_v25 }
 0xb0a   : > { %3066 = vpow2.f32 %v1877_v26  ;;  %v2066_v25 = vrot.slane %v3853_v44, %v2065_v23 }
 0xb0b   : > { %3068 = vpow2.f32 %v1875_v27  ;;  %v2071_v27 = vsub.s32 3, %v3849_v42  ;;  %v3036_v42 = vld [vmem:[%s3814_s20 + $0x10] sm:$0xff]  }
 0xb14   : > { %v3067_v28 = vpop.eup %3066 }
 0xb15   : > { %v1882_v29 = vsel %vm1112_vm8, %v3067_v28, 0.0  ;;  %v3069_v30 = vpop.eup %3068 }
 0xb16   : > { %1883 = vadd.xlane.f32.xlu0 %v1882_v29  ;;  %v1879_v33 = vsel %vm1108_vm9, %v3069_v30, 0.0 }
 0xb1a   : > { %1880 = vadd.xlane.f32.xlu0 %v1879_v33  ;;  %v2072_v33 = vrot.slane %v3853_v44, %v2071_v27  ;;  %v3037_v44 = vld [vmem:[%s3814_s20 + $0x18] sm:$0xff]  }
 0xb30   : > { %3024 = vrot.lane.b32.xlu0 %v3873_v2, %s3390_s10 }
 0xb40   : > { %v1765_v34 = vpop.f32.mrb[16].mxu1 }
 0xb41   : > { %v1772_v36 = vadd.f32 %v1765_v34, %v3939_v31  ;;  %v2763_v37 = vpop.f32.mrb[17].mxu1 }
 0xb42   : > { %v1768_v38 = vpop.f32.mrb[18].mxu1 }
 0xb43   : > { %v1773_v39 = vadd.f32 %v1768_v38, %v3941_v35  ;;  %v2764_v40 = vpop.f32.mrb[19].mxu1 }
 0xb44   : > { %v3035_v40 = vld [vmem:[%s3814_s20 + $0x8] sm:$0xff]  }
 0xba3   : > { %v1884_v41 = vpop.xlane.xlu0 %1883 }
 0xba4   : > { %3070 = vrcp.f32 %v1884_v41  ;;  %v2603_v41 = vld [vmem:[%s755_s24] ss:$0 sm:$0xff] }
 0xba7   : > { %v1881_v43 = vpop.xlane.xlu0 %1880 }
 0xba8   : > { %3072 = vrcp.f32 %v1881_v43 }
 0xbab   : > { %v3025_v45 = vpop.permute.xlu0 %3024 }
 0xbac   : > { %v3027_v46 = vunpack.i.h.bf16 %v3025_v45  ;;  %v3026_v47 = vunpack.i.l.bf16 %v3025_v45 }
 0xbae   : > { %v2847_v48 = vpack.c.bf16 %v3027_v46, %v3026_v47  ;;  %v3071_v2 = vpop.eup %3070 }
 0xbaf   : > { %v1888_v49 = vmul.f32 %v3071_v2, %v3067_v28 }
 0xbb0   : > { %2849 = vmatprep.subr.msk.bf16.mxu1 %vm3906_vm12, %v2847_v48 }
 0xbb1   : > { %2852 = vmatpush3.bf16.msk.msra.mxu1 %vm3906_vm12, %v2847_v48 }
 0xbb2   : > { %v3073_v31 = vpop.eup %3072  ;;  %2785 = vmatprep.subr.bf16.mxu1 %v3381_v32 }
 0xbb3   : > { %v1887_v35 = vmul.f32 %v3073_v31, %v3069_v30 }
 0xbb5   : > { %2776 = vmatprep.mubr.msk.f32.mxu1 %vm1108_vm9, %v1887_v35 }
 0xbb6   : > { %2777 = vmatmul.mubr.msk.f32.vlgmr.msra.gmra.mrb[20].mxu1 %vm1108_vm9, %v1888_v49 }
 0xbb7   : > { %2789 = vmatprep.mubr.msk.bf16.mxu1 %vm3382_vm5, %v3381_v32  ;;  %2786 = vmatpush3.bf16.msra.mxu1 %v3032_v14 }
 0xbb8   : > { %2787 = vmatprep.subr.bf16.mxu1 %v3381_v32 }
 0xbbb   : > { %2788 = vmatpush3.bf16.msra.mxu1 %v3033_v15 }
 0xc89   : > { %v2778_v56 = vpop.f32.mrb[20].mxu1 }
 0xc8a   : > { %v1968_v52 = vpop.f32.mrb[21].mxu1 }
 0xc8b   : > { %v1977_v53 = vpack.c.bf16 %v2778_v56, %v1968_v52 }
 0xc8d   : > { %2782 = vmatmul.mubr.msk.bf16.vlgmr.msra.gmra.mrb[16].mxu0 %vm1018_vm6, %v1977_v53 }
 0xc8e   : > { %2801 = vmatprep.mubr.msk.bf16.mxu0 %vm3382_vm5, %v3381_v32 }
 0xd60   : > { %v2018_v57 = vpop.f32.mrb[16].mxu0 }
 0xd61   : > { %v2025_v61 = vadd.f32 %v2018_v57, %v1772_v36  ;;  %v2783_v55 = vpop.f32.mrb[17].mxu0 }
 0xd62   : > { %v2021_v58 = vpop.f32.mrb[18].mxu0 }
 0xd63   : > { %v2033_v59 = vadd.f32 %v2602_v54, %v2025_v61  ;;  %v2026_v60 = vadd.f32 %v2021_v58, %v1773_v39  ;;  %v2784_v62 = vpop.f32.mrb[19].mxu0  ;;  %v3034_v39 = vld [vmem:[%s3814_s20] sm:$0xff]  }
 0xd64   : > { %2794 = vmatpush3.bf16.msra.mxu0 %v3034_v39 }
 0xd65   : > { %v3994_v0 = vadd.f32 %v2033_v59, %v3825_v16  ;;  %v2034_v1 = vadd.f32 %v2602_v54, %v2026_v60  ;;  %2795 = vmatprep.subr.bf16.mxu0 %v3381_v32 }
 0xd67   : > { %v3997_v3 = vadd.f32 %v2034_v1, %v3827_v17  ;;  %v2037_v4 = vsel %vm854_vm3, %v3994_v0, 0.0 }
 0xd68   : > { %2038 = vadd.xlane.f32.xlu1 %v2037_v4  ;;  %2796 = vmatpush3.bf16.msra.mxu0 %v3035_v40 }
 0xd69   : > { %v2040_v5 = vsel %vm858_vm4, %v3997_v3, 0.0  ;;  %2797 = vmatprep.subr.bf16.mxu0 %v3381_v32 }
 0xd6c   : > { %2041 = vadd.xlane.f32.xlu1 %v2040_v5  ;;  %2798 = vmatpush3.bf16.msra.mxu0 %v3036_v42  ;;  %v2607_v5 = vld [vmem:[%s763_s13] ss:$0 sm:$0xff] }
 0xd6d   : > { %2799 = vmatprep.subr.bf16.mxu0 %v3381_v32 }
 0xd70   : > { %2800 = vmatpush3.bf16.msra.mxu0 %v3037_v44 }
 0xdf5   : > { %v2039_v6 = vpop.xlane.xlu1 %2038 }
 0xdf6   : > { %v2043_v7 = vmul.f32 0.03125, %v2039_v6 }
 0xdf8   : > { %v2045_v8 = vsub.f32 %v3994_v0, %v2043_v7 }
 0xdf9   : > { %v2042_v16 = vpop.xlane.xlu1 %2041 }
 0xdfa   : > { %v2044_v9 = vmul.f32 0.03125, %v2042_v16  ;;  %v2047_v10 = vmul.f32 %v2045_v8, %v2045_v8 }
 0xdfc   : > { %v2046_v17 = vsub.f32 %v3997_v3, %v2044_v9  ;;  %v2049_v11 = vsel %vm854_vm3, %v2047_v10, 0.0 }
 0xdfd   : > { %2050 = vadd.xlane.f32.xlu1 %v2049_v11 }
 0xdfe   : > { %v2048_v12 = vmul.f32 %v2046_v17, %v2046_v17 }
 0xe00   : > { %v2052_v13 = vsel %vm858_vm4, %v2048_v12, 0.0 }
 0xe01   : > { %2053 = vadd.xlane.f32.xlu1 %v2052_v13 }
 0xe8a   : > { %v2051_v63 = vpop.xlane.xlu1 %2050 }
 0xe8b   : > { %v2055_v18 = vmul.f32 0.03125, %v2051_v63 }
 0xe8d   : > { %v2057_v19 = vadd.f32 1e-05, %v2055_v18 }
 0xe8e   : > { %v2054_v20 = vpop.xlane.xlu1 %2053 }
 0xe8f   : > { %3074 = vrsqrt.f32 %v2057_v19  ;;  %v2056_v21 = vmul.f32 0.03125, %v2054_v20 }
 0xe91   : > { %v2058_v22 = vadd.f32 1e-05, %v2056_v21 }
 0xe93   : > { %3076 = vrsqrt.f32 %v2058_v22 }
 0xe99   : > { %v3075_v24 = vpop.eup %3074 }
 0xe9a   : > { %v2061_v26 = vmul.f32 %v3075_v24, %v2045_v8 }
 0xe9c   : > { %v2067_v29 = vmul.f32 %v2066_v25, %v2061_v26 }
 0xe9d   : > { %v3077_v28 = vpop.eup %3076 }
 0xe9e   : > { %v2062_v30 = vmul.f32 %v3077_v28, %v2046_v17  ;;  %v2073_v36 = vadd.f32 %v2072_v33, %v2067_v29 }
 0xea0   : > { %v2068_v34 = vmul.f32 %v2066_v25, %v2062_v30  ;;  %v2614_v30 = vld [vmem:[%s4179_s27] ss:$0 sm:$0xff] (!%p2613_p6) }
 0xea2   : > { %v2074_v37 = vadd.f32 %v2072_v33, %v2068_v34  ;;  %v2615_v34 = vld [vmem:[%s4179_s27 + $0x1] ss:$0 sm:$0xff] (!%p2613_p6) }
 0xea4   : > { %v2079_v38 = vpack.c.bf16 %v2074_v37, %v2073_v36 }
 0xea6   : > { %2790 = vmatmul.mubr.msk.bf16.vlgmr.msra.gmra.mrb[24].mxu1 %vm854_vm3, %v2079_v38 }
 0xf79   : > { %v2136_v43 = vpop.f32.mrb[24].mxu1 }
 0xf7a   : > { %v2137_v45 = vadd.f32 %v2603_v41, %v2136_v43  ;;  %v2791_v46 = vpop.f32.mrb[25].mxu1 }
 0xf7b   : > { %v2139_v47 = vpop.f32.mrb[26].mxu1 }
 0xf7c   : > { %v2143_v48 = vmul.f32 %v2137_v45, %v2137_v45  ;;  %v2140_v2 = vadd.f32 %v2603_v41, %v2139_v47  ;;  %v2792_v31 = vpop.f32.mrb[27].mxu1 }
 0xf7e   : > { %v2145_v35 = vmul.f32 %v2143_v48, %v2137_v45  ;;  %v2144_v49 = vmul.f32 %v2140_v2, %v2140_v2 }
 0xf80   : > { %v2147_v50 = vmul.f32 0.044715, %v2145_v35  ;;  %v2146_v51 = vmul.f32 %v2144_v49, %v2140_v2 }
 0xf82   : > { %v2149_v56 = vadd.f32 %v2147_v50, %v2137_v45  ;;  %v2148_v32 = vmul.f32 0.044715, %v2146_v51 }
 0xf84   : > { %v2151_v52 = vmul.f32 0.7978846, %v2149_v56  ;;  %v2150_v53 = vadd.f32 %v2148_v32, %v2140_v2 }
 0xf86   : > { %3078 = vtanh.f32 %v2151_v52  ;;  %v2152_v54 = vmul.f32 0.7978846, %v2150_v53 }
 0xf88   : > { %3080 = vtanh.f32 %v2152_v54 }
 0xf90   : > { %v3079_v57 = vpop.eup %3078 }
 0xf91   : > { %v2155_v61 = vadd.f32 1.0, %v3079_v57 }
 0xf92   : > { %v3081_v55 = vpop.eup %3080 }
 0xf93   : > { %v2157_v58 = vmul.f32 0.5, %v2155_v61  ;;  %v2156_v59 = vadd.f32 1.0, %v3081_v55 }
 0xf95   : > { %v2158_v60 = vmul.f32 0.5, %v2156_v59  ;;  %v2159_v62 = vmul.f32 %v2157_v58, %v2137_v45 }
 0xf97   : > { %v2160_v1 = vmul.f32 %v2158_v60, %v2140_v2 }
 0xf99   : > { %v2169_v4 = vpack.c.bf16 %v2160_v1, %v2159_v62 }
 0xf9b   : > { %2802 = vmatmul.mubr.msk.bf16.vlgmr.msra.gmra.mrb[20].mxu0 %vm2201_vm14, %v2169_v4 }
0x106e   : > { %v2239_v6 = vpop.f32.mrb[20].mxu0 }
0x106f   : > { %v2240_v7 = vadd.f32 %v2607_v5, %v2239_v6  ;;  %v2803_v8 = vpop.f32.mrb[21].mxu0  ;;  %2253 = sbr.rel (%p2613_p6) target bundleno = 4529 (0x11b1), region = 116 }
0x1070   : > { %v2242_v16 = vpop.f32.mrb[22].mxu0 }
0x1071   : > { %v2246_v9 = vadd.f32 %v2240_v7, %v3994_v0  ;;  %v2243_v10 = vadd.f32 %v2607_v5, %v2242_v16  ;;  %v2804_v17 = vpop.f32.mrb[23].mxu0 }
0x1073   : > { %2248 = vst.msk [vmem:[#allocation2] sm:$0xff] %vm854_vm3, %v2246_v9  ;;  %v2247_v11 = vadd.f32 %v2243_v10, %v3997_v3  ;;  %v2256_v12 = vsel (!%p2613_p6), %vm854_vm3, %v2246_v9, 0.0 }
0x1074   : > { %2257 = vadd.xlane.f32.xlu0 (!%p2613_p6), %v2256_v12 }
0x1075   : > { %2249 = vst.msk [vmem:[#allocation2 + $0x8] sm:$0x1] %vm858_vm4, %v2247_v11  ;;  %v2259_v13 = vsel (!%p2613_p6), %vm858_vm4, %v2247_v11, 0.0 }
0x1078   : > { %2260 = vadd.xlane.f32.xlu0 %v2259_v13 }
0x1101   : > { %v2258_v14 = vpop.xlane.xlu0 %2257 }
0x1102   : > { %v2262_v15 = vmul.f32 0.03125, %v2258_v14 }
0x1104   : > { %v2264_v0 = vsub.f32 %v2246_v9, %v2262_v15 }
0x1105   : > { %v2261_v63 = vpop.xlane.xlu0 %2260 }
0x1106   : > { %v2263_v18 = vmul.f32 0.03125, %v2261_v63  ;;  %v2266_v19 = vmul.f32 %v2264_v0, %v2264_v0 }
0x1108   : > { %v2265_v20 = vsub.f32 %v2247_v11, %v2263_v18  ;;  %v2268_v3 = vsel %vm854_vm3, %v2266_v19, 0.0 }
0x1109   : > { %2269 = vadd.xlane.f32.xlu1 %v2268_v3 }
0x110a   : > { %v2267_v21 = vmul.f32 %v2265_v20, %v2265_v20 }
0x110c   : > { %v2271_v22 = vsel %vm858_vm4, %v2267_v21, 0.0 }
0x110d   : > { %2272 = vadd.xlane.f32.xlu1 %v2271_v22 }
0x1196   : > { %v2270_v23 = vpop.xlane.xlu1 %2269 }
0x1197   : > { %v2274_v24 = vmul.f32 0.03125, %v2270_v23 }
0x1199   : > { %v2276_v25 = vadd.f32 1e-05, %v2274_v24 }
0x119a   : > { %v2273_v26 = vpop.xlane.xlu1 %2272 }
0x119b   : > { %3082 = vrsqrt.f32 %v2276_v25  ;;  %v2275_v27 = vmul.f32 0.03125, %v2273_v26 }
0x119d   : > { %v2277_v28 = vadd.f32 1e-05, %v2275_v27 }
0x119f   : > { %3084 = vrsqrt.f32 %v2277_v28 }
0x11a5   : > { %v3083_v29 = vpop.eup %3082 }
0x11a6   : > { %v2280_v33 = vmul.f32 %v3083_v29, %v2264_v0 }
0x11a8   : > { %v2286_v36 = vmul.f32 %v2614_v30, %v2280_v33 }
0x11a9   : > { %v3085_v37 = vpop.eup %3084 }
0x11aa   : > { %v2292_v38 = vadd.f32 %v2615_v34, %v2286_v36  ;;  %v2281_v39 = vmul.f32 %v3085_v37, %v2265_v20 }
0x11ac   : > { %2294 = vst.msk [vmem:[%s3819_s1] sm:$0xff] %vm854_vm3, %v2292_v38  ;;  %v2287_v40 = vmul.f32 %v2614_v30, %v2281_v39 }
0x11ae   : > { %v2293_v42 = vadd.f32 %v2615_v34, %v2287_v40 }
0x11b0   : > { %2295 = vst.msk [vmem:[%s3819_s1 + $0x8] sm:$0x1] %vm858_vm4, %v2293_v42 }
0x11b1 PF: > { %s28_s25 = sadd.s32 1, %s3366_s25   ;;  %s4180_s18 = sld [smem:[#allocation17_spill]] }
0x11b2   : > { %p25_p8 = scmp.ge.s32.totalorder %s28_s25, 6   ;;  %s4181_s19 = sld [smem:[#allocation18_spill]] }
0x11b3   : > { %s4182_s20 = sld [smem:[#allocation25_spill]]  ;;  %s4183_s21 = sld [smem:[#allocation21_spill]] }
0x11b4   : > { %s4184_s22 = sld [smem:[#allocation22_spill]]  ;;  %s4185_s23 = sld [smem:[#allocation23_spill]] }
0x11b5   : > { %s4186_s24 = sld [smem:[#allocation24_spill]]  ;;  %27 = sbr.rel (!%p25_p8) target bundleno = 23 (0x17), region = 186 }
0x11bc   :  { %2317 = vsyncpa [#allocation4], 1 }
0x11bd   :  { %2319 = vsyncpa [#allocation4 + $0x1], 1 }
0x11be   :  { %2320 = vsyncpa [#allocation6], 1 }
0x11bf   :  { %2321 = vsyncpa [#allocation9], 1 }

// kernel: _lambda_.3
= control target key start
LH: loop header
LB: loop body
LE: loop exit
PB: predicated region body
PF: predicated region fallthrough
CT: control target
= control target key end

     0   :  { %s6622_s0 = inlined_call_operand.vmem [shape: f32[2,9,32], index: 0, kind: input, shape index: {}]   ;;  %s6623_s1 = inlined_call_operand.hbm [shape: f32[1,4,32], index: 1, kind: input, shape index: {}]   ;;  %s6624_s2 = inlined_call_operand.hbm [shape: f32[2,6,32], index: 2, kind: input, shape index: {}]   ;;  %s6625_s3 = inlined_call_operand.vmem [shape: bf16[2,32,32], index: 3, kind: input, shape index: {}]   ;;  %s6626_s4 = inlined_call_operand.hbm [shape: f32[2,1,32], index: 4, kind: input, shape index: {}]   ;;  %s6627_s5 = inlined_call_operand.vmem [shape: bf16[2,32,64], index: 5, kind: input, shape index: {}]   ;;  %s6628_s6 = inlined_call_operand.hbm [shape: f32[2,1,64], index: 6, kind: input, shape index: {}]   ;;  %s6629_s7 = inlined_call_operand.vmem [shape: bf16[2,4,8,32], index: 7, kind: input, shape index: {}]   ;;  %s6630_s8 = inlined_call_operand.hbm [shape: f32[2,1,32], index: 8, kind: input, shape index: {}]   ;;  %s6631_s9 = inlined_call_operand.vmem [shape: bf16[2,32,32], index: 9, kind: input, shape index: {}]   ;;  %s6632_s10 = inlined_call_operand.hbm [shape: f32[2,1,32], index: 10, kind: input, shape index: {}]   ;;  %s6633_s11 = inlined_call_operand.vmem [shape: bf16[2,32,64], index: 11, kind: input, shape index: {}]   ;;  %s6634_s12 = inlined_call_operand.hbm [shape: f32[2,1,64], index: 12, kind: input, shape index: {}]   ;;  %s6635_s13 = inlined_call_operand.vmem [shape: bf16[2,4,8,32], index: 13, kind: input, shape index: {}]   ;;  %s6636_s14 = inlined_call_operand.hbm [shape: f32[2,1,32], index: 14, kind: input, shape index: {}]   ;;  %s6637_s15 = inlined_call_operand.vmem [shape: bf16[2,32,64], index: 15, kind: input, shape index: {}]   ;;  %s6638_s16 = inlined_call_operand.hbm [shape: f32[2,1,64], index: 16, kind: input, shape index: {}]   ;;  %s6639_s17 = inlined_call_operand.vmem [shape: bf16[2,64,32], index: 17, kind: input, shape index: {}]   ;;  %s6640_s18 = inlined_call_operand.vmem [shape: f32[2,1,32], index: 18, kind: input, shape index: {}]   ;;  %s6641_s19 = inlined_call_operand.vmem [shape: f32[2,32], index: 19, kind: input, shape index: {}]   ;;  %s6642_s20 = inlined_call_operand.vmem [shape: bf16[32,10], index: 20, kind: input, shape index: {}]   ;;  %s6643_s21 = inlined_call_operand.hbm [shape: f32[1,10], index: 21, kind: input, shape index: {}]   ;;  %s6644_s22 = inlined_call_operand.vmem [shape: bf16[32,10], index: 22, kind: input, shape index: {}]   ;;  %s6645_s23 = inlined_call_operand.vmem [shape: bf16[32,10], index: 23, kind: input, shape index: {}]   ;;  %s6646_s24 = inlined_call_operand.hbm [shape: f32[1,10], index: 24, kind: input, shape index: {}]   ;;  %s6647_s25 = inlined_call_operand.hbm [shape: f32[2,1,10], index: 25, kind: output, shape index: {0}]   ;;  %s6648_s26 = inlined_call_operand.hbm [shape: f32[2,4,10], index: 26, kind: output, shape index: {1}]  }
   0x1   :  { %6696 = sst [smem:[#allocation49_spill]] %s6622_s0 }
   0x2   :  { %6697 = sst [smem:[#allocation50_spill]] %s6623_s1 }
   0x3   :  { %6698 = sst [smem:[#allocation51_spill]] %s6624_s2 }
   0x4   :  { %6699 = sst [smem:[#allocation52_spill]] %s6625_s3 }
   0x5   :  { %6700 = sst [smem:[#allocation53_spill]] %s6626_s4 }
   0x6   :  { %6701 = sst [smem:[#allocation54_spill]] %s6627_s5 }
   0x7   :  { %6702 = sst [smem:[#allocation55_spill]] %s6628_s6 }
   0x8   :  { %6703 = sst [smem:[#allocation56_spill]] %s6629_s7 }
   0x9   :  { %6704 = sst [smem:[#allocation57_spill]] %s6630_s8 }
   0xa   :  { %6705 = sst [smem:[#allocation58_spill]] %s6631_s9 }
   0xb   :  { %6706 = sst [smem:[#allocation59_spill]] %s6632_s10 }
   0xc   :  { %6707 = sst [smem:[#allocation60_spill]] %s6633_s11 }
   0xd   :  { %6708 = sst [smem:[#allocation61_spill]] %s6634_s12 }
   0xe   :  { %6709 = sst [smem:[#allocation62_spill]] %s6635_s13 }
   0xf   :  { %6710 = sst [smem:[#allocation63_spill]] %s6636_s14 }
  0x10   :  { %6711 = sst [smem:[#allocation64_spill]] %s6637_s15 }
  0x11   :  { %6712 = sst [smem:[#allocation65_spill]] %s6638_s16 }
  0x12   :  { %6713 = sst [smem:[#allocation66_spill]] %s6639_s17 }
  0x13   :  { %6714 = sst [smem:[#allocation67_spill]] %s6640_s18 }
  0x14   :  { %6715 = sst [smem:[#allocation68_spill]] %s6641_s19 }
  0x15   :  { %6716 = sst [smem:[#allocation69_spill]] %s6642_s20 }
  0x16   :  { %6717 = sst [smem:[#allocation70_spill]] %s6643_s21 }
  0x17   :  { %6718 = sst [smem:[#allocation71_spill]] %s6644_s22 }
  0x18   :  { %6719 = sst [smem:[#allocation72_spill]] %s6645_s23 }
  0x19   :  { %6720 = sst [smem:[#allocation73_spill]] %s6646_s24 }
  0x1a   :  { %6721 = sst [smem:[#allocation74_spill]] %s6647_s25 }
  0x1b   :  { %6722 = sst [smem:[#allocation75_spill]] %s6648_s26 }
  0x1c   :  { %32 = vsyncpa [#allocation4], 0 }
  0x1d   :  { %33 = vsyncpa [#allocation7], 0 }
  0x1e   :  { %35 = vsyncpa [#allocation7 + $0x1], 0 }
  0x1f   :  { %36 = vsyncpa [#allocation10], 0 }
  0x20   :  { %38 = vsyncpa [#allocation10 + $0x1], 0 }
  0x21   :  { %39 = vsyncpa [#allocation13], 0 }
  0x22   :  { %41 = vsyncpa [#allocation13 + $0x1], 0 }
  0x23   :  { %42 = vsyncpa [#allocation16], 0 }
  0x24   :  { %44 = vsyncpa [#allocation16 + $0x1], 0 }
  0x25   :  { %45 = vsyncpa [#allocation19], 0 }
  0x26   :  { %46 = vsyncpa [#allocation5], 0 }
  0x27   :  { %48 = vsyncpa [#allocation5 + $0x1], 0 }
  0x28   :  { %49 = vsyncpa [#allocation23], 0 }
  0x29   :  { %51 = vsyncpa [#allocation23 + $0x1], 0  ;;  %s5648_s27 = smov 0   ;;  %s5650_s3 = smov 0  }
  0x2a   :  { %s5652_s7 = smov 0   ;;  %s5654_s28 = smov 0  }
  0x2b   :  { %s5656_s8 = smov 0   ;;  %s5658_s4 = smov 0  }
  0x2c   :  { %s5660_s29 = smov 0   ;;  %s5662_s0 = smov 0  }
  0x2d   :  { %s5664_s9 = smov 0   ;;  %s5666_s30 = smov 0  }
  0x2e   :  { %s5668_s2 = smov 0  }
  0x2f LB: > { %6723 = sst [smem:[#allocation32_spill]] %s5445_s27  ;;  %s5702_s5 = sadd.s32 4294967295, %s5485_s2   ;;  %s5485_s2 = sphi %s5668_s2, %s57_s2   ;;  %s5481_s30 = sphi %s5666_s30, %s6837_s30   ;;  %s5477_s9 = sphi %s5664_s9, %s6836_s9   ;;  %s5473_s0 = sphi %s5662_s0, %s6835_s0   ;;  %s5469_s29 = sphi %s5660_s29, %s6834_s29   ;;  %s5465_s4 = sphi %s5658_s4, %s6833_s4   ;;  %s5461_s8 = sphi %s5656_s8, %s6832_s8   ;;  %s5457_s28 = sphi %s5654_s28, %s6831_s28   ;;  %s5453_s7 = sphi %s5652_s7, %s6830_s7   ;;  %s5449_s3 = sphi %s5650_s3, %s6829_s3   ;;  %s5445_s27 = sphi %s5648_s27, %s6828_s27  }
  0x30   : > { %6724 = sst [smem:[#allocation33_spill]] %s5449_s3  ;;  %s4228_s10 = sadd.s32 4294967294, %s5485_s2  }
  0x31   : > { %6725 = sst [smem:[#allocation34_spill]] %s5453_s7  ;;  %p130_p0 = scmp.ne.s32.totalorder %s5465_s4, %s5461_s8 }
  0x32   : > { %6726 = sst [smem:[#allocation35_spill]] %s5461_s8  ;;  %p131_p1 = scmp.eq.s32.totalorder %s5485_s2, 0 }
  0x33   : > { %6727 = sst [smem:[#allocation36_spill]] %s5465_s4  ;;  %p136_p2 = scmp.ne.s32.totalorder %s5461_s8, %s5457_s28 }
  0x34   : > { %6728 = sst [smem:[#allocation37_spill]] %s5469_s29  ;;  %p6665_p3 = scmp.eq.s32.totalorder %s5702_s5, 0 }
  0x35   : > { %6729 = sst [smem:[#allocation38_spill]] %s5473_s0  ;;  %p5710_p4 = por %p131_p1, %p130_p0 }
  0x36   : > { %6730 = sst [smem:[#allocation39_spill]] %s5477_s9  ;;  %p5717_p5 = por %p6665_p3, %p136_p2 }
  0x37   : > { %6731 = sst [smem:[#allocation40_spill]] %s5481_s30  ;;  %p701_p6 = scmp.ne.s32.totalorder %s5453_s7, %s5449_s3 }
  0x38   : > { %6732 = sst [smem:[#allocation41_spill]] %s5485_s2  ;;  %p702_p7 = scmp.eq.s32.totalorder %s5702_s5, 3 }
  0x39   : > { %s6734_s26 = scalar_select %p5717_p5, 1, 0 }
  0x3a   : > { %p707_p8 = scmp.ne.s32.totalorder %s5449_s3, %s5445_s27  ;;  %p708_p9 = scmp.eq.s32.totalorder %s4228_s10, 3 }
  0x3b   : > { %p4229_p10 = scmp.ge.s32.totalorder %s5485_s2, 1  ;;  %p5727_p11 = por %p702_p7, %p701_p6 }
  0x3c   : > { %p741_p12 = scmp.lt.s32.totalorder %s5485_s2, 5  ;;  %p5732_p13 = por %p708_p9, %p707_p8 }
  0x3d   : > { %s6735_s28 = scalar_select %p5727_p11, 1, 0 }
  0x3e   : > { %s6737_s25 = scalar_select %p5732_p13, 1, 0 }
  0x3f   : > { %6736 = sst [smem:[#allocation42_spill]] %s6735_s28  ;;  %p5736_p0 = pnand %p4229_p10, %p741_p12 }
  0x40   : > { %6738 = sst [smem:[#allocation43_spill]] %s6737_s25  ;;  %s5487_s22 = smov [#allocation18]  }
  0x41   : > { %s6739_s1 = scalar_select %p5736_p0, 1, 0 }
  0x42   : > { %s771_s19 = sshll.u32 %s5487_s22, 4  ;;  %p4736_p1 = pneg %p5736_p0  ;;  %s772_s19 = int_to_ptr.vmem [resolvable:$true] %s771_s19 }
  0x43   : > { %p4781_p2 = scmp.lt.s32.totalorder %s5485_s2, 4  ;;  %s6742_s21 = sld [smem:[#allocation70_spill]] }
  0x44   : > { %p5745_p6 = pnand %p4736_p1, %p6665_p3 }
  0x45   : > { %p5751_p7 = pnand %p4781_p2, %p5710_p4 }
  0x46   : > { %s6740_s10 = scalar_select %p5745_p6, 1, 0 }
  0x47   : > { %s6741_s25 = scalar_select %p5751_p7, 1, 0 }
  0x48   : > { %p5763_p9 = pneg %p5745_p6 }
  0x49   : > { %s4987_s23 = scalar_lea.hbm %s6742_s21, 16 }
  0x4a   : > { %p4988_p8 = scmp.ne.s32.totalorder %s6742_s21, %s4987_s23  ;;  %p4994_p12 = scmp.lt.u32.totalorder %s4987_s23, %s6742_s21 }
  0x4b   : > { %s6743_s18 = scalar_select %p5763_p9, 1, 0 }
  0x4c   : > { %p4990_p10 = pnand %p5763_p9, %p4988_p8 }
  0x4e   : > { %p4991_p4 = pneg %p4990_p10 }
  0x50   : > { %p4996_p1 = pnand %p4994_p12, %p4991_p4 }
  0x52   : > { %4999 = shalt.err (!%p4996_p1)
}
  0x53   : > { %s5000_s27 = scalar_lea.vmem %s772_s19, 16  ;;  %s5007_s20 = scalar_lea.vmem %s772_s19, 32 }
  0x54   : > { %p5001_p2 = scmp.ne.s32.totalorder %s772_s19, %s5000_s27  ;;  %p5008_p11 = scmp.lt.s32.totalorder %s772_s19, %s772_s19 }
  0x55   : > { %p5009_p5 = scmp.lt.s32.totalorder %s5007_s20, %s5000_s27 }
  0x56   : > { %p5003_p3 = pnand %p5001_p2, %p5763_p9 }
  0x57   : > { %p5010_p0 = por %p5009_p5, %p5008_p11 }
  0x58   : > { %p5004_p13 = pneg %p5003_p3 }
  0x5a   : > { %p5011_p7 = pnand %p5010_p0, %p5004_p13 }
  0x5c   : > { %5014 = shalt.err (!%p5011_p7)
}
  0x5d   : > { %4742 = dma.hbm_to_vmem [thread:$0]  (!%p5745_p6), %s6742_s21, 16, %s772_s19, [#allocation19]  }
  0x5e   : > { %s66_s17 = sadd.s32 1, %s5477_s9  ;;  %s69_s23 = sadd.s32 1, %s5481_s30 }
  0x5f   : > { %p67_p3 = scmp.ge.s32.totalorder %s66_s17, 2  ;;  %s123_s6 = sadd.s32 1, %s5465_s4 }
  0x60   : > { %s5783_s27 = sand.u32 1, %s5485_s2   ;;  %s5791_s28 = sand.u32 1, %s5465_s4  }
  0x61   : > { %s6839_s17 = smov (%p67_p3, %s66_s17), 0  ;;  %s6841_s23 = smov (!%p67_p3, %s69_s23), %s5481_s30 }
  0x62   : > { %6744 = sst [smem:[#allocation44_spill]] %s6839_s17  ;;  %s120_s20 = ssub.s32 %s5477_s9, %s6839_s17 }
  0x63   : > { %p71_p5 = scmp.ge.s32.totalorder %s6841_s23, 2  ;;  %p121_p11 = scmp.eq.s32.totalorder %s120_s20, 0 }
  0x64   : > { %s4235_s19 = sshll.u32 %s5477_s9, 7  ;;  %s4234_s2 = sshll.u32 %s5791_s28, 3 }
  0x65   : > { %s6843_s23 = smov (%p71_p5, %s6841_s23), 0  ;;  %s6747_s11 = sld [smem:[#allocation51_spill]] }
  0x66   : > { %6745 = sst [smem:[#allocation45_spill]] %s6843_s23  ;;  %s688_s21 = ssub.s32 %s5481_s30, %s6843_s23 }
  0x67   : > { %s5797_s22 = scalar_select %p121_p11, %s5465_s4, %s123_s6  }
  0x68   : > { %p689_p13 = scmp.eq.s32.totalorder %s688_s21, 0  ;;  %s811_s20 = scalar_lea.vmem [#allocation6], %s4234_s2 }
  0x69   : > { %6746 = sst [smem:[#allocation46_spill]] %s5797_s22  ;;  %s818_s29 = sshll.u32 %s811_s20, 4  ;;  %s5812_s29 = int_to_ptr.vmem [resolvable:$true] %s818_s29 }
  0x6a   : > { %s6748_s0 = sadd.s32 1, %s5453_s7  ;;  %s5815_s6 = sshll.u32 %s5477_s9, 4 }
  0x6b   : > { %s5805_s17 = scalar_lea.hbm %s6747_s11, %s4235_s19  ;;  %p6750_p7 = scmp.ne.s32.totalorder %s6741_s25, 0 }
  0x6c   : > { %s5810_s3 = scalar_select %p689_p13, %s5453_s7, %s6748_s0  }
  0x6d   : > { %s5015_s21 = scalar_lea.hbm %s5805_s17, 128  ;;  %p5822_p8 = pneg %p6750_p7 }
  0x6e   : > { %6749 = sst [smem:[#allocation47_spill]] %s5810_s3  ;;  %p5016_p0 = scmp.ne.s32.totalorder %s5805_s17, %s5015_s21 }
  0x6f   : > { %s6751_s13 = scalar_select %p5822_p8, 1, 0 }
  0x70   : > { %p5018_p10 = pnand %p5822_p8, %p5016_p0  ;;  %s5020_s0 = scalar_lea.hbm %s6747_s11, 256 }
  0x71   : > { %p5021_p12 = scmp.lt.u32.totalorder %s5805_s17, %s6747_s11  ;;  %p5022_p1 = scmp.lt.u32.totalorder %s5020_s0, %s5015_s21 }
  0x72   : > { %p5019_p4 = pneg %p5018_p10  ;;  %p5024_p3 = scmp.lt.u32.totalorder %s5015_s21, %s5805_s17 }
  0x73   : > { %p5023_p2 = por %p5022_p1, %p5021_p12 }
  0x75   : > { %p5025_p5 = por %p5024_p3, %p5023_p2 }
  0x77   : > { %p5026_p11 = pnand %p5025_p5, %p5019_p4 }
  0x79   : > { %5029 = shalt.err (!%p5026_p11)
}
  0x7a   : > { %s5030_s23 = scalar_lea.vmem %s5812_s29, 128  ;;  %s5488_s15 = smov [#allocation6]  }
  0x7b   : > { %p5031_p13 = scmp.ne.s32.totalorder %s5812_s29, %s5030_s23  ;;  %s5035_s2 = sshll.u32 %s5488_s15, 4  ;;  %s5036_s2 = int_to_ptr.vmem [resolvable:$false] %s5035_s2 }
  0x7c   : > { %s5037_s19 = scalar_lea.vmem %s5036_s2, 256  ;;  %p5038_p6 = scmp.lt.s32.totalorder %s5812_s29, %s5036_s2 }
  0x7d   : > { %p5033_p0 = pnand %p5031_p13, %p5822_p8  ;;  %p5039_p9 = scmp.lt.s32.totalorder %s5037_s19, %s5030_s23 }
  0x7f   : > { %p5034_p10 = pneg %p5033_p0  ;;  %p5040_p12 = por %p5039_p9, %p5038_p6 }
  0x81   : > { %p5041_p1 = pnand %p5040_p12, %p5034_p10 }
  0x83   : > { %5044 = shalt.err (!%p5041_p1)
}
  0x84   : > { %s6752_s21 = scalar_lea.sflag [#allocation7], %s5783_s27  ;;  %s6753_s15 = sld [smem:[#allocation55_spill]] }
  0x85   : > { %4749 = dma.hbm_to_vmem [thread:$0]  (!%p6750_p7), %s5805_s17, 128, %s5812_s29, %s6752_s21  }
  0x86   : > { %s861_s23 = scalar_lea.vmem [#allocation9], %s5791_s28 }
  0x87   : > { %s868_s2 = sshll.u32 %s861_s23, 4  ;;  %s869_s2 = int_to_ptr.vmem [resolvable:$true] %s868_s2 }
  0x8a   : > { %s5851_s11 = scalar_lea.hbm %s6753_s15, %s5815_s6  ;;  %s5050_s17 = scalar_lea.hbm %s6753_s15, 32 }
  0x8b   : > { %s5045_s30 = scalar_lea.hbm %s5851_s11, 16  ;;  %p5051_p2 = scmp.lt.u32.totalorder %s5851_s11, %s6753_s15 }
  0x8c   : > { %p5046_p6 = scmp.ne.s32.totalorder %s5851_s11, %s5045_s30  ;;  %p5052_p3 = scmp.lt.u32.totalorder %s5050_s17, %s5045_s30 }
  0x8d   : > { %p5054_p11 = scmp.lt.u32.totalorder %s5045_s30, %s5851_s11 }
  0x8e   : > { %p5048_p9 = pnand %p5046_p6, %p5822_p8  ;;  %p5053_p5 = por %p5052_p3, %p5051_p2 }
  0x90   : > { %p5049_p4 = pneg %p5048_p9  ;;  %p5055_p13 = por %p5054_p11, %p5053_p5 }
  0x92   : > { %p5056_p0 = pnand %p5055_p13, %p5049_p4 }
  0x94   : > { %5059 = shalt.err (!%p5056_p0)
}
  0x95   : > { %s5060_s20 = scalar_lea.vmem %s869_s2, 16  ;;  %s5489_s23 = smov [#allocation9]  }
  0x96   : > { %p5061_p10 = scmp.ne.s32.totalorder %s869_s2, %s5060_s20  ;;  %s5065_s19 = sshll.u32 %s5489_s23, 4  ;;  %s5066_s19 = int_to_ptr.vmem [resolvable:$false] %s5065_s19 }
  0x97   : > { %s5067_s9 = scalar_lea.vmem %s5066_s19, 32  ;;  %p5068_p6 = scmp.lt.s32.totalorder %s869_s2, %s5066_s19 }
  0x98   : > { %p5063_p12 = pnand %p5061_p10, %p5822_p8  ;;  %p5069_p9 = scmp.lt.s32.totalorder %s5067_s9, %s5060_s20 }
  0x9a   : > { %p5064_p1 = pneg %p5063_p12  ;;  %p5070_p7 = por %p5069_p9, %p5068_p6 }
  0x9c   : > { %p5071_p2 = pnand %p5070_p7, %p5064_p1 }
  0x9e   : > { %5074 = shalt.err (!%p5071_p2)
}
  0x9f   : > { %p6754_p3 = scmp.ne.s32.totalorder %s6741_s25, 0  ;;  %s6755_s30 = scalar_lea.sflag [#allocation10], %s5783_s27 }
  0xa0   : > { %s6756_s21 = sld [smem:[#allocation59_spill]]  ;;  %s911_s19 = scalar_lea.vmem [#allocation12], %s5791_s28 }
  0xa1   : > { %4755 = dma.hbm_to_vmem [thread:$0]  (!%p6754_p3), %s5851_s11, 16, %s869_s2, %s6755_s30  }
  0xa2   : > { %s918_s20 = sshll.u32 %s911_s19, 4  ;;  %s919_s20 = int_to_ptr.vmem [resolvable:$true] %s918_s20 }
  0xa6   : > { %s5878_s0 = scalar_lea.hbm %s6756_s21, %s5815_s6  ;;  %s5080_s2 = scalar_lea.hbm %s6756_s21, 32 }
  0xa7   : > { %s5075_s9 = scalar_lea.hbm %s5878_s0, 16  ;;  %p5081_p11 = scmp.lt.u32.totalorder %s5878_s0, %s6756_s21 }
  0xa8   : > { %p5076_p7 = scmp.ne.s32.totalorder %s5878_s0, %s5075_s9  ;;  %p5082_p13 = scmp.lt.u32.totalorder %s5080_s2, %s5075_s9 }
  0xa9   : > { %p5084_p10 = scmp.lt.u32.totalorder %s5075_s9, %s5878_s0 }
  0xaa   : > { %p5078_p4 = pnand %p5076_p7, %p5822_p8  ;;  %p5083_p0 = por %p5082_p13, %p5081_p11 }
  0xac   : > { %p5079_p5 = pneg %p5078_p4  ;;  %p5085_p12 = por %p5084_p10, %p5083_p0 }
  0xae   : > { %p5086_p1 = pnand %p5085_p12, %p5079_p5 }
  0xb0   : > { %5089 = shalt.err (!%p5086_p1)
}
  0xb1   : > { %s5090_s17 = scalar_lea.vmem %s919_s20, 16  ;;  %s5490_s19 = smov [#allocation12]  }
  0xb2   : > { %p5091_p6 = scmp.ne.s32.totalorder %s919_s20, %s5090_s17  ;;  %s5095_s23 = sshll.u32 %s5490_s19, 4  ;;  %s5096_s23 = int_to_ptr.vmem [resolvable:$false] %s5095_s23 }
  0xb3   : > { %s5097_s15 = scalar_lea.vmem %s5096_s23, 32  ;;  %p5098_p7 = scmp.lt.s32.totalorder %s919_s20, %s5096_s23 }
  0xb4   : > { %p5093_p9 = pnand %p5091_p6, %p5822_p8  ;;  %p5099_p4 = scmp.lt.s32.totalorder %s5097_s15, %s5090_s17 }
  0xb6   : > { %p5094_p2 = pneg %p5093_p9  ;;  %p5100_p3 = por %p5099_p4, %p5098_p7 }
  0xb8   : > { %p5101_p11 = pnand %p5100_p3, %p5094_p2 }
  0xba   : > { %5104 = shalt.err (!%p5101_p11)
}
  0xbb   : > { %p6757_p13 = scmp.ne.s32.totalorder %s6741_s25, 0  ;;  %s6758_s9 = scalar_lea.sflag [#allocation13], %s5783_s27 }
  0xbc   : > { %s6759_s14 = sld [smem:[#allocation63_spill]]  ;;  %s961_s23 = scalar_lea.vmem [#allocation15], %s5791_s28 }
  0xbd   : > { %4761 = dma.hbm_to_vmem [thread:$0]  (!%p6757_p13), %s5878_s0, 16, %s919_s20, %s6758_s9  }
  0xbe   : > { %s968_s29 = sshll.u32 %s961_s23, 4  ;;  %s969_s29 = int_to_ptr.vmem [resolvable:$true] %s968_s29 }
  0xc2   : > { %s5905_s30 = scalar_lea.hbm %s6759_s14, %s5815_s6  ;;  %s5110_s20 = scalar_lea.hbm %s6759_s14, 32 }
  0xc3   : > { %s5105_s19 = scalar_lea.hbm %s5905_s30, 16  ;;  %p5111_p10 = scmp.lt.u32.totalorder %s5905_s30, %s6759_s14 }
  0xc4   : > { %p5106_p3 = scmp.ne.s32.totalorder %s5905_s30, %s5105_s19  ;;  %p5112_p12 = scmp.lt.u32.totalorder %s5110_s20, %s5105_s19 }
  0xc5   : > { %p5114_p6 = scmp.lt.u32.totalorder %s5105_s19, %s5905_s30 }
  0xc6   : > { %p5108_p5 = pnand %p5106_p3, %p5822_p8  ;;  %p5113_p1 = por %p5112_p12, %p5111_p10 }
  0xc8   : > { %p5109_p0 = pneg %p5108_p5  ;;  %p5115_p9 = por %p5114_p6, %p5113_p1 }
  0xca   : > { %p5116_p2 = pnand %p5115_p9, %p5109_p0 }
  0xcc   : > { %5119 = shalt.err (!%p5116_p2)
}
  0xcd   : > { %s5120_s2 = scalar_lea.vmem %s969_s29, 16  ;;  %s5491_s23 = smov [#allocation15]  }
  0xce   : > { %p5121_p7 = scmp.ne.s32.totalorder %s969_s29, %s5120_s2  ;;  %s5125_s17 = sshll.u32 %s5491_s23, 4  ;;  %s5126_s17 = int_to_ptr.vmem [resolvable:$false] %s5125_s17 }
  0xcf   : > { %s5127_s15 = scalar_lea.vmem %s5126_s17, 32  ;;  %p5128_p3 = scmp.lt.s32.totalorder %s969_s29, %s5126_s17 }
  0xd0   : > { %p5123_p4 = pnand %p5121_p7, %p5822_p8  ;;  %p5129_p5 = scmp.lt.s32.totalorder %s5127_s15, %s5120_s2 }
  0xd2   : > { %p5124_p11 = pneg %p5123_p4  ;;  %p5130_p13 = por %p5129_p5, %p5128_p3 }
  0xd4   : > { %p5131_p10 = pnand %p5130_p13, %p5124_p11 }
  0xd6   : > { %5134 = shalt.err (!%p5131_p10)
}
  0xd7   : > { %p6760_p12 = scmp.ne.s32.totalorder %s6741_s25, 0  ;;  %s6761_s19 = scalar_lea.sflag [#allocation16], %s5783_s27 }
  0xd8   : > { %s5492_s0 = smov [#allocation3]   ;;  %s5493_s9 = smov [#allocation20]  }
  0xd9   : > { %4767 = dma.hbm_to_vmem [thread:$0]  (!%p6760_p12), %s5905_s30, 16, %s969_s29, %s6761_s19  }
  0xda   : > { %s754_s20 = sshll.u32 %s5492_s0, 4  ;;  %s788_s11 = sshll.u32 %s5493_s9, 4  ;;  %s755_s20 = int_to_ptr.vmem [resolvable:$true] %s754_s20  ;;  %s789_s11 = int_to_ptr.vmem [resolvable:$true] %s788_s11 }
  0xdb   : > { %s6762_s21 = sld [smem:[#allocation50_spill]]  ;;  %p6763_p0 = scmp.ne.s32.totalorder %s6743_s18, 0 }
  0xe1   : > { %s5135_s17 = scalar_lea.hbm %s6762_s21, 64 }
  0xe2   : > { %p5136_p13 = scmp.ne.s32.totalorder %s6762_s21, %s5135_s17  ;;  %p5142_p9 = scmp.lt.u32.totalorder %s5135_s17, %s6762_s21 }
  0xe4   : > { %p5138_p1 = pnand %p5136_p13, %p6763_p0 }
  0xe6   : > { %p5139_p6 = pneg %p5138_p1 }
  0xe8   : > { %p5144_p2 = pnand %p5142_p9, %p5139_p6 }
  0xea   : > { %5147 = shalt.err (!%p5144_p2)
}
  0xeb   : > { %s5148_s30 = scalar_lea.vmem %s755_s20, 64  ;;  %p5156_p3 = scmp.lt.s32.totalorder %s755_s20, %s755_s20 }
  0xec   : > { %p5149_p7 = scmp.ne.s32.totalorder %s755_s20, %s5148_s30  ;;  %p5157_p5 = scmp.lt.s32.totalorder %s5148_s30, %s5148_s30 }
  0xee   : > { %p5151_p4 = pnand %p5149_p7, %p6763_p0  ;;  %p5158_p10 = por %p5157_p5, %p5156_p3 }
  0xf0   : > { %p5152_p11 = pneg %p5151_p4 }
  0xf2   : > { %p5159_p12 = pnand %p5158_p10, %p5152_p11 }
  0xf4   : > { %5162 = shalt.err (!%p5159_p12)
}
  0xf5   : > { %p6764_p13 = scmp.ne.s32.totalorder %s6740_s10, 0  ;;  %s6765_s24 = sld [smem:[#allocation73_spill]] }
  0xf7   : > { %4739 = dma.hbm_to_vmem [thread:$0]  (!%p6764_p13), %s6762_s21, 64, %s755_s20, [#allocation4]  }
  0xfb   : > { %s5163_s19 = scalar_lea.hbm %s6765_s24, 16 }
  0xfc   : > { %p5164_p1 = scmp.ne.s32.totalorder %s6765_s24, %s5163_s19  ;;  %p5170_p12 = scmp.lt.u32.totalorder %s5163_s19, %s6765_s24 }
  0xfe   : > { %p5166_p6 = pnand %p5164_p1, %p6763_p0 }
 0x100   : > { %p5167_p9 = pneg %p5166_p6 }
 0x102   : > { %p5172_p2 = pnand %p5170_p12, %p5167_p9 }
 0x104   : > { %5175 = shalt.err (!%p5172_p2)
}
 0x105   : > { %s5176_s2 = scalar_lea.vmem %s789_s11, 16  ;;  %s5183_s20 = scalar_lea.vmem %s789_s11, 32 }
 0x106   : > { %p5177_p7 = scmp.ne.s32.totalorder %s789_s11, %s5176_s2  ;;  %p5184_p3 = scmp.lt.s32.totalorder %s789_s11, %s789_s11 }
 0x107   : > { %p5185_p5 = scmp.lt.s32.totalorder %s5183_s20, %s5176_s2 }
 0x108   : > { %p5179_p4 = pnand %p5177_p7, %p6763_p0 }
 0x109   : > { %p5186_p10 = por %p5185_p5, %p5184_p3 }
 0x10a   : > { %p5180_p11 = pneg %p5179_p4 }
 0x10c   : > { %p5187_p8 = pnand %p5186_p10, %p5180_p11 }
 0x10e   : > { %5190 = shalt.err (!%p5187_p8)
}
 0x10f   : > { %4745 = dma.hbm_to_vmem [thread:$0]  (!%p6764_p13), %s6765_s24, 16, %s789_s11, [#allocation19]  }
 0x110   : > { %s6766_s18 = sld [smem:[#allocation53_spill]]  ;;  %s836_s22 = scalar_lea.vmem [#allocation8], %s5791_s28 }
 0x111   : > { %s843_s19 = sshll.u32 %s836_s22, 4  ;;  %p6767_p0 = scmp.ne.s32.totalorder %s6751_s13, 0  ;;  %s844_s19 = int_to_ptr.vmem [resolvable:$true] %s843_s19 }
 0x116   : > { %s5968_s4 = scalar_lea.hbm %s6766_s18, %s5815_s6  ;;  %s5196_s11 = scalar_lea.hbm %s6766_s18, 32 }
 0x117   : > { %s5191_s10 = scalar_lea.hbm %s5968_s4, 16  ;;  %p5197_p13 = scmp.lt.u32.totalorder %s5968_s4, %s6766_s18 }
 0x118   : > { %p5192_p8 = scmp.ne.s32.totalorder %s5968_s4, %s5191_s10  ;;  %p5198_p9 = scmp.lt.u32.totalorder %s5196_s11, %s5191_s10 }
 0x119   : > { %p5200_p2 = scmp.lt.u32.totalorder %s5191_s10, %s5968_s4 }
 0x11a   : > { %p5194_p1 = pnand %p5192_p8, %p6767_p0  ;;  %p5199_p12 = por %p5198_p9, %p5197_p13 }
 0x11c   : > { %p5195_p6 = pneg %p5194_p1  ;;  %p5201_p7 = por %p5200_p2, %p5199_p12 }
 0x11e   : > { %p5202_p4 = pnand %p5201_p7, %p5195_p6 }
 0x120   : > { %5205 = shalt.err (!%p5202_p4)
}
 0x121   : > { %s5206_s2 = scalar_lea.vmem %s844_s19, 16  ;;  %s5494_s20 = smov [#allocation8]  }
 0x122   : > { %p5207_p11 = scmp.ne.s32.totalorder %s844_s19, %s5206_s2  ;;  %s5211_s15 = sshll.u32 %s5494_s20, 4  ;;  %s5212_s15 = int_to_ptr.vmem [resolvable:$false] %s5211_s15 }
 0x123   : > { %s5213_s30 = scalar_lea.vmem %s5212_s15, 32  ;;  %p5214_p10 = scmp.lt.s32.totalorder %s844_s19, %s5212_s15 }
 0x124   : > { %p5209_p3 = pnand %p5207_p11, %p6767_p0  ;;  %p5215_p8 = scmp.lt.s32.totalorder %s5213_s30, %s5206_s2 }
 0x126   : > { %p5210_p5 = pneg %p5209_p3  ;;  %p5216_p1 = por %p5215_p8, %p5214_p10 }
 0x128   : > { %p5217_p9 = pnand %p5216_p1, %p5210_p5 }
 0x12a   : > { %5220 = shalt.err (!%p5217_p9)
}
 0x12b   : > { %p6768_p13 = scmp.ne.s32.totalorder %s6741_s25, 0  ;;  %s6769_s14 = scalar_lea.sflag [#allocation7], %s5783_s27 }
 0x12c   : > { %s6770_s10 = sld [smem:[#allocation57_spill]]  ;;  %s886_s9 = scalar_lea.vmem [#allocation11], %s5791_s28 }
 0x12d   : > { %4752 = dma.hbm_to_vmem [thread:$0]  (!%p6768_p13), %s5968_s4, 16, %s844_s19, %s6769_s14  }
 0x12e   : > { %s893_s11 = sshll.u32 %s886_s9, 4  ;;  %s894_s11 = int_to_ptr.vmem [resolvable:$true] %s893_s11 }
 0x132   : > { %s5994_s0 = scalar_lea.hbm %s6770_s10, %s5815_s6  ;;  %s5226_s4 = scalar_lea.hbm %s6770_s10, 32 }
 0x133   : > { %s5221_s23 = scalar_lea.hbm %s5994_s0, 16  ;;  %p5227_p7 = scmp.lt.u32.totalorder %s5994_s0, %s6770_s10 }
 0x134   : > { %p5222_p6 = scmp.ne.s32.totalorder %s5994_s0, %s5221_s23  ;;  %p5228_p4 = scmp.lt.u32.totalorder %s5226_s4, %s5221_s23 }
 0x135   : > { %p5230_p3 = scmp.lt.u32.totalorder %s5221_s23, %s5994_s0 }
 0x136   : > { %p5224_p12 = pnand %p5222_p6, %p6767_p0  ;;  %p5229_p11 = por %p5228_p4, %p5227_p7 }
 0x138   : > { %p5225_p2 = pneg %p5224_p12  ;;  %p5231_p5 = por %p5230_p3, %p5229_p11 }
 0x13a   : > { %p5232_p10 = pnand %p5231_p5, %p5225_p2 }
 0x13c   : > { %5235 = shalt.err (!%p5232_p10)
}
 0x13d   : > { %s5236_s15 = scalar_lea.vmem %s894_s11, 16  ;;  %s5495_s30 = smov [#allocation11]  }
 0x13e   : > { %p5237_p8 = scmp.ne.s32.totalorder %s894_s11, %s5236_s15  ;;  %s5241_s14 = sshll.u32 %s5495_s30, 4  ;;  %s5242_s14 = int_to_ptr.vmem [resolvable:$false] %s5241_s14 }
 0x13f   : > { %s5243_s29 = scalar_lea.vmem %s5242_s14, 32  ;;  %p5244_p6 = scmp.lt.s32.totalorder %s894_s11, %s5242_s14 }
 0x140   : > { %p5239_p1 = pnand %p5237_p8, %p6767_p0  ;;  %p5245_p12 = scmp.lt.s32.totalorder %s5243_s29, %s5236_s15 }
 0x142   : > { %p5240_p9 = pneg %p5239_p1  ;;  %p5246_p13 = por %p5245_p12, %p5244_p6 }
 0x144   : > { %p5247_p4 = pnand %p5246_p13, %p5240_p9 }
 0x146   : > { %5250 = shalt.err (!%p5247_p4)
}
 0x147   : > { %p6771_p7 = scmp.ne.s32.totalorder %s6741_s25, 0  ;;  %s6772_s22 = scalar_lea.sflag [#allocation10], %s5783_s27 }
 0x148   : > { %s6773_s12 = sld [smem:[#allocation61_spill]]  ;;  %s936_s2 = scalar_lea.vmem [#allocation14], %s5791_s28 }
 0x149   : > { %4758 = dma.hbm_to_vmem [thread:$0]  (!%p6771_p7), %s5994_s0, 16, %s894_s11, %s6772_s22  }
 0x14a   : > { %s943_s4 = sshll.u32 %s936_s2, 4  ;;  %s944_s4 = int_to_ptr.vmem [resolvable:$true] %s943_s4 }
 0x14e   : > { %s6020_s17 = scalar_lea.hbm %s6773_s12, %s5815_s6  ;;  %s5256_s0 = scalar_lea.hbm %s6773_s12, 32 }
 0x14f   : > { %s5251_s19 = scalar_lea.hbm %s6020_s17, 16  ;;  %p5257_p3 = scmp.lt.u32.totalorder %s6020_s17, %s6773_s12 }
 0x150   : > { %p5252_p13 = scmp.ne.s32.totalorder %s6020_s17, %s5251_s19  ;;  %p5258_p5 = scmp.lt.u32.totalorder %s5256_s0, %s5251_s19 }
 0x151   : > { %p5260_p8 = scmp.lt.u32.totalorder %s5251_s19, %s6020_s17 }
 0x152   : > { %p5254_p2 = pnand %p5252_p13, %p6767_p0  ;;  %p5259_p10 = por %p5258_p5, %p5257_p3 }
 0x154   : > { %p5255_p11 = pneg %p5254_p2  ;;  %p5261_p1 = por %p5260_p8, %p5259_p10 }
 0x156   : > { %p5262_p9 = pnand %p5261_p1, %p5255_p11 }
 0x158   : > { %5265 = shalt.err (!%p5262_p9)
}
 0x159   : > { %s5266_s14 = scalar_lea.vmem %s944_s4, 16  ;;  %s5496_s29 = smov [#allocation14]  }
 0x15a   : > { %p5267_p6 = scmp.ne.s32.totalorder %s944_s4, %s5266_s14  ;;  %s5271_s22 = sshll.u32 %s5496_s29, 4  ;;  %s5272_s22 = int_to_ptr.vmem [resolvable:$false] %s5271_s22 }
 0x15b   : > { %s5273_s9 = scalar_lea.vmem %s5272_s22, 32  ;;  %p5274_p13 = scmp.lt.s32.totalorder %s944_s4, %s5272_s22 }
 0x15c   : > { %p5269_p12 = pnand %p5267_p6, %p6767_p0  ;;  %p5275_p2 = scmp.lt.s32.totalorder %s5273_s9, %s5266_s14 }
 0x15e   : > { %p5270_p4 = pneg %p5269_p12  ;;  %p5276_p7 = por %p5275_p2, %p5274_p13 }
 0x160   : > { %p5277_p3 = pnand %p5276_p7, %p5270_p4 }
 0x162   : > { %5280 = shalt.err (!%p5277_p3)
}
 0x163   : > { %p6774_p5 = scmp.ne.s32.totalorder %s6741_s25, 0  ;;  %s6775_s23 = scalar_lea.sflag [#allocation13], %s5783_s27 }
 0x164   : > { %s6776_s16 = sld [smem:[#allocation65_spill]]  ;;  %s986_s15 = scalar_lea.vmem [#allocation17], %s5791_s28 }
 0x165   : > { %4764 = dma.hbm_to_vmem [thread:$0]  (!%p6774_p5), %s6020_s17, 16, %s944_s4, %s6775_s23  }
 0x166   : > { %s993_s0 = sshll.u32 %s986_s15, 4  ;;  %s994_s0 = int_to_ptr.vmem [resolvable:$true] %s993_s0 }
 0x16a   : > { %s6046_s20 = scalar_lea.hbm %s6776_s16, %s5815_s6  ;;  %s5286_s17 = scalar_lea.hbm %s6776_s16, 32 }
 0x16b   : > { %s5281_s11 = scalar_lea.hbm %s6046_s20, 16  ;;  %p5287_p8 = scmp.lt.u32.totalorder %s6046_s20, %s6776_s16 }
 0x16c   : > { %p5282_p7 = scmp.ne.s32.totalorder %s6046_s20, %s5281_s11  ;;  %p5288_p1 = scmp.lt.u32.totalorder %s5286_s17, %s5281_s11 }
 0x16d   : > { %p5290_p6 = scmp.lt.u32.totalorder %s5281_s11, %s6046_s20 }
 0x16e   : > { %p5284_p11 = pnand %p5282_p7, %p6767_p0  ;;  %p5289_p9 = por %p5288_p1, %p5287_p8 }
 0x170   : > { %p5285_p10 = pneg %p5284_p11  ;;  %p5291_p12 = por %p5290_p6, %p5289_p9 }
 0x172   : > { %p5292_p4 = pnand %p5291_p12, %p5285_p10 }
 0x174   : > { %5295 = shalt.err (!%p5292_p4)
}
 0x175   : > { %s5296_s28 = scalar_lea.vmem %s994_s0, 16  ;;  %s5497_s6 = smov [#allocation17]  }
 0x176   : > { %p5297_p13 = scmp.ne.s32.totalorder %s994_s0, %s5296_s28  ;;  %s5301_s22 = sshll.u32 %s5497_s6, 4  ;;  %s5302_s22 = int_to_ptr.vmem [resolvable:$false] %s5301_s22 }
 0x177   : > { %s5303_s9 = scalar_lea.vmem %s5302_s22, 32  ;;  %p5304_p7 = scmp.lt.s32.totalorder %s994_s0, %s5302_s22 }
 0x178   : > { %p5299_p2 = pnand %p5297_p13, %p6767_p0  ;;  %p5305_p11 = scmp.lt.s32.totalorder %s5303_s9, %s5296_s28 }
 0x17a   : > { %p5300_p3 = pneg %p5299_p2  ;;  %p5306_p5 = por %p5305_p11, %p5304_p7 }
 0x17c   : > { %p5307_p1 = pnand %p5306_p5, %p5300_p3 }
 0x17e   : > { %5310 = shalt.err (!%p5307_p1)
}
 0x17f   : > { %p6777_p8 = scmp.ne.s32.totalorder %s6741_s25, 0  ;;  %s6778_s23 = scalar_lea.sflag [#allocation16], %s5783_s27 }
 0x180   : > { %p6779_p10 = scmp.ne.s32.totalorder %s6739_s1, 0 }
 0x181   : > { %4770 = dma.hbm_to_vmem [thread:$0]  (!%p6777_p8), %s6046_s20, 16, %s994_s0, %s6778_s23  }
 0x182   : > { %1016 = sbr.rel (%p6779_p10) target bundleno = 8026 (0x1f5a), region = 120 }
 0x189   : > { %p6780_p0 = scmp.eq.s32.totalorder %s5702_s5, 0 }
 0x18b   : > { %5412 = dma.done.wait (%p6780_p0), [#allocation4], 64   ;;  %p6781_p9 = pmov %p6780_p0 }
 0x18c   : > { %s1022_s13 = sand.u32 1, %s5702_s5   ;;  %s6076_s2 = sand.u32 1, %s5461_s8  }
 0x18d   : > { %5414 = vsyncadd (%p6781_p9), [#allocation4], 4294967232  ;;  %s4245_s25 = sshll.u32 %s6076_s2, 3  ;;  %s1023_s27 = scalar_lea.sflag [#allocation7], %s1022_s13 }
 0x18e   : > { %s6079_s19 = scalar_lea.vmem [#allocation6], %s4245_s25  ;;  %p6783_p5 = scmp.ne.s32.totalorder %s6734_s26, 0 }
 0x18f   : > { %6782 = sst [smem:[#allocation48_spill]] %s6079_s19 }
 0x190   : > { %5416 = dma.done.wait (%p6783_p5), %s1023_s27, 144  }
 0x191   : > { %5418 = vsyncadd (%p6783_p5), %s1023_s27, 4294967152  ;;  %s1040_s20 = scalar_lea.sflag [#allocation10], %s1022_s13 }
 0x192   : > { %5420 = dma.done.wait (%p6783_p5), %s1040_s20, 32  }
 0x193   : > { %5422 = vsyncadd (%p6783_p5), %s1040_s20, 4294967264  ;;  %s1056_s11 = scalar_lea.sflag [#allocation13], %s1022_s13 }
 0x194   : > { %5424 = dma.done.wait (%p6783_p5), %s1056_s11, 32  }
 0x195   : > { %5426 = vsyncadd (%p6783_p5), %s1056_s11, 4294967264  ;;  %s1072_s17 = scalar_lea.sflag [#allocation16], %s1022_s13 }
 0x196   : > { %5428 = dma.done.wait (%p6783_p5), %s1072_s17, 32  }
 0x197   : > { %5430 = vsyncadd (%p6783_p5), %s1072_s17, 4294967264  ;;  %p6784_p6 = pmov %p6780_p0 }
 0x198   : > { %p6785_p12 = pmov %p6780_p0 }
 0x199   : > { %5432 = dma.done.wait (%p6784_p6), [#allocation19], 32  }
 0x19a   : > { %5434 = vsyncadd (%p6785_p12), [#allocation19], 4294967264  ;;  %s6786_s28 = sld [smem:[#allocation33_spill]]  ;;  %s6787_s6 = sld [smem:[#allocation38_spill]] }
 0x19b   : > { %s6788_s22 = sld [smem:[#allocation37_spill]]  ;;  %s6789_s27 = sld [smem:[#allocation49_spill]] }
 0x19c   : > { %s6790_s29 = sld [smem:[#allocation52_spill]]  ;;  %s6791_s0 = sld [smem:[#allocation54_spill]] }
 0x19d   : > { %s6792_s12 = sld [smem:[#allocation56_spill]]  ;;  %s6793_s21 = sld [smem:[#allocation58_spill]] }
 0x19e   : > { %s6796_s10 = sld [smem:[#allocation64_spill]]  ;;  %s6798_s25 = sld [smem:[#allocation67_spill]] }
 0x1a0   : > { %s6109_s9 = sand.u32 1, %s6786_s28   ;;  %p1239_p4 = scmp.lt.s32.totalorder %s6787_s6, 1 }
 0x1a1   : > { %s4248_s23 = sshll.u32 %s6109_s9, 2  ;;  %p1244_p13 = scmp.lt.s32.totalorder %s6788_s22, 1 }
 0x1a2   : > { %s6845_s6 = smov (!%p1239_p4, %s6787_s6), 1  ;;  %s6795_s28 = sld [smem:[#allocation62_spill]] }
 0x1a3   : > { %s6116_s26 = scalar_select %p1244_p13, %s6788_s22, 1 }
 0x1a4   : > { %s4358_s5 = sshll.u32 %s6845_s6, 4  ;;  %s1231_s7 = scalar_lea.vmem [#allocation21], %s6109_s9 }
 0x1a5   : > { %s6121_s20 = scalar_lea.vmem %s6789_s27, %s4358_s5  ;;  %s4359_s11 = sshll.u32 %s6116_s26, 4 }
 0x1a6   : > { %s1248_s4 = scalar_lea.vmem %s6790_s29, %s4359_s11  ;;  %s1253_s1 = scalar_lea.vmem %s6791_s0, %s4359_s11 }
 0x1a7   : > { %s6133_s16 = scalar_lea.vmem %s6792_s12, %s4359_s11  ;;  %s6138_s13 = scalar_lea.vmem %s6793_s21, %s4359_s11 }
 0x1a8   : > { %s6794_s27 = sld [smem:[#allocation60_spill]]  ;;  %s6148_s30 = scalar_lea.vmem %s6795_s28, %s4359_s11 }
 0x1a9   : > { %s6153_s12 = scalar_lea.vmem %s6796_s10, %s4359_s11  ;;  %s4366_s15 = sshll.u32 %s6116_s26, 5 }
 0x1aa   : > { %s6797_s21 = sld [smem:[#allocation66_spill]]  ;;  %s6166_s19 = scalar_lea.vmem [#allocation22], %s4248_s23 }
 0x1ab   : > { %p4267_p2 = scmp.ne.s32.totalorder %s6788_s22, 0 }
 0x1ac   : > { %v1292_v0 = vld [vmem:[#allocation3] sm:$0xf] (!%p4267_p2)  ;;  %vm1293_vm0 = vcmask (!%p4267_p2), 257024  }
 0x1ad   : > { %1291 = sbr.rel (%p4267_p2) target bundleno = 436 (0x1b4), region = 168  ;;  %1294 = vst.msk [vmem:[#allocation2] sm:$0xf] (!%p4267_p2), %vm1293_vm0, %v1292_v0 }
 0x1ae   : > { %s6143_s24 = scalar_lea.vmem %s6794_s27, %s4359_s11  ;;  %s1286_s27 = scalar_lea.vmem %s6798_s25, %s6116_s26 }
 0x1b0   : > { %s6159_s6 = scalar_lea.vmem %s6797_s21, %s4366_s15 }
 0x1b4 PF: > { %v4925_v1 = vld [vmem:[%s1248_s4] sm:$0xff]   ;;  %v5498_v2 = vmov 0.0   ;;  %v4927_v4 = vld [vmem:[%s1248_s4 + $0x8] sm:$0xff]   ;;  %vm5499_vm1 = vmmov 0   ;;  %vm1339_vm2 = vcmask 261120   ;;  %s6799_s3 = scalar_lea.vmem [#allocation9], %s6076_s2  ;;  %v1295_v21 = vlaneseq }
 0x1b5   : > { %4452 = vmatprep.subr.bf16.mxu0 %v5498_v2  ;;  %4460 = vmatprep.subr.bf16.mxu1 %v5498_v2  ;;  %v4926_v3 = vld [vmem:[%s1253_s1] sm:$0xff]   ;;  %v4928_v5 = vld [vmem:[%s1253_s1 + $0x8] sm:$0xff]   ;;  %s6800_s8 = scalar_lea.vmem [#allocation8], %s6076_s2  ;;  %vm1441_vm3 = vcmask 64512   ;;  %s5500_s1 = smov 96   ;;  %vm1538_vm4 = vcmask 1043456  }
 0x1b6   : > { %4453 = vmatpush3.bf16.msra.mxu0 %v4925_v1  ;;  %4456 = vmatprep.mubr.msk.bf16.mxu0 %vm5499_vm1, %v5498_v2  ;;  %v6177_v6 = vld [vmem:[#allocation2] sm:$0xf]  ;;  %s5501_s4 = smov 120   ;;  %v6210_v22 = vshrl.u32 %v1295_v21, 7  ;;  %v1298_v23 = vand.u32 127, %v1295_v21  ;;  %vm1520_vm6 = vcmask 27648   ;;  %vm6343_vm9 = vmpackc.low %vm1441_vm3, %vm1441_vm3 }
 0x1b7   : > { %4461 = vmatpush3.bf16.msra.mxu1 %v4926_v3  ;;  %4454 = vmatprep.subr.bf16.mxu0 %v5498_v2  ;;  %v1320_v7 = vpack.c.bf16 %v6177_v6, %v6177_v6  ;;  %v4272_v8 = vld [vmem:[%s6799_s3] ss:$0 sm:$0xff]  ;;  %vm1534_vm7 = vcmask 31744   ;;  %s5502_s22 = smov 88   ;;  %s5503_s23 = smov 112   ;;  %vm2313_vm8 = vcmask 257024  }
 0x1b8   : > { %4462 = vmatprep.subr.bf16.mxu1 %v5498_v2  ;;  %4464 = vmatprep.mubr.msk.bf16.mxu1 %vm5499_vm1, %v5498_v2  ;;  %v4268_v9 = vld [vmem:[%s6800_s8] ss:$0 sm:$0xff]  ;;  %vm1299_vm5 = vcmp.gt.s32.totalorder %v1298_v23, %v6210_v22  ;;  %v1314_v53 = vld [vmem:[%s6133_s16 + $0x4] sm:$0xf]  ;;  %s5504_s11 = smov 80   ;;  %s5505_s29 = smov 104  }
 0x1b9   : > { %v6214_v25 = vsel %vm1299_vm5, -1e+30, %v5498_v2  ;;  %v1785_v54 = vsel %vm1538_vm4, %v1314_v53, 0  ;;  %v1313_v56 = vld [vmem:[%s6133_s16] sm:$0xf]  ;;  %s5506_s17 = smov 72  }
 0x1ba   : > { %4455 = vmatpush3.bf16.msra.mxu0 %v4927_v4  ;;  %v1831_v59 = vsel %vm1538_vm4, %v1313_v56, 0  ;;  %s6801_s28 = scalar_lea.vmem [#allocation11], %s6076_s2  ;;  %vm2558_vm10 = vcmask 68608   ;;  %vm2579_vm11 = vcmask 1040384   ;;  %vm5508_vm12 = vmmov 1   ;;  %s6812_s26 = sld [smem:[#allocation37_spill]] }
 0x1bb   : > { %4463 = vmatpush3.bf16.msra.mxu1 %v4928_v5  ;;  %4468 = vmatprep.subr.mxu0 %v5498_v2  ;;  %vm6382_vm13 = vmpackc.low %vm2579_vm11, %vm5508_vm12  ;;  %vm2575_vm14 = vcmask 72704   ;;  %vm3511_vm15 = vcmask 523264  }
 0x1bc   : > { %4483 = vmatprep.subr.mxu1 %v5498_v2 }
 0x1bd   : > { %4457 = vmatmul.mubr.msk.bf16.vlgmr.msra.gmra.mrb[0].mxu0 %vm1339_vm2, %v1320_v7 }
 0x1be   : > { %4465 = vmatmul.mubr.msk.bf16.vlgmr.msra.gmra.mrb[0].mxu1 %vm1339_vm2, %v1320_v7  ;;  %4470 = vmatprep.mubr.msk.f32.mxu0 %vm5499_vm1, %v5498_v2 }
 0x1bf   : > { %4485 = vmatprep.mubr.msk.f32.mxu1 %vm5499_vm1, %v5498_v2 }
 0x1c0   : > { %p4340_p3 = scmp.ne.s32.totalorder %s6812_s26, 1 }
 0x1c1   : > { %s6813_s15 = sld [smem:[#allocation69_spill]] (!%p4340_p3)  ;;  %vm5510_vm0 = vmmov (!%p4340_p3), 0   ;;  %s6814_s25 = sld [smem:[#allocation72_spill]] (!%p4340_p3) }
 0x290   : > { %v1377_v10 = vpop.f32.mrb[0].mxu0 }
 0x291   : > { %v1435_v11 = vpop.f32.mrb[0].mxu1  ;;  %v4458_v12 = vpop.f32.mrb[1].mxu0  ;;  %v6195_v16 = vadd.f32 %v4268_v9, %v1377_v10 }
 0x292   : > { %v6193_v13 = vadd.f32 %v4272_v8, %v1435_v11  ;;  %v4466_v14 = vpop.f32.mrb[1].mxu1  ;;  %v1380_v15 = vpop.f32.mrb[2].mxu0 }
 0x293   : > { %v1438_v17 = vpop.f32.mrb[2].mxu1  ;;  %v4459_v18 = vpop.f32.mrb[3].mxu0 }
 0x294   : > { %1532 = vrot.lane.b32.xlu1 %v6193_v13, %s5500_s1  ;;  %v4467_v19 = vpop.f32.mrb[3].mxu1  ;;  %4469 = vmatpush3.xpose.msk.msra.mxu0 %vm1441_vm3, %v6193_v13 }
 0x295   : > { %4473 = vmatprep.subr.mxu0 %v5498_v2 }
 0x297   : > { %4471 = vmatmul.mubr.msk.f32.vlgmr.msra.gmra.mrb[4].mxu0 %vm1441_vm3, %v6195_v16 }
 0x298   : > { %1614 = vrot.lane.b32.xlu1 %v6193_v13, %s5501_s4  ;;  %4475 = vmatprep.mubr.msk.f32.mxu0 %vm5499_vm1, %v5498_v2 }
 0x306   : > { %v1533_v20 = vpop.permute.xlu1 %1532 }
 0x307   : > { %4474 = vmatpush3.msk.msra.mxu0 %vm1538_vm4, %v1533_v20 }
 0x308   : > { %4478 = vmatprep.subr.mxu0 %v5498_v2 }
 0x30a   : > { %v1615_v38 = vpop.permute.xlu1 %1614 }
 0x36a   : > { %v1514_v24 = vpop.f32.mrb[4].mxu0 }
 0x36b   : > { %v1518_v26 = vmul.f32 0.35355338, %v1514_v24  ;;  %v4472_v27 = vpop.f32.mrb[5].mxu0 }
 0x36d   : > { %v1519_v28 = vadd.f32 %v1518_v26, %v6214_v25 }
 0x36f   : > { %v1521_v29 = vsel %vm1520_vm6, %v1519_v28, -inf }
 0x370   : > { %1522 = vmax.xlane.f32.xlu0 %v1521_v29 }
 0x3fd   : > { %v1523_v30 = vpop.xlane.xlu0 %1522 }
 0x3fe   : > { %v1524_v31 = vsub.f32 %v1519_v28, %v1523_v30 }
 0x400   : > { %v1525_v32 = vmul.f32 1.442695, %v1524_v31 }
 0x402   : > { %4939 = vpow2.f32 %v1525_v32  ;;  %v1315_v32 = vld [vmem:[%s6133_s16 + $0x8] sm:$0xf] }
 0x40c   : > { %v4940_v33 = vpop.eup %4939 }
 0x40d   : > { %v1527_v34 = vsel %vm1520_vm6, %v4940_v33, 0.0 }
 0x40e   : > { %1528 = vadd.xlane.f32.xlu0 %v1527_v34 }
 0x424   : > { %1612 = vrot.lane.b32.xlu0 %v6195_v16, %s5501_s4 }
 0x49b   : > { %v1529_v35 = vpop.xlane.xlu0 %1528 }
 0x49c   : > { %4941 = vrcp.f32 %v1529_v35 }
 0x49f   : > { %v1613_v39 = vpop.permute.xlu0 %1612 }
 0x4a6   : > { %v4942_v36 = vpop.eup %4941 }
 0x4a7   : > { %v1531_v37 = vmul.f32 %v4942_v36, %v4940_v33  ;;  %v2046_v33 = vsel %vm1538_vm4, %v1315_v32, 0 }
 0x4a9   : > { %4476 = vmatmul.mubr.msk.f32.vlgmr.msra.gmra.mrb[6].mxu0 %vm1534_vm7, %v1531_v37 }
 0x4aa   : > { %4479 = vmatpush3.xpose.msk.msra.mxu0 %vm1441_vm3, %v1615_v38  ;;  %4480 = vmatprep.mubr.msk.f32.mxu0 %vm5499_vm1, %v5498_v2 }
 0x4ab   : > { %4488 = vmatprep.subr.bf16.mxu0 %v5498_v2 }
 0x4ad   : > { %4481 = vmatmul.mubr.msk.f32.vlgmr.msra.gmra.mrb[8].mxu0 %vm1441_vm3, %v1613_v39 }
 0x4ae   : > { %4490 = vmatprep.mubr.msk.bf16.mxu0 %vm5499_vm1, %v5498_v2  ;;  %4489 = vmatpush3.bf16.msra.mxu0 %v1785_v54  ;;  %v1316_v54 = vld [vmem:[%s6133_s16 + $0xc] sm:$0xf]  ;;  %s6802_s16 = sld [smem:[#allocation48_spill]] }
 0x4af   : > { %4500 = vmatprep.subr.mxu0 %v5498_v2 }
 0x57c   : > { %v1607_v40 = vpop.f32.mrb[6].mxu0 }
 0x57d   : > { %v4477_v41 = vpop.f32.mrb[7].mxu0  ;;  %v1611_v60 = vpack.c.bf16 %v1607_v40, %v1607_v40 }
 0x580   : > { %v1686_v42 = vpop.f32.mrb[8].mxu0 }
 0x581   : > { %v1690_v43 = vmul.f32 0.35355338, %v1686_v42  ;;  %v4482_v44 = vpop.f32.mrb[9].mxu0 }
 0x583   : > { %v1691_v45 = vadd.f32 %v1690_v43, %v6214_v25 }
 0x585   : > { %v1692_v46 = vsel %vm1520_vm6, %v1691_v45, -inf }
 0x586   : > { %1693 = vmax.xlane.f32.xlu1 %v1692_v46 }
 0x597   : > { %1703 = vrot.lane.b32.xlu1 %v6193_v13, %s5502_s22 }
 0x59b   : > { %1873 = vrot.lane.b32.xlu1 %v6195_v16, %s5503_s23 }
 0x613   : > { %v1694_v47 = vpop.xlane.xlu1 %1693 }
 0x614   : > { %v1695_v48 = vsub.f32 %v1691_v45, %v1694_v47 }
 0x616   : > { %v1696_v49 = vmul.f32 1.442695, %v1695_v48 }
 0x617   : > { %v1704_v50 = vpop.permute.xlu1 %1703 }
 0x618   : > { %4943 = vpow2.f32 %v1696_v49  ;;  %4484 = vmatpush3.msk.msra.mxu1 %vm1538_vm4, %v1704_v50 }
 0x619   : > { %4494 = vmatprep.subr.bf16.mxu1 %v5498_v2 }
 0x61b   : > { %v1874_v7 = vpop.permute.xlu1 %1873 }
 0x622   : > { %v4944_v51 = vpop.eup %4943 }
 0x623   : > { %v1698_v52 = vsel %vm1520_vm6, %v4944_v51, 0.0 }
 0x624   : > { %1699 = vadd.xlane.f32.xlu0 %v1698_v52 }
 0x63a   : > { %1875 = vrot.lane.b32.xlu0 %v6193_v13, %s5503_s23 }
 0x6b1   : > { %v1700_v55 = vpop.xlane.xlu0 %1699 }
 0x6b2   : > { %4945 = vrcp.f32 %v1700_v55  ;;  %v2262_v55 = vsel %vm1538_vm4, %v1316_v54, 0 }
 0x6b5   : > { %v1876_v0 = vpop.permute.xlu0 %1875 }
 0x6bc   : > { %v4946_v57 = vpop.eup %4945 }
 0x6bd   : > { %v1702_v58 = vmul.f32 %v4946_v57, %v4944_v51 }
 0x6bf   : > { %4486 = vmatmul.mubr.msk.f32.vlgmr.msra.gmra.mrb[4].mxu1 %vm1534_vm7, %v1702_v58 }
 0x6c0   : > { %4495 = vmatpush3.bf16.msra.mxu1 %v1831_v59  ;;  %4496 = vmatprep.mubr.msk.bf16.mxu1 %vm5499_vm1, %v5498_v2  ;;  %v4296_v59 = vld [vmem:[%s6801_s28] ss:$0 sm:$0xff]  ;;  %s6817_s28 = sld [smem:[#allocation71_spill]] (!%p4340_p3) }
 0x6c1   : > { %4505 = vmatprep.subr.mxu1 %v5498_v2 }
 0x6c3   : > { %4497 = vmatmul.mubr.msk.bf16.vlgmr.msra.gmra.mrb[8].mxu1 %vm1441_vm3, %v1611_v60 }
 0x6c4   : > { %4507 = vmatprep.mubr.msk.f32.mxu1 %vm5499_vm1, %v5498_v2 }
 0x792   : > { %v1776_v61 = vpop.f32.mrb[4].mxu1 }
 0x793   : > { %v1780_v62 = vpack.c.bf16 %v1776_v61, %v1776_v61  ;;  %v4487_v63 = vpop.f32.mrb[5].mxu1 }
 0x795   : > { %4491 = vmatmul.mubr.msk.bf16.vlgmr.msra.gmra.mrb[12].mxu0 %vm1441_vm3, %v1780_v62 }
 0x796   : > { %4501 = vmatpush3.xpose.msk.msra.mxu0 %vm1441_vm3, %v1876_v0  ;;  %v1867_v1 = vpop.f32.mrb[8].mxu1  ;;  %4502 = vmatprep.mubr.msk.f32.mxu0 %vm5499_vm1, %v5498_v2 }
 0x797   : > { %v4498_v3 = vpop.f32.mrb[9].mxu1  ;;  %4510 = vmatprep.subr.bf16.mxu0 %v5498_v2 }
 0x798   : > { %v1870_v4 = vpop.f32.mrb[10].mxu1 }
 0x799   : > { %v4499_v5 = vpop.f32.mrb[11].mxu1 }
 0x79a   : > { %v4929_v5 = vld [vmem:[%s6143_s24] sm:$0xff]  }
 0x79d   : > { %4503 = vmatmul.mubr.msk.f32.vlgmr.msra.gmra.mrb[10].mxu0 %vm1441_vm3, %v1874_v7 }
 0x79e   : > { %4512 = vmatprep.mubr.msk.bf16.mxu0 %vm5499_vm1, %v5498_v2  ;;  %4511 = vmatpush3.bf16.msra.mxu0 %v2046_v33 }
 0x79f   : > { %4526 = vmatprep.subr.bf16.mxu0 %v5498_v2 }
 0x868   : > { %v1821_v8 = vpop.f32.mrb[12].mxu0 }
 0x869   : > { %v6260_v9 = vadd.f32 %v1867_v1, %v1821_v8  ;;  %v4492_v10 = vpop.f32.mrb[13].mxu0 }
 0x86a   : > { %v1824_v11 = vpop.f32.mrb[14].mxu0 }
 0x86b   : > { %v4493_v12 = vpop.f32.mrb[15].mxu0 }
 0x86c   : > { %v4930_v12 = vld [vmem:[%s6143_s24 + $0x8] sm:$0xff]   ;;  %s6803_s24 = scalar_lea.vmem [#allocation14], %s6076_s2 }
 0x870   : > { %v1947_v14 = vpop.f32.mrb[10].mxu0 }
 0x871   : > { %v1951_v15 = vmul.f32 0.35355338, %v1947_v14  ;;  %v4504_v17 = vpop.f32.mrb[11].mxu0  ;;  %v1302_v14 = vld [vmem:[%s6121_s20] sm:$0xff] }
 0x872   : > { %v4931_v17 = vld [vmem:[%s6138_s13] sm:$0xff]  }
 0x873   : > { %v1952_v18 = vadd.f32 %v1951_v15, %v6214_v25 }
 0x875   : > { %v1953_v19 = vsel %vm1520_vm6, %v1952_v18, -inf }
 0x876   : > { %1954 = vmax.xlane.f32.xlu1 %v1953_v19  ;;  %v5507_v19 = vmov 0.0|0.0  }
 0x887   : > { %1964 = vrot.lane.b32.xlu1 %v6193_v13, %s5504_s11 }
 0x88b   : > { %2089 = vrot.lane.b32.xlu1 %v6195_v16, %s5505_s29 }
 0x903   : > { %v1955_v20 = vpop.xlane.xlu1 %1954 }
 0x904   : > { %v1956_v21 = vsub.f32 %v1952_v18, %v1955_v20  ;;  %v4932_v18 = vld [vmem:[%s6138_s13 + $0x8] sm:$0xff]   ;;  %s6809_s13 = scalar_lea.vmem [#allocation15], %s6076_s2 }
 0x906   : > { %v1957_v23 = vmul.f32 1.442695, %v1956_v21 }
 0x907   : > { %v1965_v24 = vpop.permute.xlu1 %1964 }
 0x908   : > { %4947 = vpow2.f32 %v1957_v23  ;;  %4506 = vmatpush3.msk.msra.mxu1 %vm1538_vm4, %v1965_v24  ;;  %v2330_v24 = vsub.s32 0, %v6210_v22 }
 0x909   : > { %4516 = vmatprep.subr.mxu1 %v5498_v2 }
 0x90b   : > { %v2090_v31 = vpop.permute.xlu1 %2089 }
 0x912   : > { %v4948_v26 = vpop.eup %4947 }
 0x913   : > { %v1959_v27 = vsel %vm1520_vm6, %v4948_v26, 0.0 }
 0x914   : > { %1960 = vadd.xlane.f32.xlu0 %v1959_v27  ;;  %v2335_v27 = vsub.s32 1, %v6210_v22 }
 0x92a   : > { %2091 = vrot.lane.b32.xlu0 %v6193_v13, %s5505_s29 }
 0x9a1   : > { %v1961_v28 = vpop.xlane.xlu0 %1960 }
 0x9a2   : > { %4949 = vrcp.f32 %v1961_v28 }
 0x9a5   : > { %v2092_v30 = vpop.permute.xlu0 %2091 }
 0x9ac   : > { %v4950_v16 = vpop.eup %4949 }
 0x9ad   : > { %v1963_v29 = vmul.f32 %v4950_v16, %v4948_v26  ;;  %v6327_v26 = vld [vmem:[%s6802_s16] sm:$0x3f]  ;;  %s6818_s16 = smov (!%p4340_p3), %s6817_s28 }
 0x9ae   : > { %v2331_v28 = vrot.slane %v6327_v26, %v2330_v24 }
 0x9af   : > { %4508 = vmatmul.mubr.msk.f32.vlgmr.msra.gmra.mrb[6].mxu1 %vm1534_vm7, %v1963_v29 }
 0x9b0   : > { %4517 = vmatpush3.xpose.msk.msra.mxu1 %vm1441_vm3, %v2092_v30  ;;  %4518 = vmatprep.mubr.msk.f32.mxu1 %vm5499_vm1, %v5498_v2  ;;  %v2336_v30 = vrot.slane %v6327_v26, %v2335_v27 }
 0x9b1   : > { %4521 = vmatprep.subr.mxu1 %v5498_v2 }
 0x9b3   : > { %4519 = vmatmul.mubr.msk.f32.vlgmr.msra.gmra.mrb[12].mxu1 %vm1441_vm3, %v2090_v31 }
 0x9b4   : > { %4523 = vmatprep.mubr.msk.f32.mxu1 %vm5499_vm1, %v5498_v2 }
 0xa82   : > { %v2037_v34 = vpop.f32.mrb[6].mxu1 }
 0xa83   : > { %v2041_v35 = vpack.c.bf16 %v2037_v34, %v2037_v34  ;;  %v4509_v36 = vpop.f32.mrb[7].mxu1  ;;  %v4301_v34 = vld [vmem:[%s6803_s24] ss:$0 sm:$0xff] }
 0xa85   : > { %4513 = vmatmul.mubr.msk.bf16.vlgmr.msra.gmra.mrb[16].mxu0 %vm1441_vm3, %v2041_v35 }
 0xa86   : > { %v2163_v37 = vpop.f32.mrb[12].mxu1  ;;  %4528 = vmatprep.mubr.msk.bf16.mxu0 %vm5499_vm1, %v5498_v2  ;;  %4527 = vmatpush3.bf16.msra.mxu0 %v2262_v55 }
 0xa87   : > { %v2167_v38 = vmul.f32 0.35355338, %v2163_v37  ;;  %v4520_v39 = vpop.f32.mrb[13].mxu1  ;;  %4540 = vmatprep.subr.bf16.mxu0 %v5498_v2 }
 0xa89   : > { %v2168_v40 = vadd.f32 %v2167_v38, %v6214_v25 }
 0xa8b   : > { %v2169_v41 = vsel %vm1520_vm6, %v2168_v40, -inf }
 0xa8c   : > { %2170 = vmax.xlane.f32.xlu1 %v2169_v41 }
 0xa9d   : > { %2180 = vrot.lane.b32.xlu1 %v6193_v13, %s5506_s17 }
 0xb19   : > { %v2171_v42 = vpop.xlane.xlu1 %2170 }
 0xb1a   : > { %v2172_v43 = vsub.f32 %v2168_v40, %v2171_v42 }
 0xb1c   : > { %v2173_v44 = vmul.f32 1.442695, %v2172_v43 }
 0xb1d   : > { %v2181_v45 = vpop.permute.xlu1 %2180 }
 0xb1e   : > { %4951 = vpow2.f32 %v2173_v44  ;;  %4522 = vmatpush3.msk.msra.mxu1 %vm1538_vm4, %v2181_v45 }
 0xb1f   : > { %4532 = vmatprep.subr.bf16.mxu1 %v5498_v2 }
 0xb28   : > { %v4952_v46 = vpop.eup %4951 }
 0xb29   : > { %v2175_v25 = vsel %vm1520_vm6, %v4952_v46, 0.0 }
 0xb2a   : > { %2176 = vadd.xlane.f32.xlu0 %v2175_v25 }
 0xb58   : > { %v2082_v47 = vpop.f32.mrb[16].mxu0 }
 0xb59   : > { %v2088_v48 = vadd.f32 %v2082_v47, %v6260_v9  ;;  %v4514_v49 = vpop.f32.mrb[17].mxu0 }
 0xb5a   : > { %v2085_v50 = vpop.f32.mrb[18].mxu0 }
 0xb5b   : > { %v4515_v13 = vpop.f32.mrb[19].mxu0 }
 0xbb7   : > { %v2177_v51 = vpop.xlane.xlu0 %2176 }
 0xbb8   : > { %4953 = vrcp.f32 %v2177_v51 }
 0xbc2   : > { %v4954_v52 = vpop.eup %4953 }
 0xbc3   : > { %v2179_v53 = vmul.f32 %v4954_v52, %v4952_v46 }
 0xbc5   : > { %4524 = vmatmul.mubr.msk.f32.vlgmr.msra.gmra.mrb[14].mxu1 %vm1534_vm7, %v2179_v53 }
 0xbc6   : > { %4536 = vmatprep.mubr.msk.bf16.mxu1 %vm5499_vm1, %v5498_v2  ;;  %4533 = vmatpush3.bf16.msra.mxu1 %v4931_v17  ;;  %v2349_v17 = vld [vmem:[%s6148_s30 + $0xc] sm:$0xf] }
 0xbc7   : > { %4534 = vmatprep.subr.bf16.mxu1 %v5498_v2 }
 0xbca   : > { %4535 = vmatpush3.bf16.msra.mxu1 %v4932_v18 }
 0xbcb   : > { %4672 = vmatprep.subr.bf16.mxu1 %v5507_v19 }
 0xc98   : > { %v2253_v56 = vpop.f32.mrb[14].mxu1 }
 0xc99   : > { %v2257_v57 = vpack.c.bf16 %v2253_v56, %v2253_v56  ;;  %v4525_v58 = vpop.f32.mrb[15].mxu1 }
 0xc9b   : > { %4529 = vmatmul.mubr.msk.bf16.vlgmr.msra.gmra.mrb[20].mxu0 %vm1441_vm3, %v2257_v57 }
 0xc9c   : > { %4544 = vmatprep.mubr.msk.bf16.mxu0 %vm5499_vm1, %v5498_v2  ;;  %4541 = vmatpush3.bf16.msra.mxu0 %v4929_v5 }
 0xc9d   : > { %4542 = vmatprep.subr.bf16.mxu0 %v5498_v2 }
 0xca0   : > { %4543 = vmatpush3.bf16.msra.mxu0 %v4930_v12 }
 0xca1   : > { %4676 = vmatprep.subr.bf16.mxu0 %v5507_v19 }
 0xd6e   : > { %v2298_v60 = vpop.f32.mrb[20].mxu0 }
 0xd6f   : > { %v2304_v61 = vadd.f32 %v2298_v60, %v2088_v48  ;;  %v4530_v62 = vpop.f32.mrb[21].mxu0 }
 0xd70   : > { %v2301_v63 = vpop.f32.mrb[22].mxu0 }
 0xd71   : > { %v2311_v0 = vadd.f32 %v4296_v59, %v2304_v61  ;;  %v4531_v1 = vpop.f32.mrb[23].mxu0 }
 0xd73   : > { %v2312_v3 = vadd.f32 %v2311_v0, %v6177_v6  ;;  %v6314_v6 = vld [vmem:[%s6121_s20 + $0x8] sm:$0x1]  ;;  %s6806_s20 = scalar_lea.vmem [#allocation12], %s6076_s2 }
 0xd74   : > { %v2415_v15 = vpack.c.bf16 %v6314_v6, %v1302_v14  ;;  %v4297_v25 = vld [vmem:[%s6806_s20] ss:$0 sm:$0xff] }
 0xd75   : > { %v2314_v4 = vsel %vm2313_vm8, %v2312_v3, 0.0 }
 0xd76   : > { %2315 = vadd.xlane.f32.xlu0 %v2314_v4  ;;  %4545 = vmatmul.mubr.msk.bf16.vlgmr.msra.gmra.mrb[24].mxu0 %vm1339_vm2, %v2415_v15 }
 0xd77   : > { %4559 = vmatprep.mubr.msk.f32.mxu0 %vm5499_vm1, %v5498_v2 }
 0xe03   : > { %v2316_v7 = vpop.xlane.xlu0 %2315 }
 0xe04   : > { %v2318_v8 = vmul.f32 0.03125, %v2316_v7 }
 0xe06   : > { %v2319_v9 = vsub.f32 %v2312_v3, %v2318_v8 }
 0xe08   : > { %v2320_v10 = vmul.f32 %v2319_v9, %v2319_v9 }
 0xe0a   : > { %v2321_v11 = vsel %vm2313_vm8, %v2320_v10, 0.0 }
 0xe0b   : > { %2322 = vadd.xlane.f32.xlu0 %v2321_v11 }
 0xe49   : > { %v2471_v35 = vpop.f32.mrb[24].mxu0 }
 0xe4a   : > { %v2472_v36 = vadd.f32 %v4301_v34, %v2471_v35  ;;  %v4546_v37 = vpop.f32.mrb[25].mxu0 }
 0xe4b   : > { %v2474_v38 = vpop.f32.mrb[26].mxu0 }
 0xe4c   : > { %v2475_v39 = vadd.f32 %v4301_v34, %v2474_v38  ;;  %v4547_v40 = vpop.f32.mrb[27].mxu0 }
 0xe4e   : > { %v6347_v42 = vpack.i.bf16 %v2475_v39, %v2472_v36  ;;  %v4673_v43 = vpack.c.bf16 %v2475_v39, %v2472_v36 }
 0xe50   : > { %4891 = vrot.lane.b32.xlu0 %v6347_v42, %s5501_s4 }
 0xe98   : > { %v2323_v20 = vpop.xlane.xlu0 %2322 }
 0xe99   : > { %v2324_v21 = vmul.f32 0.03125, %v2323_v20 }
 0xe9b   : > { %v2325_v23 = vadd.f32 1e-05, %v2324_v21 }
 0xe9d   : > { %4955 = vrsqrt.f32 %v2325_v23 }
 0xea7   : > { %v4956_v16 = vpop.eup %4955 }
 0xea8   : > { %v2327_v29 = vmul.f32 %v4956_v16, %v2319_v9  ;;  %v2347_v16 = vld [vmem:[%s6148_s30 + $0x4] sm:$0xf] }
 0xeaa   : > { %v2332_v31 = vmul.f32 %v2331_v28, %v2327_v29 }
 0xeac   : > { %v6332_v32 = vadd.f32 %v2336_v30, %v2332_v31  ;;  %v2832_v30 = vsel %vm1538_vm4, %v2347_v16, 0  ;;  %v2346_v31 = vld [vmem:[%s6148_s30] sm:$0xf] }
 0xeae   : > { %v2353_v33 = vpack.c.bf16 %v6332_v32, %v6332_v32 }
 0xeb0   : > { %4537 = vmatmul.mubr.msk.bf16.vlgmr.msra.gmra.mrb[16].mxu1 %vm1339_vm2, %v2353_v33  ;;  %v2878_v33 = vsel %vm1538_vm4, %v2346_v31, 0 }
 0xeb1   : > { %4552 = vmatprep.mubr.msk.f32.mxu1 %vm5499_vm1, %v5498_v2  ;;  %4675 = vmatpush3.bf16.xpose.msk.msra.mxu1 %vm6343_vm9, %v4673_v43 }
 0xeb2   : > { %4680 = vmatprep.subr.bf16.mxu1 %v5507_v19 }
 0xec2   : > { %v4892_v44 = vpop.permute.xlu0 %4891 }
 0xec3   : > { %v4894_v45 = vunpack.i.h.bf16 %v4892_v44  ;;  %v4893_v46 = vunpack.i.l.bf16 %v4892_v44 }
 0xec5   : > { %v4681_v48 = vpack.c.bf16 %v4894_v45, %v4893_v46 }
 0xf83   : > { %v2409_v47 = vpop.f32.mrb[16].mxu1 }
 0xf84   : > { %v6356_v49 = vadd.f32 %v4297_v25, %v2409_v47  ;;  %v4538_v50 = vpop.f32.mrb[17].mxu1 }
 0xf85   : > { %v2412_v13 = vpop.f32.mrb[18].mxu1 }
 0xf86   : > { %2653 = vrot.lane.b32.xlu1 %v6356_v49, %s5501_s4  ;;  %v4539_v51 = vpop.f32.mrb[19].mxu1  ;;  %4553 = vmatmul.mubr.msk.f32.vlgmr.msra.gmra.mrb[20].mxu1 %vm1441_vm3, %v6356_v49  ;;  %s6815_s4 = sld [smem:[#allocation68_spill]] (!%p4340_p3) }
 0xf87   : > { %4683 = vmatpush3.bf16.xpose.msk.msra.mxu1 %vm6343_vm9, %v4681_v48  ;;  %4566 = vmatprep.mubr.msk.f32.mxu1 %vm5499_vm1, %v5498_v2 }
 0xf88   : > { %4582 = vmatprep.subr.bf16.mxu1 %v5498_v2 }
 0xff8   : > { %v2654_v52 = vpop.permute.xlu1 %2653 }
 0xff9   : > { %4567 = vmatmul.mubr.msk.f32.vlgmr.msra.gmra.mrb[22].mxu1 %vm1441_vm3, %v2654_v52 }
 0xffa   : > { %4584 = vmatprep.mubr.msk.bf16.mxu1 %vm5499_vm1, %v5498_v2  ;;  %4583 = vmatpush3.bf16.msra.mxu1 %v2878_v33 }
 0xffb   : > { %4692 = vmatprep.subr.bf16.mxu1 %v5507_v19 }
0x1059   : > { %v2553_v53 = vpop.f32.mrb[20].mxu1 }
0x105a   : > { %v2557_v54 = vmul.f32 0.35355338, %v2553_v53  ;;  %v4554_v55 = vpop.f32.mrb[21].mxu1 }
0x105c   : > { %v2559_v56 = vsel %vm2558_vm10, %v2557_v54, -inf }
0x105d   : > { %2560 = vmax.xlane.f32.xlu1 %v2559_v56 }
0x10cc   : > { %v2731_v57 = vpop.f32.mrb[22].mxu1 }
0x10cd   : > { %v2735_v58 = vmul.f32 0.35355338, %v2731_v57  ;;  %v4568_v59 = vpop.f32.mrb[23].mxu1 }
0x10cf   : > { %v2736_v60 = vsel %vm2558_vm10, %v2735_v58, -inf }
0x10d0   : > { %2737 = vmax.xlane.f32.xlu0 %v2736_v60 }
0x10e6   : > { %4901 = vrot.lane.b32.xlu0 %v6347_v42, %s5502_s22  ;;  %s6816_s22 = smov (!%p4340_p3), %s6815_s4 }
0x10ea   : > { %v2561_v61 = vpop.xlane.xlu1 %2560 }
0x10eb   : > { %v2562_v62 = vsub.f32 %v2557_v54, %v2561_v61 }
0x10ed   : > { %v2563_v63 = vmul.f32 1.442695, %v2562_v62 }
0x10ef   : > { %4957 = vpow2.f32 %v2563_v63 }
0x10f9   : > { %v4958_v0 = vpop.eup %4957 }
0x10fa   : > { %v2565_v1 = vsel %vm2558_vm10, %v4958_v0, 0.0 }
0x10fb   : > { %2566 = vadd.xlane.f32.xlu1 %v2565_v1 }
0x115d   : > { %v2738_v3 = vpop.xlane.xlu0 %2737 }
0x115e   : > { %v2739_v4 = vsub.f32 %v2735_v58, %v2738_v3 }
0x1160   : > { %v2740_v5 = vmul.f32 1.442695, %v2739_v4 }
0x1161   : > { %v4902_v11 = vpop.permute.xlu0 %4901 }
0x1162   : > { %4959 = vpow2.f32 %v2740_v5  ;;  %v4904_v20 = vunpack.i.h.bf16 %v4902_v11  ;;  %v4903_v21 = vunpack.i.l.bf16 %v4902_v11 }
0x1164   : > { %v4685_v28 = vpack.c.bf16 %v4904_v20, %v4903_v21 }
0x116c   : > { %v4960_v7 = vpop.eup %4959 }
0x116d   : > { %v2742_v8 = vsel %vm2558_vm10, %v4960_v7, 0.0 }
0x116e   : > { %2743 = vadd.xlane.f32.xlu1 %v2742_v8 }
0x117f   : > { %4896 = vrot.lane.b32.xlu1 %v6347_v42, %s5500_s1 }
0x1183   : > { %4906 = vrot.lane.b32.xlu1 %v6347_v42, %s5503_s23 }
0x1187   : > { %2920 = vrot.lane.b32.xlu1 %v6356_v49, %s5503_s23 }
0x1188   : > { %v2567_v9 = vpop.xlane.xlu1 %2566 }
0x1189   : > { %4961 = vrcp.f32 %v2567_v9 }
0x1193   : > { %v4962_v18 = vpop.eup %4961 }
0x1194   : > { %v2569_v24 = vmul.f32 %v4962_v18, %v4958_v0 }
0x11fb   : > { %v2744_v10 = vpop.xlane.xlu1 %2743 }
0x11fc   : > { %4963 = vrcp.f32 %v2744_v10 }
0x11ff   : > { %v4897_v12 = vpop.permute.xlu1 %4896 }
0x1200   : > { %v4899_v14 = vunpack.i.h.bf16 %v4897_v12  ;;  %v4898_v15 = vunpack.i.l.bf16 %v4897_v12 }
0x1202   : > { %v4677_v23 = vpack.c.bf16 %v4899_v14, %v4898_v15  ;;  %v2348_v14 = vld [vmem:[%s6148_s30 + $0x8] sm:$0xf]  ;;  %s6810_s30 = scalar_lea.vmem [#allocation17], %s6076_s2 }
0x1203   : > { %v4907_v34 = vpop.permute.xlu1 %4906  ;;  %v3099_v15 = vsel %vm1538_vm4, %v2348_v14, 0  ;;  %v4936_v14 = vld [vmem:[%s6159_s6 + $0x8] sm:$0xff]  }
0x1204   : > { %4679 = vmatpush3.bf16.msk.msra.mxu0 %vm6382_vm13, %v4677_v23  ;;  %v4909_v38 = vunpack.i.h.bf16 %v4907_v34  ;;  %v4908_v39 = vunpack.i.l.bf16 %v4907_v34 }
0x1205   : > { %4684 = vmatprep.subr.bf16.mxu0 %v5507_v19 }
0x1206   : > { %v4964_v27 = vpop.eup %4963  ;;  %v4689_v45 = vpack.c.bf16 %v4909_v38, %v4908_v39 }
0x1207   : > { %4560 = vmatmul.mubr.msk.f32.vlgmr.msra.gmra.mrb[28].mxu0 %vm2575_vm14, %v2569_v24  ;;  %v2746_v29 = vmul.f32 %v4964_v27, %v4960_v7  ;;  %v2921_v46 = vpop.permute.xlu1 %2920 }
0x1208   : > { %4687 = vmatpush3.bf16.msk.msra.mxu0 %vm6382_vm13, %v4685_v28  ;;  %4573 = vmatprep.mubr.msk.f32.mxu0 %vm5499_vm1, %v5498_v2 }
0x1209   : > { %4576 = vmatprep.subr.bf16.mxu0 %v5498_v2 }
0x120b   : > { %4574 = vmatmul.mubr.msk.f32.vlgmr.msra.gmra.mrb[30].mxu0 %vm2575_vm14, %v2746_v29 }
0x120c   : > { %4577 = vmatpush3.bf16.msra.mxu0 %v2832_v30  ;;  %4578 = vmatprep.mubr.msk.bf16.mxu0 %vm5499_vm1, %v5498_v2 }
0x120d   : > { %4688 = vmatprep.subr.bf16.mxu0 %v5507_v19 }
0x12da   : > { %v2648_v35 = vpop.f32.mrb[28].mxu0 }
0x12db   : > { %v2652_v36 = vpack.c.bf16 %v2648_v35, %v2648_v35  ;;  %v4561_v37 = vpop.f32.mrb[29].mxu0 }
0x12dd   : > { %4585 = vmatmul.mubr.msk.bf16.vlgmr.msra.gmra.mrb[24].mxu1 %vm1441_vm3, %v2652_v36 }
0x12de   : > { %v2823_v40 = vpop.f32.mrb[30].mxu0  ;;  %4599 = vmatprep.mubr.msk.f32.mxu1 %vm5499_vm1, %v5498_v2 }
0x12df   : > { %v2827_v43 = vpack.c.bf16 %v2823_v40, %v2823_v40  ;;  %v4575_v44 = vpop.f32.mrb[31].mxu0 }
0x12e1   : > { %4579 = vmatmul.mubr.msk.bf16.vlgmr.msra.gmra.mrb[32].mxu0 %vm1441_vm3, %v2827_v43 }
0x12e2   : > { %4691 = vmatpush3.bf16.xpose.msk.msra.mxu0 %vm6343_vm9, %v4689_v45  ;;  %4592 = vmatprep.mubr.msk.f32.mxu0 %vm5499_vm1, %v5498_v2  ;;  %v3321_v45 = vsel %vm1538_vm4, %v2349_v17, 0 }
0x12e3   : > { %4602 = vmatprep.subr.bf16.mxu0 %v5498_v2 }
0x12e9   : > { %4593 = vmatmul.mubr.msk.f32.vlgmr.msra.gmra.mrb[36].mxu0 %vm1441_vm3, %v2921_v46 }
0x12ea   : > { %4604 = vmatprep.mubr.msk.bf16.mxu0 %vm5499_vm1, %v5498_v2  ;;  %4603 = vmatpush3.bf16.msra.mxu0 %v3099_v15  ;;  %v4937_v15 = vld [vmem:[%s6159_s6 + $0x10] sm:$0xff]  }
0x12eb   : > { %4700 = vmatprep.subr.bf16.mxu0 %v5507_v19 }
0x13b0   : > { %v2914_v25 = vpop.f32.mrb[24].mxu1 }
0x13b1   : > { %v4586_v47 = vpop.f32.mrb[25].mxu1 }
0x13b2   : > { %v2917_v48 = vpop.f32.mrb[26].mxu1 }
0x13b3   : > { %v4587_v50 = vpop.f32.mrb[27].mxu1  ;;  %v4329_v48 = vld [vmem:[%s6809_s13] ss:$0 sm:$0xff] }
0x13b4   : > { %v2868_v13 = vpop.f32.mrb[32].mxu0 }
0x13b5   : > { %v6416_v51 = vadd.f32 %v2914_v25, %v2868_v13  ;;  %v4580_v52 = vpop.f32.mrb[33].mxu0 }
0x13b6   : > { %v2871_v53 = vpop.f32.mrb[34].mxu0 }
0x13b7   : > { %v4581_v54 = vpop.f32.mrb[35].mxu0 }
0x13bc   : > { %v2998_v55 = vpop.f32.mrb[36].mxu0 }
0x13bd   : > { %v3002_v56 = vmul.f32 0.35355338, %v2998_v55  ;;  %v4594_v57 = vpop.f32.mrb[37].mxu0 }
0x13bf   : > { %v3003_v58 = vsel %vm2558_vm10, %v3002_v56, -inf }
0x13c0   : > { %3004 = vmax.xlane.f32.xlu1 %v3003_v58 }
0x13d1   : > { %4916 = vrot.lane.b32.xlu1 %v6347_v42, %s5505_s29 }
0x13d5   : > { %3142 = vrot.lane.b32.xlu1 %v6356_v49, %s5505_s29 }
0x144d   : > { %v3005_v59 = vpop.xlane.xlu1 %3004 }
0x144e   : > { %v3006_v60 = vsub.f32 %v3002_v56, %v3005_v59 }
0x1450   : > { %v3007_v61 = vmul.f32 1.442695, %v3006_v60 }
0x1451   : > { %v4917_v7 = vpop.permute.xlu1 %4916 }
0x1452   : > { %4965 = vpow2.f32 %v3007_v61  ;;  %v4919_v8 = vunpack.i.h.bf16 %v4917_v7  ;;  %v4918_v9 = vunpack.i.l.bf16 %v4917_v7 }
0x1454   : > { %v4697_v11 = vpack.c.bf16 %v4919_v8, %v4918_v9 }
0x1455   : > { %v3143_v12 = vpop.permute.xlu1 %3142 }
0x145c   : > { %v4966_v62 = vpop.eup %4965 }
0x145d   : > { %v3009_v63 = vsel %vm2558_vm10, %v4966_v62, 0.0 }
0x145e   : > { %3010 = vadd.xlane.f32.xlu0 %v3009_v63  ;;  %v4934_v63 = vld [vmem:[%s6153_s12 + $0x8] sm:$0xff]  }
0x1474   : > { %4911 = vrot.lane.b32.xlu0 %v6347_v42, %s5504_s11 }
0x14eb   : > { %v3011_v0 = vpop.xlane.xlu0 %3010 }
0x14ec   : > { %4967 = vrcp.f32 %v3011_v0 }
0x14ef   : > { %v4912_v1 = vpop.permute.xlu0 %4911 }
0x14f0   : > { %v4914_v3 = vunpack.i.h.bf16 %v4912_v1  ;;  %v4913_v4 = vunpack.i.l.bf16 %v4912_v1 }
0x14f2   : > { %v4693_v5 = vpack.c.bf16 %v4914_v3, %v4913_v4  ;;  %v3387_v3 = vsub.s32 2, %v6210_v22  ;;  %v3392_v4 = vsub.s32 3, %v6210_v22 }
0x14f4   : > { %4695 = vmatpush3.bf16.msk.msra.mxu1 %vm6382_vm13, %v4693_v5  ;;  %v3388_v5 = vrot.slane %v6327_v26, %v3387_v3  ;;  %v3393_v8 = vrot.slane %v6327_v26, %v3392_v4  ;;  %v4984_v3 = vld [vmem:[%s6814_s25 + $0x8] sm:$0xff] (!%p4340_p3)  }
0x14f5   : > { %4696 = vmatprep.subr.bf16.mxu1 %v5507_v19 }
0x14f6   : > { %v4968_v49 = vpop.eup %4967 }
0x14f7   : > { %v3013_v10 = vmul.f32 %v4968_v49, %v4966_v62  ;;  %v4933_v62 = vld [vmem:[%s6153_s12] sm:$0xff]  }
0x14f9   : > { %4600 = vmatmul.mubr.msk.f32.vlgmr.msra.gmra.mrb[28].mxu1 %vm2575_vm14, %v3013_v10 }
0x14fa   : > { %4612 = vmatprep.mubr.msk.f32.mxu1 %vm5499_vm1, %v5498_v2 }
0x14fd   : > { %4699 = vmatpush3.bf16.xpose.msk.msra.mxu1 %vm6343_vm9, %v4697_v11 }
0x14fe   : > { %4622 = vmatprep.subr.bf16.mxu1 %v5498_v2 }
0x1504   : > { %4613 = vmatmul.mubr.msk.f32.vlgmr.msra.gmra.mrb[30].mxu1 %vm1441_vm3, %v3143_v12  ;;  %v4935_v12 = vld [vmem:[%s6159_s6] sm:$0xff]  }
0x1505   : > { %4624 = vmatprep.mubr.msk.bf16.mxu1 %vm5499_vm1, %v5498_v2  ;;  %4623 = vmatpush3.bf16.msra.mxu1 %v3321_v45 }
0x1506   : > { %4636 = vmatprep.subr.bf16.mxu1 %v5498_v2 }
0x15cc   : > { %v3090_v18 = vpop.f32.mrb[28].mxu1 }
0x15cd   : > { %v3094_v20 = vpack.c.bf16 %v3090_v18, %v3090_v18  ;;  %v4601_v21 = vpop.f32.mrb[29].mxu1  ;;  %v4938_v18 = vld [vmem:[%s6159_s6 + $0x18] sm:$0xff]  }
0x15cf   : > { %4605 = vmatmul.mubr.msk.bf16.vlgmr.msra.gmra.mrb[40].mxu0 %vm1441_vm3, %v3094_v20  ;;  %v4330_v20 = vld [vmem:[%s6810_s30] ss:$0 sm:$0xff] }
0x15d0   : > { %4619 = vmatprep.mubr.msk.f32.mxu0 %vm5499_vm1, %v5498_v2 }
0x15d7   : > { %v3220_v41 = vpop.f32.mrb[30].mxu1 }
0x15d8   : > { %v3224_v23 = vmul.f32 0.35355338, %v3220_v41  ;;  %v4614_v24 = vpop.f32.mrb[31].mxu1 }
0x15da   : > { %v3225_v27 = vsel %vm2558_vm10, %v3224_v23, -inf }
0x15db   : > { %3226 = vmax.xlane.f32.xlu0 %v3225_v27 }
0x15f1   : > { %4921 = vrot.lane.b32.xlu0 %v6347_v42, %s5506_s17 }
0x1668   : > { %v3227_v28 = vpop.xlane.xlu0 %3226 }
0x1669   : > { %v3228_v16 = vsub.f32 %v3224_v23, %v3227_v28 }
0x166b   : > { %v3229_v19 = vmul.f32 1.442695, %v3228_v16 }
0x166c   : > { %v4922_v29 = vpop.permute.xlu0 %4921 }
0x166d   : > { %4969 = vpow2.f32 %v3229_v19  ;;  %v4924_v30 = vunpack.i.h.bf16 %v4922_v29  ;;  %v4923_v31 = vunpack.i.l.bf16 %v4922_v29 }
0x166f   : > { %v4701_v33 = vpack.c.bf16 %v4924_v30, %v4923_v31 }
0x1671   : > { %4703 = vmatpush3.bf16.msk.msra.mxu0 %vm6382_vm13, %v4701_v33 }
0x1672   : > { %4628 = vmatprep.subr.bf16.mxu0 %v5498_v2 }
0x1677   : > { %v4970_v34 = vpop.eup %4969 }
0x1678   : > { %v3231_v35 = vsel %vm2558_vm10, %v4970_v34, 0.0 }
0x1679   : > { %3232 = vadd.xlane.f32.xlu1 %v3231_v35 }
0x16a2   : > { %v3135_v36 = vpop.f32.mrb[40].mxu0 }
0x16a3   : > { %v3141_v42 = vadd.f32 %v3135_v36, %v6416_v51  ;;  %v4606_v37 = vpop.f32.mrb[41].mxu0  ;;  %v4334_v36 = vld [vmem:[%s1286_s27] ss:$0 sm:$0xff] }
0x16a4   : > { %v3138_v38 = vpop.f32.mrb[42].mxu0 }
0x16a5   : > { %v4607_v39 = vpop.f32.mrb[43].mxu0 }
0x1706   : > { %v3233_v40 = vpop.xlane.xlu1 %3232 }
0x1707   : > { %4971 = vrcp.f32 %v3233_v40 }
0x1711   : > { %v4972_v43 = vpop.eup %4971 }
0x1712   : > { %v3235_v44 = vmul.f32 %v4972_v43, %v4970_v34 }
0x1714   : > { %4620 = vmatmul.mubr.msk.f32.vlgmr.msra.gmra.mrb[38].mxu0 %vm2575_vm14, %v3235_v44 }
0x1715   : > { %4632 = vmatprep.mubr.msk.bf16.mxu0 %vm5499_vm1, %v5498_v2  ;;  %4629 = vmatpush3.bf16.msra.mxu0 %v4933_v62 }
0x1716   : > { %4630 = vmatprep.subr.bf16.mxu0 %v5498_v2 }
0x1719   : > { %4631 = vmatpush3.bf16.msra.mxu0 %v4934_v63 }
0x17e7   : > { %v3312_v46 = vpop.f32.mrb[38].mxu0 }
0x17e8   : > { %v3316_v25 = vpack.c.bf16 %v3312_v46, %v3312_v46  ;;  %v4621_v47 = vpop.f32.mrb[39].mxu0 }
0x17ea   : > { %4625 = vmatmul.mubr.msk.bf16.vlgmr.msra.gmra.mrb[32].mxu1 %vm1441_vm3, %v3316_v25  ;;  %vm3809_vm3 = vcmask (!%p4340_p3), 73728  }
0x17eb   : > { %4644 = vmatprep.mubr.msk.bf16.mxu1 %vm5499_vm1, %v5498_v2  ;;  %4637 = vmatpush3.bf16.msra.mxu1 %v4935_v12  ;;  %vm3676_vm1 = vcmask (!%p4340_p3), 76800  }
0x17ec   : > { %4638 = vmatprep.subr.bf16.mxu1 %v5498_v2 }
0x17ef   : > { %4639 = vmatpush3.bf16.msra.mxu1 %v4936_v14  ;;  %v4981_v14 = vld [vmem:[%s6817_s28] sm:$0xff] (!%p4340_p3)  }
0x17f0   : > { %4640 = vmatprep.subr.bf16.mxu1 %v5498_v2 }
0x17f3   : > { %4641 = vmatpush3.bf16.msra.mxu1 %v4937_v15 }
0x17f4   : > { %4642 = vmatprep.subr.bf16.mxu1 %v5498_v2 }
0x17f7   : > { %4643 = vmatpush3.bf16.msra.mxu1 %v4938_v18 }
0x18bd   : > { %v3357_v50 = vpop.f32.mrb[32].mxu1 }
0x18be   : > { %v3363_v13 = vadd.f32 %v3357_v50, %v3141_v42  ;;  %v4626_v51 = vpop.f32.mrb[33].mxu1 }
0x18bf   : > { %v3360_v52 = vpop.f32.mrb[34].mxu1  ;;  %v3571_v51 = vsub.s32 4, %v6210_v22 }
0x18c0   : > { %v3370_v53 = vadd.f32 %v4329_v48, %v3363_v13  ;;  %v4627_v54 = vpop.f32.mrb[35].mxu1  ;;  %v3576_v52 = vsub.s32 5, %v6210_v22 }
0x18c2   : > { %v3371_v55 = vadd.f32 %v3370_v53, %v6332_v32  ;;  %v3572_v53 = vrot.slane %v6327_v26, %v3571_v51 }
0x18c4   : > { %v3372_v56 = vsel %vm2313_vm8, %v3371_v55, 0.0 }
0x18c5   : > { %3373 = vadd.xlane.f32.xlu1 %v3372_v56 }
0x1952   : > { %v3374_v57 = vpop.xlane.xlu1 %3373 }
0x1953   : > { %v3375_v58 = vmul.f32 0.03125, %v3374_v57 }
0x1955   : > { %v3376_v59 = vsub.f32 %v3371_v55, %v3375_v58  ;;  %v3577_v55 = vrot.slane %v6327_v26, %v3576_v52  ;;  %v4979_v26 = vld [vmem:[%s6813_s15] sm:$0xff] (!%p4340_p3)  }
0x1957   : > { %v3377_v60 = vmul.f32 %v3376_v59, %v3376_v59 }
0x1959   : > { %v3378_v61 = vsel %vm2313_vm8, %v3377_v60, 0.0 }
0x195a   : > { %3379 = vadd.xlane.f32.xlu1 %v3378_v61 }
0x19e7   : > { %v3380_v0 = vpop.xlane.xlu1 %3379 }
0x19e8   : > { %v3381_v1 = vmul.f32 0.03125, %v3380_v0  ;;  %v5509_v0 = vmov (!%p4340_p3), 0.0  }
0x19e9   : > { %4648 = vmatprep.subr.bf16.mxu0 (!%p4340_p3), %v5509_v0  ;;  %4656 = vmatprep.subr.bf16.mxu1 (!%p4340_p3), %v5509_v0 }
0x19ea   : > { %v3382_v32 = vadd.f32 1e-05, %v3381_v1  ;;  %v4980_v1 = vld [vmem:[%s6813_s15 + $0x8] sm:$0xff] (!%p4340_p3)  }
0x19ec   : > { %4973 = vrsqrt.f32 %v3382_v32  ;;  %v4982_v32 = vld [vmem:[%s6814_s25] sm:$0xff] (!%p4340_p3)  }
0x19f6   : > { %v4974_v7 = vpop.eup %4973 }
0x19f7   : > { %v3384_v49 = vmul.f32 %v4974_v7, %v3376_v59 }
0x19f9   : > { %v3389_v9 = vmul.f32 %v3388_v5, %v3384_v49 }
0x19fb   : > { %v3394_v10 = vadd.f32 %v3393_v8, %v3389_v9  ;;  %v4341_v8 = vld [vmem:[%s6815_s4] ss:$0 sm:$0xff] (!%p4340_p3) }
0x19fd   : > { %v3399_v11 = vpack.c.bf16 %v3394_v10, %v3394_v10 }
0x19ff   : > { %4633 = vmatmul.mubr.msk.bf16.vlgmr.msra.gmra.mrb[44].mxu0 %vm1339_vm2, %v3399_v11 }
0x1a00   : > { %4652 = vmatprep.mubr.msk.bf16.mxu0 (!%p4340_p3), %vm5510_vm0, %v5509_v0  ;;  %4649 = vmatpush3.bf16.msra.mxu0 (!%p4340_p3), %v4979_v26 }
0x1a01   : > { %4650 = vmatprep.subr.bf16.mxu0 (!%p4340_p3), %v5509_v0 }
0x1a04   : > { %4651 = vmatpush3.bf16.msra.mxu0 (!%p4340_p3), %v4980_v1 }
0x1a05   : > { %4664 = vmatprep.subr.bf16.mxu0 (!%p4340_p3), %v5509_v0 }
0x1ad2   : > { %v3456_v21 = vpop.f32.mrb[44].mxu0 }
0x1ad3   : > { %v3457_v41 = vadd.f32 %v4330_v20, %v3456_v21  ;;  %v4634_v23 = vpop.f32.mrb[45].mxu0  ;;  %v4983_v21 = vld [vmem:[%s6818_s16 + $0x8] sm:$0xff] (!%p4340_p3)  }
0x1ad4   : > { %v3459_v24 = vpop.f32.mrb[46].mxu0 }
0x1ad5   : > { %v3462_v27 = vmul.f32 %v3457_v41, %v3457_v41  ;;  %v4635_v28 = vpop.f32.mrb[47].mxu0  ;;  %v3691_v24 = vpack.c.bf16 (!%p4340_p3), %v6314_v6, %v6314_v6 }
0x1ad7   : > { %v3463_v16 = vmul.f32 %v3462_v27, %v3457_v41 }
0x1ad9   : > { %v3464_v19 = vmul.f32 0.044715, %v3463_v16 }
0x1adb   : > { %v3465_v29 = vadd.f32 %v3464_v19, %v3457_v41 }
0x1add   : > { %v3466_v30 = vmul.f32 0.7978846, %v3465_v29 }
0x1adf   : > { %4975 = vtanh.f32 %v3466_v30  ;;  %v4343_v30 = vld [vmem:[#allocation18] ss:$0 sm:$0xff] (!%p4340_p3) }
0x1ae9   : > { %v4976_v31 = vpop.eup %4975 }
0x1aea   : > { %v3468_v33 = vadd.f32 1.0, %v4976_v31 }
0x1aec   : > { %v3469_v34 = vmul.f32 0.5, %v3468_v33 }
0x1aee   : > { %v3470_v2 = vmul.f32 %v3469_v34, %v3457_v41 }
0x1af0   : > { %v3479_v35 = vpack.c.bf16 %v3470_v2, %v3470_v2 }
0x1af2   : > { %4645 = vmatmul.mubr.msk.bf16.vlgmr.msra.gmra.mrb[36].mxu1 %vm3511_vm15, %v3479_v35 }
0x1af3   : > { %4660 = vmatprep.mubr.msk.bf16.mxu1 (!%p4340_p3), %vm5510_vm0, %v5509_v0  ;;  %4657 = vmatpush3.bf16.msra.mxu1 (!%p4340_p3), %v4982_v32 }
0x1af4   : > { %4658 = vmatprep.subr.bf16.mxu1 (!%p4340_p3), %v5509_v0 }
0x1af7   : > { %4659 = vmatpush3.bf16.msra.mxu1 (!%p4340_p3), %v4984_v3 }
0x1bc5   : > { %v3549_v42 = vpop.f32.mrb[36].mxu1 }
0x1bc6   : > { %v3550_v37 = vadd.f32 %v4334_v36, %v3549_v42  ;;  %v4646_v38 = vpop.f32.mrb[37].mxu1 }
0x1bc7   : > { %v3552_v39 = vpop.f32.mrb[38].mxu1 }
0x1bc8   : > { %v4647_v40 = vpop.f32.mrb[39].mxu1  ;;  %v3555_v43 = vadd.f32 %v3550_v37, %v3394_v10  ;;  %v4342_v10 = vld [vmem:[%s6816_s22 + $0x1] ss:$0 sm:$0xff] (!%p4340_p3)  ;;  %v3807_v39 = vld [vmem:[#allocation20] sm:$0x1] (!%p4340_p3) }
0x1bca   : > { %v3556_v44 = vsel %vm2313_vm8, %v3555_v43, 0.0 }
0x1bcb   : > { %3557 = vadd.xlane.f32.xlu1 %v3556_v44 }
0x1c58   : > { %v3558_v17 = vpop.xlane.xlu1 %3557 }
0x1c59   : > { %v3559_v45 = vmul.f32 0.03125, %v3558_v17 }
0x1c5b   : > { %v3560_v46 = vsub.f32 %v3555_v43, %v3559_v45 }
0x1c5d   : > { %v3561_v25 = vmul.f32 %v3560_v46, %v3560_v46 }
0x1c5f   : > { %v3562_v47 = vsel %vm2313_vm8, %v3561_v25, 0.0 }
0x1c60   : > { %3563 = vadd.xlane.f32.xlu1 %v3562_v47 }
0x1ced   : > { %v3564_v48 = vpop.xlane.xlu1 %3563 }
0x1cee   : > { %v3565_v50 = vmul.f32 0.03125, %v3564_v48 }
0x1cf0   : > { %v3566_v13 = vadd.f32 1e-05, %v3565_v50 }
0x1cf2   : > { %4977 = vrsqrt.f32 %v3566_v13 }
0x1cfc   : > { %v4978_v54 = vpop.eup %4977 }
0x1cfd   : > { %v3568_v56 = vmul.f32 %v4978_v54, %v3560_v46  ;;  %3583 = sbr.rel (%p4340_p3) target bundleno = 7974 (0x1f26), region = 172 }
0x1cff   : > { %v3573_v57 = vmul.f32 %v3572_v53, %v3568_v56 }
0x1d01   : > { %v3578_v58 = vadd.f32 %v3577_v55, %v3573_v57 }
0x1d03   : > { %3579 = vst.msk [vmem:[#allocation2] sm:$0xf] %vm2313_vm8, %v3578_v58  ;;  %v3586_v59 = vsel (!%p4340_p3), %vm2313_vm8, %v3578_v58, 0.0 }
0x1d04   : > { %3587 = vadd.xlane.f32.xlu0 %v3586_v59 }
0x1d91   : > { %v3588_v60 = vpop.xlane.xlu0 %3587 }
0x1d92   : > { %v3589_v61 = vmul.f32 0.03125, %v3588_v60 }
0x1d94   : > { %v3590_v62 = vsub.f32 %v3578_v58, %v3589_v61 }
0x1d96   : > { %v3591_v22 = vmul.f32 %v3590_v62, %v3590_v62 }
0x1d98   : > { %v3592_v63 = vsel %vm2313_vm8, %v3591_v22, 0.0 }
0x1d99   : > { %3593 = vadd.xlane.f32.xlu0 %v3592_v63 }
0x1e26   : > { %v3594_v4 = vpop.xlane.xlu0 %3593 }
0x1e27   : > { %v3595_v5 = vmul.f32 0.03125, %v3594_v4 }
0x1e29   : > { %v3596_v7 = vadd.f32 1e-05, %v3595_v5 }
0x1e2b   : > { %4985 = vrsqrt.f32 %v3596_v7 }
0x1e35   : > { %v4986_v49 = vpop.eup %4985 }
0x1e36   : > { %v3598_v9 = vmul.f32 %v4986_v49, %v3590_v62 }
0x1e38   : > { %v3603_v11 = vmul.f32 %v4341_v8, %v3598_v9 }
0x1e3a   : > { %v3608_v12 = vadd.f32 %v4342_v10, %v3603_v11 }
0x1e3c   : > { %v3613_v15 = vpack.c.bf16 %v3608_v12, %v3608_v12  ;;  %v3678_v18 = vsel %vm2313_vm8, %v3608_v12, 0.0 }
0x1e3d   : > { %v3679_v20 = vrot.slane %v3678_v18, 4 }
0x1e3e   : > { %4653 = vmatmul.mubr.msk.bf16.vlgmr.msra.gmra.mrb[0].mxu0 %vm1339_vm2, %v3613_v15 }
0x1e3f   : > { %4665 = vmatpush3.bf16.msra.mxu0 %v4981_v14  ;;  %4668 = vmatprep.mubr.msk.bf16.mxu0 %vm5510_vm0, %v5509_v0  ;;  %v3680_v41 = vadd.f32 %v3679_v20, %v3678_v18 }
0x1e40   : > { %4666 = vmatprep.subr.bf16.mxu0 %v5509_v0 }
0x1e41   : > { %v3681_v23 = vrot.slane %v3680_v41, 2 }
0x1e43   : > { %4667 = vmatpush3.bf16.msra.mxu0 %v4983_v21  ;;  %v3682_v27 = vadd.f32 %v3681_v23, %v3680_v41 }
0x1e45   : > { %v3683_v28 = vrot.slane %v3682_v27, 1 }
0x1e46   : > { %4669 = vmatmul.mubr.msk.bf16.vlgmr.msra.gmra.mrb[4].mxu0 %vm1339_vm2, %v3691_v24 }
0x1e47   : > { %v3684_v16 = vadd.f32 %v3683_v28, %v3682_v27 }
0x1e49   : > { %v3686_v19 = vmul.f32 0.25, %v3684_v16 }
0x1e4b   : > { %v3696_v29 = vpack.c.bf16 %v3686_v19, %v3686_v19 }
0x1e4d   : > { %4661 = vmatmul.mubr.msk.bf16.vlgmr.msra.gmra.mrb[0].mxu1 %vm1339_vm2, %v3696_v29 }
0x1f11   : > { %v3670_v31 = vpop.f32.mrb[0].mxu0 }
0x1f12   : > { %v3671_v33 = vadd.f32 %v4343_v30, %v3670_v31  ;;  %v4654_v34 = vpop.f32.mrb[1].mxu0 }
0x1f13   : > { %v3673_v2 = vpop.f32.mrb[2].mxu0 }
0x1f14   : > { %3677 = vst.msk [vmem:[%s6166_s19] sm:$0xf] %vm3676_vm1, %v3671_v33  ;;  %v4655_v35 = vpop.f32.mrb[3].mxu0 }
0x1f19   : > { %v3801_v6 = vpop.f32.mrb[4].mxu0 }
0x1f1a   : > { %v4670_v36 = vpop.f32.mrb[5].mxu0 }
0x1f1b   : > { %v3804_v42 = vpop.f32.mrb[6].mxu0 }
0x1f1c   : > { %v4671_v37 = vpop.f32.mrb[7].mxu0 }
0x1f20   : > { %v3746_v38 = vpop.f32.mrb[0].mxu1 }
0x1f21   : > { %v3802_v40 = vadd.f32 %v3801_v6, %v3746_v38  ;;  %v4662_v43 = vpop.f32.mrb[1].mxu1 }
0x1f22   : > { %v3749_v44 = vpop.f32.mrb[2].mxu1 }
0x1f23   : > { %v3808_v17 = vadd.f32 %v3807_v39, %v3802_v40  ;;  %v4663_v45 = vpop.f32.mrb[3].mxu1 }
0x1f25   : > { %3810 = vst.msk [vmem:[%s1231_s7] sm:$0x1] %vm3809_vm3, %v3808_v17 }
0x1f26 PF: > { %s6819_s13 = sld [smem:[#allocation38_spill]]  ;;  %s6820_s30 = sld [smem:[#allocation42_spill]] }
0x1f27   : > { %s6821_s26 = sld [smem:[#allocation74_spill]]  ;;  %s3829_s12 = sshll.u32 %s1231_s7, 4  ;;  %s3830_s12 = int_to_ptr.vmem [resolvable:$true] %s3829_s12 }
0x1f28   : > { %s3812_s18 = scalar_lea.sflag [#allocation5], %s6109_s9  ;;  %s5311_s21 = scalar_lea.vmem %s3830_s12, 16 }
0x1f29   : > { %p5312_p7 = scmp.ne.s32.totalorder %s3830_s12, %s5311_s21  ;;  %s5511_s6 = smov [#allocation21]  }
0x1f2a   : > { %s5315_s5 = sshll.u32 %s5511_s6, 4  ;;  %s5316_s5 = int_to_ptr.vmem [resolvable:$false] %s5315_s5 }
0x1f2b   : > { %s5317_s27 = scalar_lea.vmem %s5316_s5, 32  ;;  %p5318_p10 = scmp.lt.s32.totalorder %s3830_s12, %s5316_s5 }
0x1f2c   : > { %s4354_s2 = sshll.u32 %s6819_s13, 4  ;;  %p6822_p11 = scmp.ne.s32.totalorder %s6820_s30, 0 }
0x1f2d   : > { %s6538_s10 = scalar_lea.hbm %s6821_s26, %s4354_s2  ;;  %p5319_p0 = scmp.lt.s32.totalorder %s5317_s27, %s5311_s21 }
0x1f2e   : > { %p5313_p1 = pnand %p5312_p7, %p6822_p11 }
0x1f2f   : > { %p5320_p9 = por %p5319_p0, %p5318_p10 }
0x1f30   : > { %p5314_p8 = pneg %p5313_p1 }
0x1f32   : > { %p5321_p5 = pnand %p5320_p9, %p5314_p8 }
0x1f34   : > { %5324 = shalt.err (!%p5321_p5)
}
0x1f35   : > { %s5325_s7 = scalar_lea.hbm %s6538_s10, 16  ;;  %s5329_s1 = scalar_lea.hbm %s6821_s26, 32 }
0x1f36   : > { %p5326_p6 = scmp.ne.s32.totalorder %s6538_s10, %s5325_s7  ;;  %p5330_p13 = scmp.lt.u32.totalorder %s6538_s10, %s6821_s26 }
0x1f37   : > { %p5331_p2 = scmp.lt.u32.totalorder %s5329_s1, %s5325_s7  ;;  %p5333_p7 = scmp.lt.u32.totalorder %s5325_s7, %s6538_s10 }
0x1f38   : > { %p5327_p12 = pnand %p5326_p6, %p6822_p11 }
0x1f39   : > { %p5332_p3 = por %p5331_p2, %p5330_p13 }
0x1f3a   : > { %p5328_p4 = pneg %p5327_p12 }
0x1f3b   : > { %p5334_p1 = por %p5333_p7, %p5332_p3 }
0x1f3d   : > { %p5335_p8 = pnand %p5334_p1, %p5328_p4 }
0x1f3f   : > { %5338 = shalt.err (!%p5335_p8)
}
0x1f40   : > { %4732 = dma.vmem_to_hbm [thread:$0]  (%p6822_p11), %s3830_s12, 16, %s6538_s10, %s3812_s18  }
0x1f41   : > { %s4355_s11 = sshll.u32 %s6819_s13, 6  ;;  %s3842_s29 = sshll.u32 %s6166_s19, 4  ;;  %s3843_s29 = int_to_ptr.vmem [resolvable:$true] %s3842_s29 }
0x1f42   : > { %s6823_s24 = sld [smem:[#allocation75_spill]]  ;;  %s3816_s2 = scalar_lea.sflag [#allocation23], %s6109_s9 }
0x1f43   : > { %s5339_s0 = scalar_lea.vmem %s3843_s29, 64  ;;  %s5512_s14 = smov [#allocation22]  }
0x1f44   : > { %p5340_p10 = scmp.ne.s32.totalorder %s3843_s29, %s5339_s0  ;;  %s5343_s21 = sshll.u32 %s5512_s14, 4  ;;  %s5344_s21 = int_to_ptr.vmem [resolvable:$false] %s5343_s21 }
0x1f45   : > { %s5345_s6 = scalar_lea.vmem %s5344_s21, 128  ;;  %p5346_p5 = scmp.lt.s32.totalorder %s3843_s29, %s5344_s21 }
0x1f46   : > { %p5341_p0 = pnand %p5340_p10, %p6822_p11  ;;  %p5347_p6 = scmp.lt.s32.totalorder %s5345_s6, %s5339_s0 }
0x1f48   : > { %s6565_s20 = scalar_lea.hbm %s6823_s24, %s4355_s11  ;;  %p5342_p9 = pneg %p5341_p0 }
0x1f49   : > { %p5348_p12 = por %p5347_p6, %p5346_p5 }
0x1f4b   : > { %p5349_p4 = pnand %p5348_p12, %p5342_p9 }
0x1f4d   : > { %5352 = shalt.err (!%p5349_p4)
}
0x1f4e   : > { %s5353_s19 = scalar_lea.hbm %s6565_s20, 64  ;;  %s5357_s10 = scalar_lea.hbm %s6823_s24, 128 }
0x1f4f   : > { %p5354_p13 = scmp.ne.s32.totalorder %s6565_s20, %s5353_s19  ;;  %p5358_p7 = scmp.lt.u32.totalorder %s6565_s20, %s6823_s24 }
0x1f50   : > { %p5359_p1 = scmp.lt.u32.totalorder %s5357_s10, %s5353_s19  ;;  %p5361_p10 = scmp.lt.u32.totalorder %s5353_s19, %s6565_s20 }
0x1f51   : > { %p5355_p2 = pnand %p5354_p13, %p6822_p11 }
0x1f52   : > { %p5360_p8 = por %p5359_p1, %p5358_p7 }
0x1f53   : > { %p5356_p3 = pneg %p5355_p2 }
0x1f54   : > { %p5362_p0 = por %p5361_p10, %p5360_p8 }
0x1f56   : > { %p5363_p9 = pnand %p5362_p0, %p5356_p3 }
0x1f58   : > { %5366 = shalt.err (!%p5363_p9)
}
0x1f59   : > { %4733 = dma.vmem_to_hbm [thread:$0]  (%p6822_p11), %s3843_s29, 64, %s6565_s20, %s3816_s2  }
0x1f5a PF: > { %s6824_s5 = sld [smem:[#allocation41_spill]]  ;;  %s6825_s27 = sld [smem:[#allocation32_spill]] }
0x1f5b   : > { %s6826_s7 = sld [smem:[#allocation43_spill]] }
0x1f60   : > { %p4785_p5 = scmp.ge.s32.totalorder %s6824_s5, 2  ;;  %s3854_s3 = sand.u32 1, %s6825_s27  }
0x1f61   : > { %p6827_p6 = scmp.ne.s32.totalorder %s6826_s7, 0  ;;  %s3855_s8 = scalar_lea.sflag [#allocation5], %s3854_s3 }
0x1f63   : > { %p4772_p12 = pnand %p4785_p5, %p6827_p6 }
0x1f65   : > { %5436 = dma.done.wait (!%p4772_p12), %s3855_s8, 16  }
0x1f66   : > { %5438 = vsyncadd (!%p4772_p12), %s3855_s8, 4294967280  ;;  %s3863_s1 = scalar_lea.sflag [#allocation23], %s3854_s3 }
0x1f67   : > { %5440 = dma.done.wait (!%p4772_p12), %s3863_s1, 64  }
0x1f68   : > { %5442 = vsyncadd (!%p4772_p12), %s3863_s1, 4294967232  ;;  %s57_s2 = sadd.s32 1, %s6824_s5   ;;  %s6828_s27 = sld [smem:[#allocation33_spill]] }
0x1f69   : > { %p54_p4 = scmp.ge.s32.totalorder %s57_s2, 6   ;;  %s6829_s3 = sld [smem:[#allocation34_spill]] }
0x1f6a   : > { %s6830_s7 = sld [smem:[#allocation47_spill]]  ;;  %s6831_s28 = sld [smem:[#allocation35_spill]] }
0x1f6b   : > { %s6832_s8 = sld [smem:[#allocation36_spill]]  ;;  %s6833_s4 = sld [smem:[#allocation46_spill]] }
0x1f6c   : > { %s6834_s29 = sld [smem:[#allocation39_spill]]  ;;  %s6835_s0 = sld [smem:[#allocation40_spill]] }
0x1f6d   : > { %s6836_s9 = sld [smem:[#allocation44_spill]]  ;;  %s6837_s30 = sld [smem:[#allocation45_spill]] }
0x1f6e   :  { %56 = sbr.rel (!%p54_p4) target bundleno = 47 (0x2f), region = 316 }
0x1f75   :  { %3868 = vsyncpa [#allocation4], 1 }
0x1f76   :  { %3870 = vsyncpa [#allocation4 + $0x1], 1 }
0x1f77   :  { %3871 = vsyncpa [#allocation7], 1 }
0x1f78   :  { %3873 = vsyncpa [#allocation7 + $0x1], 1 }
0x1f79   :  { %3874 = vsyncpa [#allocation10], 1 }
0x1f7a   :  { %3876 = vsyncpa [#allocation10 + $0x1], 1 }
0x1f7b   :  { %3877 = vsyncpa [#allocation13], 1 }
0x1f7c   :  { %3879 = vsyncpa [#allocation13 + $0x1], 1 }
0x1f7d   :  { %3880 = vsyncpa [#allocation16], 1 }
0x1f7e   :  { %3882 = vsyncpa [#allocation16 + $0x1], 1 }
0x1f7f   :  { %3883 = vsyncpa [#allocation19], 1 }
0x1f80   :  { %3884 = vsyncpa [#allocation5], 1 }
0x1f81   :  { %3886 = vsyncpa [#allocation5 + $0x1], 1 }
0x1f82   :  { %3887 = vsyncpa [#allocation23], 1 }
0x1f83   :  { %3889 = vsyncpa [#allocation23 + $0x1], 1 }

</bundles_post_ra>
